<compile_context>
chip_gen: v7x
topology: tpu7x:2x2x1
jax: 0.10.0
libtpu: 0.0.40
codegen_flags: <defaults>
</compile_context>

<pallas_src>
import math

import jax
import jax.numpy as jnp
from jax.experimental import pallas as pl
from jax.experimental.pallas import tpu as pltpu

# ---------------- model dims ----------------
FP_IN = 64       # fingerprint_embed_in
H = 32           # fingerprint_embed_out == d_model == GRU hidden size
FEAT = 16        # feature_size
N_OUT = 4        # n_output
EPS = 1e-5       # ScaleNorm eps
LANES = 128      # padded lane width for the packed slabs
BT = 256         # batch rows per grid step (bf16 operands)

# Row offsets inside the packed weight slab (all multiples of 16 -> bf16-tile
# aligned)
R_FP = 0                      # fingerprint encoder rows (64), cols 0..31
R_FE = R_FP + FP_IN           # 64  feature encoder rows (16), cols 32..63
R_GRU = R_FE + FEAT           # 80  fused GRU weight (64 rows)
R_EMB = R_GRU + 2 * H         # 144 embs (32 rows)
R_P0 = R_EMB + H              # 176 proj layer 0 (32 rows)
R_P1 = R_P0 + H               # 208 proj layer 1 (32 rows, pre-scaled by g0)
R_OUT = R_P1 + H              # 240 final linear (32 rows, pre-scaled by g1)
W_ROWS = R_OUT + H            # 272


# ---------------- exact math (used by the pure-JAX reference) ----------------
def _mish_exact(v):
    # softplus with PyTorch's threshold=20 behaviour
    sp = jnp.where(v > 20.0, v, jnp.log1p(jnp.exp(jnp.minimum(v, 20.0))))
    return v * jnp.tanh(sp)


def _scale_norm_exact(v, g, eps=EPS):
    nrm = jnp.sqrt(jnp.sum(v * v, axis=-1, keepdims=True))
    return v * (g / jnp.maximum(nrm, eps))


# ---------------- Pallas kernel ----------------
def molecular_nn_kernel(fp_ref, feat_ref, w_ref, b_ref, out_ref):
    f32 = jnp.float32
    bf16 = jnp.bfloat16
    bias = b_ref[...]                    # (8, 128) f32

    fp = fp_ref[...].astype(bf16)        # (BT, 64)
    feat = feat_ref[...].astype(bf16)    # (BT, 16)

    # --- encoder: two independent bf16 dots (block-diagonal structure, no
    #     concat needed); fp -> lanes [0,H), feat -> lanes [H,2H) ---
    enc = (jnp.dot(fp, w_ref[R_FP:R_FE, :], preferred_element_type=f32)
           + jnp.dot(feat, w_ref[R_FE:R_GRU, :], preferred_element_type=f32)
           + bias[0:1, :])
    e2 = enc[:, :2 * H]
    lane = jax.lax.broadcasted_iota(jnp.int32, e2.shape, 1)
    # lanes [0,H): relu(fingerprint path); lanes [H,2H): sigmoid(feature path)
    xh = jnp.where(lane < H, jnp.maximum(e2, 0.0), jax.nn.sigmoid(e2))
    h = xh[:, H:2 * H]

    # --- fused GRUCell: one (BT,64)@(64,128) matmul producing
    #     [ i_r+h_r | i_z+h_z | i_n | h_n ] with pre-summed r/z biases ---
    g = jnp.dot(xh.astype(bf16), w_ref[R_GRU:R_EMB, :],
                preferred_element_type=f32) + bias[1:2, :]
    rz = jax.nn.sigmoid(g[:, :2 * H])
    r = rz[:, :H]
    z = rz[:, H:2 * H]
    n = jnp.tanh(g[:, 2 * H:3 * H] + r * g[:, 3 * H:])
    hy = (1.0 - z) * n + z * h

    # --- all_features = sigmoid(embs(hy)) ---
    a = jnp.dot(hy.astype(bf16), w_ref[R_EMB:R_P0, :],
                preferred_element_type=f32)[:, :H] + bias[2:3, :H]
    a = jax.nn.sigmoid(a)

    def mish(v):
        # x * tanh(softplus(x)) == x * (t^2 - 1) / (t^2 + 1),  t = 1 + e^x
        # (threshold=20 clamp kept; algebraically exact, f32 cancellation in
        #  the deep negative tail is < 1e-7 absolute)
        t = 1.0 + jnp.exp(jnp.minimum(v, 20.0))
        u = t * t
        return v * (u - 1.0) / (u + 1.0)

    def normalize(v):
        # x / clamp(||x||, eps) == x * rsqrt(max(||x||^2, eps^2));
        # the ScaleNorm gain is folded into the next layer's weights.
        ss = jnp.sum(v * v, axis=-1, keepdims=True)
        return v * jax.lax.rsqrt(jnp.maximum(ss, EPS * EPS))

    # --- FNN: 2x [Linear -> Mish -> ScaleNorm -> (Dropout=id)] -> Linear ---
    a = jnp.dot(a.astype(bf16), w_ref[R_P0:R_P1, :],
                preferred_element_type=f32)[:, :H] + bias[3:4, :H]
    a = normalize(mish(a))
    a = jnp.dot(a.astype(bf16), w_ref[R_P1:R_OUT, :],      # carries g0
                preferred_element_type=f32)[:, :H] + bias[4:5, :H]
    a = normalize(mish(a))

    out = jnp.dot(a.astype(bf16), w_ref[R_OUT:W_ROWS, :],  # carries g1
                  preferred_element_type=f32) + bias[5:6, :]
    # task == 'cls' and eval mode -> sigmoid.  Lane-dense (BT,128) store;
    # the wrapper slices out the first N_OUT columns.
    out_ref[...] = jax.nn.sigmoid(out)


# ---------------- wrapper ----------------
def molecular_nn_forward(fingerprint, feature, packed, *, block_b=BT):
    b = fingerprint.shape[0]
    nb = pl.cdiv(b, block_b)
    bp = nb * block_b
    if bp != b:
        fingerprint = jnp.pad(fingerprint, ((0, bp - b), (0, 0)))
        feature = jnp.pad(feature, ((0, bp - b), (0, 0)))

    out = pl.pallas_call(
        molecular_nn_kernel,
        out_shape=jax.ShapeDtypeStruct((bp, LANES), jnp.float32),
        grid=(nb,),
        in_specs=[
            pl.BlockSpec((block_b, FP_IN), lambda i: (i, 0)),
            pl.BlockSpec((block_b, FEAT), lambda i: (i, 0)),
            # weight / bias slabs: full-array blocks, DMA'd once, VMEM-resident
            pl.BlockSpec((W_ROWS, LANES), lambda i: (0, 0)),
            pl.BlockSpec((8, LANES), lambda i: (0, 0)),
        ],
        out_specs=pl.BlockSpec((block_b, LANES), lambda i: (i, 0)),
        compiler_params=pltpu.CompilerParams(
            dimension_semantics=("parallel",)),
        cost_estimate=pl.CostEstimate(
            flops=2 * bp * LANES * W_ROWS,
            transcendentals=bp * 512,
            bytes_accessed=4 * bp * (FP_IN + FEAT + LANES)
            + 2 * W_ROWS * LANES + 4 * 8 * LANES,
        ),
    )(fingerprint, feature, packed["w_slab"], packed["b_slab"])
    return out[:b, :N_OUT]


# ---------------- parameter construction & packing ----------------
def make_params(key):
    """Deterministic synthetic parameters (stored as (in, out) for x @ W)."""
    ks = jax.random.split(key, 16)

    def w(k, shape, scale=0.1):
        return (scale * jax.random.normal(k, shape)).astype(jnp.float32)

    return {
        "w_fp": w(ks[0], (FP_IN, H)),   "b_fp": w(ks[1], (1, H)),
        "w_fe": w(ks[2], (FEAT, H)),    "b_fe": w(ks[3], (1, H)),
        "w_ih": w(ks[4], (H, 3 * H)),   "b_ih": w(ks[5], (1, 3 * H)),
        "w_hh": w(ks[6], (H, 3 * H)),   "b_hh": w(ks[7], (1, 3 * H)),
        "w_emb": w(ks[8], (H, H)),      "b_emb": w(ks[9], (1, H)),
        "w_p0": w(ks[10], (H, H)),      "b_p0": w(ks[11], (1, H)),
        "g0": jnp.full((1, 1), math.sqrt(H), dtype=jnp.float32),
        "w_p1": w(ks[12], (H, H)),      "b_p1": w(ks[13], (1, H)),
        "g1": jnp.full((1, 1), math.sqrt(H), dtype=jnp.float32),
        "w_out": w(ks[14], (H, N_OUT)), "b_out": w(ks[15], (1, N_OUT)),
    }


def pack_params(p):
    """One-time packing into a bf16 weight slab and an f32 bias slab."""
    f32 = jnp.float32

    def pad_cols(w, col_off=0):
        out = jnp.zeros((w.shape[0], LANES), f32)
        return out.at[:, col_off:col_off + w.shape[1]].set(w.astype(f32))

    # encoder blocks: fp weights feed lanes [0,H), feat weights lanes [H,2H)
    w_fp_blk = pad_cols(p["w_fp"], 0)        # (64, 128)
    w_fe_blk = pad_cols(p["w_fe"], H)        # (16, 128)

    # fused GRU weight: (2H, 4H) = [[Wih_r Wih_z Wih_n 0],[Whh_r Whh_z 0 Whh_n]]
    wih, whh = p["w_ih"], p["w_hh"]
    w_gru = jnp.concatenate([
        jnp.concatenate([wih[:, :H], wih[:, H:2 * H], wih[:, 2 * H:],
                         jnp.zeros((H, H), f32)], axis=1),
        jnp.concatenate([whh[:, :H], whh[:, H:2 * H],
                         jnp.zeros((H, H), f32), whh[:, 2 * H:]], axis=1)],
        axis=0)                              # (64, 128)

    # ScaleNorm gains folded into the following linear weights (exact: the
    # gain is a scalar factor on the normalized activations).
    g0 = p["g0"][0, 0]
    g1 = p["g1"][0, 0]

    w_slab = jnp.concatenate(
        [w_fp_blk, w_fe_blk, w_gru, pad_cols(p["w_emb"]), pad_cols(p["w_p0"]),
         pad_cols(g0 * p["w_p1"]), pad_cols(g1 * p["w_out"])],
        axis=0).astype(jnp.bfloat16)         # (272, 128) bf16
    assert w_slab.shape == (W_ROWS, LANES)

    def pad_row(b):
        b = b.reshape(-1)
        return jnp.pad(b, (0, LANES - b.shape[0])).astype(f32)

    b_enc = jnp.zeros(LANES, f32)
    b_enc = b_enc.at[:H].set(p["b_fp"].reshape(-1))
    b_enc = b_enc.at[H:2 * H].set(p["b_fe"].reshape(-1))

    bih, bhh = p["b_ih"].reshape(-1), p["b_hh"].reshape(-1)
    b_gru = jnp.concatenate([bih[:H] + bhh[:H], bih[H:2 * H] + bhh[H:2 * H],
                             bih[2 * H:], bhh[2 * H:]])   # (128,)

    b_slab = jnp.stack([
        b_enc, b_gru.astype(f32), pad_row(p["b_emb"]), pad_row(p["b_p0"]),
        pad_row(p["b_p1"]), pad_row(p["b_out"]),
        jnp.zeros(LANES, f32), jnp.zeros(LANES, f32)])    # (8, 128) f32

    return {"w_slab": w_slab, "b_slab": b_slab}


# ---------------- pure-JAX reference (PyTorch semantics, f32) ----------------
def reference_forward(fingerprint, feature, p):
    x = jnp.maximum(fingerprint @ p["w_fp"] + p["b_fp"], 0.0)
    h = jax.nn.sigmoid(feature @ p["w_fe"] + p["b_fe"])
    gi = x @ p["w_ih"] + p["b_ih"]
    gh = h @ p["w_hh"] + p["b_hh"]
    i_r, i_z, i_n = gi[:, :H], gi[:, H:2 * H], gi[:, 2 * H:]
    h_r, h_z, h_n = gh[:, :H], gh[:, H:2 * H], gh[:, 2 * H:]
    r = jax.nn.sigmoid(i_r + h_r)
    z = jax.nn.sigmoid(i_z + h_z)
    n = jnp.tanh(i_n + r * h_n)
    hy = (1.0 - z) * n + z * h
    a = jax.nn.sigmoid(hy @ p["w_emb"] + p["b_emb"])
    for wk, bk, gk in (("w_p0", "b_p0", "g0"), ("w_p1", "b_p1", "g1")):
        v = a @ p[wk] + p[bk]
        a = _scale_norm_exact(_mish_exact(v), p[gk][0, 0])
    out = a @ p["w_out"] + p["b_out"]
    return jax.nn.sigmoid(out)


if __name__ == "__main__":
    key = jax.random.PRNGKey(0)
    k_fp, k_feat, k_params = jax.random.split(key, 3)

    Bglobal = 2 * BT   # 512 rows -> 2 "parallel" grid steps of BT=256
    fingerprint = jax.random.normal(k_fp, (Bglobal, FP_IN), dtype=jnp.float32)
    feature = jax.random.normal(k_feat, (Bglobal, FEAT), dtype=jnp.float32)
    params = make_params(k_params)
    packed = pack_params(params)

    out = molecular_nn_forward(fingerprint, feature, packed)
    out = jax.block_until_ready(out)

    ref = reference_forward(fingerprint, feature, params)
    assert out.shape == (Bglobal, N_OUT)
    # bf16 MXU operands vs the f32 reference: tolerance loosened per review.
    err = float(jnp.max(jnp.abs(out - ref)))
    assert err < 3e-2, f"Pallas output mismatch vs reference (max err {err})"

    print("KERNEL_OK")
</pallas_src>

<mosaic_0001>
module attributes {stable_mosaic.version = 11 : i64} {
  func.func @molecular_nn_kernel(%arg0: i32, %arg1: memref<256x64xf32, #tpu.memory_space<vmem>>, %arg2: memref<256x16xf32, #tpu.memory_space<vmem>>, %arg3: memref<272x128xbf16, #tpu.memory_space<vmem>>, %arg4: memref<8x128xf32, #tpu.memory_space<vmem>>, %arg5: memref<256x128xf32, #tpu.memory_space<vmem>>) attributes {dimension_semantics = [#tpu.dimension_semantics<parallel>], iteration_bounds = array<i64: 2>, scalar_prefetch = 0 : i64, scratch_operands = 0 : i64, tpu.core_type = #tpu.core_type<tc>, window_params = [{transform_indices = @transform_0, window_bounds = array<i64: 256, 64>}, {transform_indices = @transform_1, window_bounds = array<i64: 256, 16>}, {pipeline_mode = #tpu.pipeline_mode<synchronous>, transform_indices = @transform_2, window_bounds = array<i64: 272, 128>}, {pipeline_mode = #tpu.pipeline_mode<synchronous>, transform_indices = @transform_3, window_bounds = array<i64: 8, 128>}, {transform_indices = @transform_4, window_bounds = array<i64: 256, 128>}]} {
    %c0 = arith.constant 0 : index
    %c0_0 = arith.constant 0 : index
    %0 = vector.load %arg4[%c0, %c0_0] : memref<8x128xf32, #tpu.memory_space<vmem>>, vector<8x128xf32>
    %c0_1 = arith.constant 0 : index
    %c0_2 = arith.constant 0 : index
    %1 = vector.load %arg1[%c0_1, %c0_2] : memref<256x64xf32, #tpu.memory_space<vmem>>, vector<256x64xf32>
    %2 = arith.truncf %1 : vector<256x64xf32> to vector<256x64xbf16>
    %c0_3 = arith.constant 0 : index
    %c0_4 = arith.constant 0 : index
    %3 = vector.load %arg2[%c0_3, %c0_4] : memref<256x16xf32, #tpu.memory_space<vmem>>, vector<256x16xf32>
    %4 = arith.truncf %3 : vector<256x16xf32> to vector<256x16xbf16>
    %c0_5 = arith.constant 0 : index
    %c0_6 = arith.constant 0 : index
    %5 = vector.load %arg3[%c0_5, %c0_6] : memref<272x128xbf16, #tpu.memory_space<vmem>>, vector<64x128xbf16>
    %cst = arith.constant dense<0.000000e+00> : vector<256x128xf32>
    %6 = tpu.matmul %2, %5, %cst {dimension_numbers = #tpu.dot_dimension_numbers<[1], [0], [0], [1], [0, 0, 1, 1], [], []>} : vector<256x64xbf16>, vector<64x128xbf16>, vector<256x128xf32> -> vector<256x128xf32>
    %c64 = arith.constant 64 : index
    %c0_7 = arith.constant 0 : index
    %7 = vector.load %arg3[%c64, %c0_7] : memref<272x128xbf16, #tpu.memory_space<vmem>>, vector<16x128xbf16>
    %cst_8 = arith.constant dense<0.000000e+00> : vector<256x128xf32>
    %8 = tpu.matmul %4, %7, %cst_8 {dimension_numbers = #tpu.dot_dimension_numbers<[1], [0], [0], [1], [0, 0, 1, 1], [], []>} : vector<256x16xbf16>, vector<16x128xbf16>, vector<256x128xf32> -> vector<256x128xf32>
    %9 = arith.addf %6, %8 : vector<256x128xf32>
    %10 = vector.extract_strided_slice %0 {offsets = [0, 0], sizes = [1, 128], strides = [1, 1]} : vector<8x128xf32> to vector<1x128xf32>
    %11 = vector.broadcast %10 : vector<1x128xf32> to vector<256x128xf32>
    %12 = arith.addf %9, %11 : vector<256x128xf32>
    %13 = vector.extract_strided_slice %12 {offsets = [0, 0], sizes = [256, 64], strides = [1, 1]} : vector<256x128xf32> to vector<256x64xf32>
    %14 = tpu.iota {dimensions = array<i32: 1>} : vector<256x64xi32>
    %c32_i32 = arith.constant 32 : i32
    %15 = vector.broadcast %c32_i32 : i32 to vector<256x64xi32>
    %16 = arith.cmpi slt, %14, %15 : vector<256x64xi32>
    %cst_9 = arith.constant 0.000000e+00 : f32
    %17 = vector.broadcast %cst_9 : f32 to vector<256x64xf32>
    %18 = arith.maximumf %13, %17 : vector<256x64xf32>
    %19 = arith.negf %13 : vector<256x64xf32>
    %20 = math.exp %19 : vector<256x64xf32>
    %cst_10 = arith.constant 1.000000e+00 : f32
    %21 = vector.broadcast %cst_10 : f32 to vector<256x64xf32>
    %22 = arith.addf %21, %20 : vector<256x64xf32>
    %23 = arith.divf %21, %22 : vector<256x64xf32>
    %24 = arith.select %16, %18, %23 : vector<256x64xi1>, vector<256x64xf32>
    %25 = vector.extract_strided_slice %24 {offsets = [0, 32], sizes = [256, 32], strides = [1, 1]} : vector<256x64xf32> to vector<256x32xf32>
    %26 = arith.truncf %24 : vector<256x64xf32> to vector<256x64xbf16>
    %c80 = arith.constant 80 : index
    %c0_11 = arith.constant 0 : index
    %27 = vector.load %arg3[%c80, %c0_11] : memref<272x128xbf16, #tpu.memory_space<vmem>>, vector<64x128xbf16>
    %cst_12 = arith.constant dense<0.000000e+00> : vector<256x128xf32>
    %28 = tpu.matmul %26, %27, %cst_12 {dimension_numbers = #tpu.dot_dimension_numbers<[1], [0], [0], [1], [0, 0, 1, 1], [], []>} : vector<256x64xbf16>, vector<64x128xbf16>, vector<256x128xf32> -> vector<256x128xf32>
    %29 = vector.extract_strided_slice %0 {offsets = [1, 0], sizes = [1, 128], strides = [1, 1]} : vector<8x128xf32> to vector<1x128xf32>
    %30 = vector.broadcast %29 : vector<1x128xf32> to vector<256x128xf32>
    %31 = arith.addf %28, %30 : vector<256x128xf32>
    %32 = vector.extract_strided_slice %31 {offsets = [0, 0], sizes = [256, 64], strides = [1, 1]} : vector<256x128xf32> to vector<256x64xf32>
    %33 = arith.negf %32 : vector<256x64xf32>
    %34 = math.exp %33 : vector<256x64xf32>
    %cst_13 = arith.constant 1.000000e+00 : f32
    %35 = vector.broadcast %cst_13 : f32 to vector<256x64xf32>
    %36 = arith.addf %35, %34 : vector<256x64xf32>
    %37 = arith.divf %35, %36 : vector<256x64xf32>
    %38 = vector.extract_strided_slice %37 {offsets = [0, 0], sizes = [256, 32], strides = [1, 1]} : vector<256x64xf32> to vector<256x32xf32>
    %39 = vector.extract_strided_slice %37 {offsets = [0, 32], sizes = [256, 32], strides = [1, 1]} : vector<256x64xf32> to vector<256x32xf32>
    %40 = vector.extract_strided_slice %31 {offsets = [0, 64], sizes = [256, 32], strides = [1, 1]} : vector<256x128xf32> to vector<256x32xf32>
    %41 = vector.extract_strided_slice %31 {offsets = [0, 96], sizes = [256, 32], strides = [1, 1]} : vector<256x128xf32> to vector<256x32xf32>
    %42 = arith.mulf %38, %41 : vector<256x32xf32>
    %43 = arith.addf %40, %42 : vector<256x32xf32>
    %44 = math.tanh %43 : vector<256x32xf32>
    %cst_14 = arith.constant 1.000000e+00 : f32
    %45 = vector.broadcast %cst_14 : f32 to vector<256x32xf32>
    %46 = arith.subf %45, %39 : vector<256x32xf32>
    %47 = arith.mulf %46, %44 : vector<256x32xf32>
    %48 = arith.mulf %39, %25 : vector<256x32xf32>
    %49 = arith.addf %47, %48 : vector<256x32xf32>
    %50 = arith.truncf %49 : vector<256x32xf32> to vector<256x32xbf16>
    %c144 = arith.constant 144 : index
    %c0_15 = arith.constant 0 : index
    %51 = vector.load %arg3[%c144, %c0_15] : memref<272x128xbf16, #tpu.memory_space<vmem>>, vector<32x128xbf16>
    %cst_16 = arith.constant dense<0.000000e+00> : vector<256x128xf32>
    %52 = tpu.matmul %50, %51, %cst_16 {dimension_numbers = #tpu.dot_dimension_numbers<[1], [0], [0], [1], [0, 0, 1, 1], [], []>} : vector<256x32xbf16>, vector<32x128xbf16>, vector<256x128xf32> -> vector<256x128xf32>
    %53 = vector.extract_strided_slice %52 {offsets = [0, 0], sizes = [256, 32], strides = [1, 1]} : vector<256x128xf32> to vector<256x32xf32>
    %54 = vector.extract_strided_slice %0 {offsets = [2, 0], sizes = [1, 32], strides = [1, 1]} : vector<8x128xf32> to vector<1x32xf32>
    %55 = vector.broadcast %54 : vector<1x32xf32> to vector<256x32xf32>
    %56 = arith.addf %53, %55 : vector<256x32xf32>
    %57 = arith.negf %56 : vector<256x32xf32>
    %58 = math.exp %57 : vector<256x32xf32>
    %cst_17 = arith.constant 1.000000e+00 : f32
    %59 = vector.broadcast %cst_17 : f32 to vector<256x32xf32>
    %60 = arith.addf %59, %58 : vector<256x32xf32>
    %61 = arith.divf %59, %60 : vector<256x32xf32>
    %62 = arith.truncf %61 : vector<256x32xf32> to vector<256x32xbf16>
    %c176 = arith.constant 176 : index
    %c0_18 = arith.constant 0 : index
    %63 = vector.load %arg3[%c176, %c0_18] : memref<272x128xbf16, #tpu.memory_space<vmem>>, vector<32x128xbf16>
    %cst_19 = arith.constant dense<0.000000e+00> : vector<256x128xf32>
    %64 = tpu.matmul %62, %63, %cst_19 {dimension_numbers = #tpu.dot_dimension_numbers<[1], [0], [0], [1], [0, 0, 1, 1], [], []>} : vector<256x32xbf16>, vector<32x128xbf16>, vector<256x128xf32> -> vector<256x128xf32>
    %65 = vector.extract_strided_slice %64 {offsets = [0, 0], sizes = [256, 32], strides = [1, 1]} : vector<256x128xf32> to vector<256x32xf32>
    %66 = vector.extract_strided_slice %0 {offsets = [3, 0], sizes = [1, 32], strides = [1, 1]} : vector<8x128xf32> to vector<1x32xf32>
    %67 = vector.broadcast %66 : vector<1x32xf32> to vector<256x32xf32>
    %68 = arith.addf %65, %67 : vector<256x32xf32>
    %cst_20 = arith.constant 2.000000e+01 : f32
    %69 = vector.broadcast %cst_20 : f32 to vector<256x32xf32>
    %70 = arith.minimumf %68, %69 : vector<256x32xf32>
    %71 = math.exp %70 : vector<256x32xf32>
    %cst_21 = arith.constant 1.000000e+00 : f32
    %72 = vector.broadcast %cst_21 : f32 to vector<256x32xf32>
    %73 = arith.addf %72, %71 : vector<256x32xf32>
    %74 = arith.mulf %73, %73 : vector<256x32xf32>
    %cst_22 = arith.constant 1.000000e+00 : f32
    %75 = vector.broadcast %cst_22 : f32 to vector<256x32xf32>
    %76 = arith.subf %74, %75 : vector<256x32xf32>
    %77 = arith.mulf %68, %76 : vector<256x32xf32>
    %cst_23 = arith.constant 1.000000e+00 : f32
    %78 = vector.broadcast %cst_23 : f32 to vector<256x32xf32>
    %79 = arith.addf %74, %78 : vector<256x32xf32>
    %80 = arith.divf %77, %79 : vector<256x32xf32>
    %81 = arith.mulf %80, %80 : vector<256x32xf32>
    %cst_24 = arith.constant dense<0.000000e+00> : vector<256xf32>
    %82 = vector.multi_reduction <add>, %81, %cst_24 [1] : vector<256x32xf32> to vector<256xf32>
    %83 = vector.shape_cast %82 : vector<256xf32> to vector<256x1xf32>
    %cst_25 = arith.constant 1.000000e-10 : f32
    %84 = vector.broadcast %cst_25 : f32 to vector<256x1xf32>
    %85 = arith.maximumf %83, %84 : vector<256x1xf32>
    %86 = math.rsqrt %85 : vector<256x1xf32>
    %87 = vector.broadcast %86 : vector<256x1xf32> to vector<256x32xf32>
    %88 = arith.mulf %80, %87 : vector<256x32xf32>
    %89 = arith.truncf %88 : vector<256x32xf32> to vector<256x32xbf16>
    %c208 = arith.constant 208 : index
    %c0_26 = arith.constant 0 : index
    %90 = vector.load %arg3[%c208, %c0_26] : memref<272x128xbf16, #tpu.memory_space<vmem>>, vector<32x128xbf16>
    %cst_27 = arith.constant dense<0.000000e+00> : vector<256x128xf32>
    %91 = tpu.matmul %89, %90, %cst_27 {dimension_numbers = #tpu.dot_dimension_numbers<[1], [0], [0], [1], [0, 0, 1, 1], [], []>} : vector<256x32xbf16>, vector<32x128xbf16>, vector<256x128xf32> -> vector<256x128xf32>
    %92 = vector.extract_strided_slice %91 {offsets = [0, 0], sizes = [256, 32], strides = [1, 1]} : vector<256x128xf32> to vector<256x32xf32>
    %93 = vector.extract_strided_slice %0 {offsets = [4, 0], sizes = [1, 32], strides = [1, 1]} : vector<8x128xf32> to vector<1x32xf32>
    %94 = vector.broadcast %93 : vector<1x32xf32> to vector<256x32xf32>
    %95 = arith.addf %92, %94 : vector<256x32xf32>
    %cst_28 = arith.constant 2.000000e+01 : f32
    %96 = vector.broadcast %cst_28 : f32 to vector<256x32xf32>
    %97 = arith.minimumf %95, %96 : vector<256x32xf32>
    %98 = math.exp %97 : vector<256x32xf32>
    %cst_29 = arith.constant 1.000000e+00 : f32
    %99 = vector.broadcast %cst_29 : f32 to vector<256x32xf32>
    %100 = arith.addf %99, %98 : vector<256x32xf32>
    %101 = arith.mulf %100, %100 : vector<256x32xf32>
    %cst_30 = arith.constant 1.000000e+00 : f32
    %102 = vector.broadcast %cst_30 : f32 to vector<256x32xf32>
    %103 = arith.subf %101, %102 : vector<256x32xf32>
    %104 = arith.mulf %95, %103 : vector<256x32xf32>
    %cst_31 = arith.constant 1.000000e+00 : f32
    %105 = vector.broadcast %cst_31 : f32 to vector<256x32xf32>
    %106 = arith.addf %101, %105 : vector<256x32xf32>
    %107 = arith.divf %104, %106 : vector<256x32xf32>
    %108 = arith.mulf %107, %107 : vector<256x32xf32>
    %cst_32 = arith.constant dense<0.000000e+00> : vector<256xf32>
    %109 = vector.multi_reduction <add>, %108, %cst_32 [1] : vector<256x32xf32> to vector<256xf32>
    %110 = vector.shape_cast %109 : vector<256xf32> to vector<256x1xf32>
    %cst_33 = arith.constant 1.000000e-10 : f32
    %111 = vector.broadcast %cst_33 : f32 to vector<256x1xf32>
    %112 = arith.maximumf %110, %111 : vector<256x1xf32>
    %113 = math.rsqrt %112 : vector<256x1xf32>
    %114 = vector.broadcast %113 : vector<256x1xf32> to vector<256x32xf32>
    %115 = arith.mulf %107, %114 : vector<256x32xf32>
    %116 = arith.truncf %115 : vector<256x32xf32> to vector<256x32xbf16>
    %c240 = arith.constant 240 : index
    %c0_34 = arith.constant 0 : index
    %117 = vector.load %arg3[%c240, %c0_34] : memref<272x128xbf16, #tpu.memory_space<vmem>>, vector<32x128xbf16>
    %cst_35 = arith.constant dense<0.000000e+00> : vector<256x128xf32>
    %118 = tpu.matmul %116, %117, %cst_35 {dimension_numbers = #tpu.dot_dimension_numbers<[1], [0], [0], [1], [0, 0, 1, 1], [], []>} : vector<256x32xbf16>, vector<32x128xbf16>, vector<256x128xf32> -> vector<256x128xf32>
    %119 = vector.extract_strided_slice %0 {offsets = [5, 0], sizes = [1, 128], strides = [1, 1]} : vector<8x128xf32> to vector<1x128xf32>
    %120 = vector.broadcast %119 : vector<1x128xf32> to vector<256x128xf32>
    %121 = arith.addf %118, %120 : vector<256x128xf32>
    %122 = arith.negf %121 : vector<256x128xf32>
    %123 = math.exp %122 : vector<256x128xf32>
    %cst_36 = arith.constant 1.000000e+00 : f32
    %124 = vector.broadcast %cst_36 : f32 to vector<256x128xf32>
    %125 = arith.addf %124, %123 : vector<256x128xf32>
    %126 = arith.divf %124, %125 : vector<256x128xf32>
    %c0_37 = arith.constant 0 : index
    %c0_38 = arith.constant 0 : index
    %127 = vector.load %arg5[%c0_37, %c0_38] : memref<256x128xf32, #tpu.memory_space<vmem>>, vector<256x128xf32>
    tpu.vector_store %arg5[%c0_37, %c0_38], %126 {strides = array<i32>} : memref<256x128xf32, #tpu.memory_space<vmem>>, vector<256x128xf32>,
    return
  }
  func.func @transform_0(%arg0: i32) -> (i32, i32) {
    %c0_i32 = arith.constant 0 : i32
    %c0_i32_0 = arith.constant 0 : i32
    return %arg0, %c0_i32 : i32, i32
  }
  func.func @transform_1(%arg0: i32) -> (i32, i32) {
    %c0_i32 = arith.constant 0 : i32
    %c0_i32_0 = arith.constant 0 : i32
    return %arg0, %c0_i32 : i32, i32
  }
  func.func @transform_2(%arg0: i32) -> (i32, i32) {
    %c0_i32 = arith.constant 0 : i32
    %c0_i32_0 = arith.constant 0 : i32
    %c0_i32_1 = arith.constant 0 : i32
    return %c0_i32, %c0_i32_0 : i32, i32
  }
  func.func @transform_3(%arg0: i32) -> (i32, i32) {
    %c0_i32 = arith.constant 0 : i32
    %c0_i32_0 = arith.constant 0 : i32
    %c0_i32_1 = arith.constant 0 : i32
    return %c0_i32, %c0_i32_0 : i32, i32
  }
  func.func @transform_4(%arg0: i32) -> (i32, i32) {
    %c0_i32 = arith.constant 0 : i32
    %c0_i32_0 = arith.constant 0 : i32
    return %arg0, %c0_i32 : i32, i32
  }
}

</mosaic_0001>

<bundles_post_ra>
// kernel: tpu_custom_call.1
= control target key start
LH: loop header
LB: loop body
LE: loop exit
PB: predicated region body
PF: predicated region fallthrough
CT: control target
= control target key end

     0   :  { %9 = vsyncpa [#allocation3], 0  ;;  %s8943_s0 = inlined_call_operand.vmem [shape: f32[512,64], index: 0, kind: input, shape index: {}]   ;;  %s8944_s1 = inlined_call_operand.vmem [shape: f32[512,16], index: 1, kind: input, shape index: {}]   ;;  %s8945_s2 = inlined_call_operand.vmem [shape: bf16[272,128], index: 2, kind: input, shape index: {}]   ;;  %s8946_s3 = inlined_call_operand.vmem [shape: f32[8,128], index: 3, kind: input, shape index: {}]   ;;  %s8947_s4 = inlined_call_operand.hbm [shape: f32[512,128], index: 4, kind: output, shape index: {}]  }
   0x1   :  { %11 = vsyncpa [#allocation3 + $0x1], 0  ;;  %s6728_s15 = smov 0   ;;  %s6730_s16 = smov 0  }
   0x2   :  { %s6732_s17 = smov 0   ;;  %s6734_s18 = smov 0  }
   0x3 LB: > { %s6749_s19 = sadd.s32 4294967295, %s6695_s18   ;;  %s4852_s20 = sadd.s32 4294967294, %s6695_s18   ;;  %s6695_s18 = sphi %s6734_s18, %s9103_s18   ;;  %s6691_s17 = sphi %s6732_s17, %s9102_s17   ;;  %s6687_s16 = sphi %s6730_s16, %s9101_s16   ;;  %s6683_s15 = sphi %s6728_s15, %s9100_s15  }
   0x4   : > { %s6753_s21 = sadd.s32 1, %s6695_s18   ;;  %s118_s22 = sadd.s32 1, %s6691_s17 }
   0x5   : > { %s115_s23 = ssub.s32 %s6695_s18, %s6753_s21  ;;  %p128_p0 = scmp.ne.s32.totalorder %s6691_s17, %s6687_s16 }
   0x6   : > { %p116_p1 = scmp.eq.s32.totalorder %s115_s23, 0  ;;  %p129_p2 = scmp.eq.s32.totalorder %s6749_s19, 1 }
   0x7   : > { %p134_p3 = scmp.ne.s32.totalorder %s6687_s16, %s6683_s15  ;;  %p135_p4 = scmp.eq.s32.totalorder %s4852_s20, 1 }
   0x8   : > { %s6764_s24 = scalar_select %p116_p1, %s6691_s17, %s118_s22  }
   0x9   : > { %p6766_p5 = por %p129_p2, %p128_p0  ;;  %p6770_p6 = por %p135_p4, %p134_p3 }
   0xa   : > { %p4855_p7 = scmp.ge.s32.totalorder %s6695_s18, 1  ;;  %p177_p8 = scmp.lt.s32.totalorder %s6695_s18, 3 }
   0xc   : > { %p178_p9 = pnand %p4855_p7, %p177_p8 }
   0xe   : > { %181 = sbr.rel (%p178_p9) target bundleno = 2464 (0x9a0), region = 36 }
  0x15   : > { %v5653_v0 = vld [vmem:[%s8945_s2 + $0x20] sm:$0xff]   ;;  %s4857_s29 = sshll.u32 %s6749_s19, 5  ;;  %vm335_vm0 = vcmask 130048   ;;  %v5655_v11 = vld [vmem:[%s8945_s2 + $0x8] sm:$0xff]   ;;  %v5656_v16 = vld [vmem:[%s8945_s2 + $0x10] sm:$0xff]   ;;  %vm569_vm1 = vcmask 523264  }
  0x16   : > { %p209_p10 = scmp.lt.s32.totalorder %s4857_s29, 63  ;;  %5317 = vmatprep.subr.bf16.mxu0 %v5653_v0  ;;  %v5654_v1 = vld [vmem:[%s8945_s2] sm:$0xff]   ;;  %5575 = vmatprep.subr.bf16.mxu1 %v5653_v0  ;;  %v5657_v19 = vld [vmem:[%s8945_s2 + $0x18] sm:$0xff]   ;;  %s6697_s12 = smov 32   ;;  %vm2215_vm3 = vcmask 261120  }
  0x17   : > { %5318 = vmatpush3.bf16.msra.mxu0 %v5653_v0  ;;  %5576 = vmatpush3.bf16.msra.mxu1 %v5653_v0  ;;  %s6698_s13 = smov 64   ;;  %s6699_s14 = smov 96  }
  0x18   : > { %s9105_s29 = smov (!%p209_p10, %s4857_s29), 63  ;;  %5351 = vmatprep.subr.bf16.mxu0 %v5654_v1 }
  0x19   : > { %s4858_s6 = sshll.u32 %s9105_s29, 3  ;;  %s205_s29 = sand.u32 1, %s6687_s16  }
  0x1a   : > { %s6791_s9 = scalar_lea.vmem %s8944_s1, %s4858_s6  ;;  %s6837_s27 = scalar_lea.vmem %s8943_s0, %s4858_s6 }
  0x1b   : > { %v271_v2 = vld [vmem:[%s6791_s9] sm:$0xff]  ;;  %v272_v3 = vld [vmem:[%s6791_s9 + $0x8] sm:$0xff]  ;;  %v273_v4 = vld [vmem:[%s6791_s9 + $0x10] sm:$0xff]  ;;  %s4856_s30 = sshll.u32 %s205_s29, 8  ;;  %s5187_s6 = sshll.u32 %s6749_s19, 12 }
  0x1c   : > { %v303_v5 = vpack.c.bf16 %v272_v3, %v271_v2  ;;  %v274_v6 = vld [vmem:[%s6791_s9 + $0x18] sm:$0xff]  ;;  %v275_v7 = vld [vmem:[%s6791_s9 + $0x20] sm:$0xff]  ;;  %v276_v8 = vld [vmem:[%s6791_s9 + $0x28] sm:$0xff]  ;;  %s8836_s5 = scalar_lea.vmem [#allocation2], %s4856_s30  ;;  %s8893_s10 = scalar_lea.hbm %s8947_s4, %s5187_s6 }
  0x1d   : > { %v304_v9 = vpack.c.bf16 %v274_v6, %v273_v4  ;;  %v305_v10 = vpack.c.bf16 %v276_v8, %v275_v7  ;;  %v277_v12 = vld [vmem:[%s6791_s9 + $0x30] sm:$0xff]  ;;  %v278_v13 = vld [vmem:[%s6791_s9 + $0x38] sm:$0xff]  ;;  %v279_v14 = vld [vmem:[%s6791_s9 + $0x40] sm:$0xff]  ;;  %s4778_s7 = sshll.u32 %s8836_s5, 4  ;;  %s8902_s19 = scalar_lea.sflag [#allocation3], %s205_s29  ;;  %s8895_s7 = int_to_ptr.vmem [resolvable:$true] %s4778_s7 }
  0x1e   : > { %5319 = vmatprep.mubr.msk.bf16.mxu0 %vm335_vm0, %v303_v5  ;;  %v280_v15 = vld [vmem:[%s6791_s9 + $0x48] sm:$0xff]  ;;  %v306_v17 = vpack.c.bf16 %v278_v13, %v277_v12  ;;  %v287_v20 = vld [vmem:[%s6791_s9 + $0x80] sm:$0xff]  ;;  %v289_v22 = vld [vmem:[%s6791_s9 + $0x90] sm:$0xff]  ;;  %s6633_s11 = scalar_lea.vmem %s8895_s7, 4096 }
  0x1f   : > { %5320 = vmatmul.mubr.msk.bf16.vlgmr.msra.gmra.mrb[0].mxu0 %vm335_vm0, %v304_v9  ;;  %v307_v18 = vpack.c.bf16 %v280_v15, %v279_v14  ;;  %v288_v21 = vld [vmem:[%s6791_s9 + $0x88] sm:$0xff]  ;;  %v290_v23 = vld [vmem:[%s6791_s9 + $0x98] sm:$0xff]  ;;  %v281_v24 = vld [vmem:[%s6791_s9 + $0x50] sm:$0xff]  ;;  %p6634_p11 = scmp.ne.s32.totalorder %s8895_s7, %s6633_s11 }
  0x20   : > { %5352 = vmatpush3.bf16.msra.mxu0 %v5654_v1  ;;  %5323 = vmatprep.mubr.msk.bf16.mxu0 %vm335_vm0, %v305_v10  ;;  %v311_v25 = vpack.c.bf16 %v288_v21, %v287_v20  ;;  %v312_v26 = vpack.c.bf16 %v290_v23, %v289_v22  ;;  %v282_v27 = vld [vmem:[%s6791_s9 + $0x58] sm:$0xff]  ;;  %v291_v28 = vld [vmem:[%s6791_s9 + $0xa0] sm:$0xff]  ;;  %v292_v29 = vld [vmem:[%s6791_s9 + $0xa8] sm:$0xff] }
  0x21   : > { %5353 = vmatprep.subr.bf16.mxu0 %v5655_v11  ;;  %v283_v30 = vld [vmem:[%s6791_s9 + $0x60] sm:$0xff]  ;;  %v284_v31 = vld [vmem:[%s6791_s9 + $0x68] sm:$0xff]  ;;  %v313_v32 = vpack.c.bf16 %v292_v29, %v291_v28  ;;  %v308_v33 = vpack.c.bf16 %v282_v27, %v281_v24  ;;  %v293_v34 = vld [vmem:[%s6791_s9 + $0xb0] sm:$0xff]  ;;  %p6635_p12 = pnand %p6634_p11, %p6766_p5 }
  0x22   : > { %5335 = vmatprep.mubr.msk.bf16.mxu1 %vm335_vm0, %v311_v25  ;;  %v294_v35 = vld [vmem:[%s6791_s9 + $0xb8] sm:$0xff]  ;;  %v309_v36 = vpack.c.bf16 %v284_v31, %v283_v30  ;;  %v295_v37 = vld [vmem:[%s6791_s9 + $0xc0] sm:$0xff]  ;;  %v296_v38 = vld [vmem:[%s6791_s9 + $0xc8] sm:$0xff] }
  0x23   : > { %5336 = vmatmul.mubr.msk.bf16.vlgmr.msra.gmra.mrb[0].mxu1 %vm335_vm0, %v312_v26  ;;  %v314_v39 = vpack.c.bf16 %v294_v35, %v293_v34  ;;  %v285_v40 = vld [vmem:[%s6791_s9 + $0x70] sm:$0xff]  ;;  %v286_v41 = vld [vmem:[%s6791_s9 + $0x78] sm:$0xff]  ;;  %v223_v42 = vld [vmem:[%s6837_s27] sm:$0xff]  ;;  %v315_v43 = vpack.c.bf16 %v296_v38, %v295_v37  ;;  %p6636_p13 = pneg %p6635_p12 }
  0x24   : > { %5354 = vmatpush3.bf16.msra.mxu0 %v5655_v11  ;;  %5339 = vmatprep.mubr.msk.bf16.mxu1 %vm335_vm0, %v313_v32  ;;  %v224_v44 = vld [vmem:[%s6837_s27 + $0x8] sm:$0xff]  ;;  %v297_v45 = vld [vmem:[%s6791_s9 + $0xd0] sm:$0xff]  ;;  %v298_v46 = vld [vmem:[%s6791_s9 + $0xd8] sm:$0xff]  ;;  %v310_v49 = vpack.c.bf16 %v286_v41, %v285_v40 }
  0x25   : > { %5355 = vmatprep.subr.bf16.mxu0 %v5656_v16  ;;  %v299_v47 = vld [vmem:[%s6791_s9 + $0xe0] sm:$0xff]  ;;  %v300_v48 = vld [vmem:[%s6791_s9 + $0xe8] sm:$0xff]  ;;  %v255_v50 = vpack.c.bf16 %v224_v44, %v223_v42  ;;  %v316_v51 = vpack.c.bf16 %v298_v46, %v297_v45  ;;  %v225_v53 = vld [vmem:[%s6837_s27 + $0x10] sm:$0xff]  ;;  %v779_v45 = vlaneseq }
  0x26   : > { %v317_v52 = vpack.c.bf16 %v300_v48, %v299_v47  ;;  %v226_v54 = vld [vmem:[%s6837_s27 + $0x18] sm:$0xff]  ;;  %v227_v55 = vld [vmem:[%s6837_s27 + $0x20] sm:$0xff]  ;;  %v228_v56 = vld [vmem:[%s6837_s27 + $0x28] sm:$0xff] }
  0x27   : > { %5324 = vmatmul.mubr.msk.bf16.gmra.mrb[4].mxu0 %vm335_vm0, %v306_v17  ;;  %v256_v57 = vpack.c.bf16 %v226_v54, %v225_v53  ;;  %v301_v58 = vld [vmem:[%s6791_s9 + $0xf0] sm:$0xff]  ;;  %v302_v59 = vld [vmem:[%s6791_s9 + $0xf8] sm:$0xff]  ;;  %v257_v60 = vpack.c.bf16 %v228_v56, %v227_v55  ;;  %v231_v0 = vld [vmem:[%s6837_s27 + $0x40] sm:$0xff]  ;;  %v6930_v48 = vshrl.u32 %v779_v45, 7 }
  0x28   : > { %5327 = vmatprep.mubr.msk.bf16.mxu0 %vm335_vm0, %v307_v18  ;;  %5356 = vmatpush3.bf16.msra.mxu0 %v5656_v16  ;;  %v318_v61 = vpack.c.bf16 %v302_v59, %v301_v58  ;;  %v229_v62 = vld [vmem:[%s6837_s27 + $0x30] sm:$0xff]  ;;  %v230_v63 = vld [vmem:[%s6837_s27 + $0x38] sm:$0xff]  ;;  %v232_v1 = vld [vmem:[%s6837_s27 + $0x48] sm:$0xff] }
  0x29   : > { %5357 = vmatprep.subr.bf16.mxu0 %v5657_v19  ;;  %v258_v2 = vpack.c.bf16 %v230_v63, %v229_v62  ;;  %v259_v3 = vpack.c.bf16 %v232_v1, %v231_v0  ;;  %v233_v4 = vld [vmem:[%s6837_s27 + $0x50] sm:$0xff]  ;;  %v234_v5 = vld [vmem:[%s6837_s27 + $0x58] sm:$0xff]  ;;  %v235_v6 = vld [vmem:[%s6837_s27 + $0x60] sm:$0xff]  ;;  %9012 = vst [vmem:[#allocation5_spill] sm:$0xff] %v6930_v48 }
  0x2a   : > { %v236_v7 = vld [vmem:[%s6837_s27 + $0x68] sm:$0xff]  ;;  %v260_v8 = vpack.c.bf16 %v234_v5, %v233_v4  ;;  %v237_v10 = vld [vmem:[%s6837_s27 + $0x70] sm:$0xff]  ;;  %v238_v11 = vld [vmem:[%s6837_s27 + $0x78] sm:$0xff] }
  0x2b   : > { %5340 = vmatmul.mubr.msk.bf16.gmra.mrb[4].mxu1 %vm335_vm0, %v314_v39  ;;  %v261_v9 = vpack.c.bf16 %v236_v7, %v235_v6  ;;  %v239_v12 = vld [vmem:[%s6837_s27 + $0x80] sm:$0xff]  ;;  %v240_v13 = vld [vmem:[%s6837_s27 + $0x88] sm:$0xff]  ;;  %v262_v14 = vpack.c.bf16 %v238_v11, %v237_v10  ;;  %v241_v16 = vld [vmem:[%s6837_s27 + $0x90] sm:$0xff] }
  0x2c   : > { %5358 = vmatpush3.bf16.msra.mxu0 %v5657_v19  ;;  %5343 = vmatprep.mubr.msk.bf16.mxu1 %vm335_vm0, %v315_v43  ;;  %v263_v15 = vpack.c.bf16 %v240_v13, %v239_v12  ;;  %v242_v17 = vld [vmem:[%s6837_s27 + $0x98] sm:$0xff]  ;;  %v243_v18 = vld [vmem:[%s6837_s27 + $0xa0] sm:$0xff]  ;;  %v244_v19 = vld [vmem:[%s6837_s27 + $0xa8] sm:$0xff] }
  0x2d   : > { %v264_v20 = vpack.c.bf16 %v242_v17, %v241_v16  ;;  %v265_v21 = vpack.c.bf16 %v244_v19, %v243_v18  ;;  %v245_v22 = vld [vmem:[%s6837_s27 + $0xb0] sm:$0xff]  ;;  %v246_v23 = vld [vmem:[%s6837_s27 + $0xb8] sm:$0xff]  ;;  %v247_v24 = vld [vmem:[%s6837_s27 + $0xc0] sm:$0xff] }
  0x2e   : > { %v248_v25 = vld [vmem:[%s6837_s27 + $0xc8] sm:$0xff]  ;;  %v266_v26 = vpack.c.bf16 %v246_v23, %v245_v22  ;;  %v249_v28 = vld [vmem:[%s6837_s27 + $0xd0] sm:$0xff]  ;;  %v250_v29 = vld [vmem:[%s6837_s27 + $0xd8] sm:$0xff] }
  0x2f   : > { %5328 = vmatmul.mubr.msk.bf16.gmra.mrb[8].mxu0 %vm335_vm0, %v308_v33  ;;  %v267_v27 = vpack.c.bf16 %v248_v25, %v247_v24  ;;  %v251_v30 = vld [vmem:[%s6837_s27 + $0xe0] sm:$0xff]  ;;  %v252_v31 = vld [vmem:[%s6837_s27 + $0xe8] sm:$0xff]  ;;  %v268_v32 = vpack.c.bf16 %v250_v29, %v249_v28  ;;  %v253_v34 = vld [vmem:[%s6837_s27 + $0xf0] sm:$0xff] }
  0x30   : > { %5331 = vmatprep.mubr.msk.bf16.mxu0 %vm335_vm0, %v309_v36  ;;  %v269_v33 = vpack.c.bf16 %v252_v31, %v251_v30  ;;  %v254_v35 = vld [vmem:[%s6837_s27 + $0xf8] sm:$0xff]  ;;  %v5658_v37 = vld [vmem:[%s8945_s2 + $0x28] sm:$0xff]   ;;  %v5659_v38 = vld [vmem:[%s8945_s2 + $0x30] sm:$0xff]  }
  0x31   : > { %v270_v36 = vpack.c.bf16 %v254_v35, %v253_v34  ;;  %5391 = vmatprep.subr.bf16.mxu1 %v5658_v37  ;;  %v5660_v39 = vld [vmem:[%s8945_s2 + $0x38] sm:$0xff]   ;;  %v5661_v40 = vld [vmem:[%s8945_s2 + $0x40] sm:$0xff]  }
  0x32   : > { %5392 = vmatpush3.bf16.msra.mxu1 %v5658_v37 }
  0x33   : > { %5344 = vmatmul.mubr.msk.bf16.gmra.mrb[8].mxu1 %vm335_vm0, %v316_v51  ;;  %5393 = vmatprep.subr.bf16.mxu1 %v5659_v38  ;;  %v781_v51 = vsub.s32 0, %v6930_v48 }
  0x34   : > { %5347 = vmatprep.mubr.msk.bf16.mxu1 %vm335_vm0, %v317_v52  ;;  %v6940_v52 = vld [vmem:[%s8946_s3] sm:$0xff] }
  0x35   : > { %v6947_v55 = vrot.slane %v6940_v52, %v781_v51 }
  0x36   : > { %5394 = vmatpush3.bf16.msra.mxu1 %v5659_v38 }
  0x37   : > { %5332 = vmatmul.mubr.msk.bf16.gmra.mrb[12].mxu0 %vm335_vm0, %v310_v49  ;;  %5395 = vmatprep.subr.bf16.mxu1 %v5660_v39 }
  0x38   : > { %5359 = vmatprep.mubr.msk.bf16.mxu0 %vm569_vm1, %v255_v50 }
  0x3a   : > { %5396 = vmatpush3.bf16.msra.mxu1 %v5660_v39 }
  0x3b   : > { %5348 = vmatmul.mubr.msk.bf16.gmra.mrb[12].mxu1 %vm335_vm0, %v318_v61  ;;  %5397 = vmatprep.subr.bf16.mxu1 %v5661_v40 }
  0x3e   : > { %5398 = vmatpush3.bf16.msra.mxu1 %v5661_v40 }
  0x3f   : > { %5360 = vmatmul.mubr.msk.bf16.vlgmr.msra.gmra.mrb[0].mxu0 %vm569_vm1, %v256_v57 }
  0x40   : > { %5363 = vmatprep.mubr.msk.bf16.mxu0 %vm569_vm1, %v257_v60 }
  0x47   : > { %5364 = vmatmul.mubr.msk.bf16.gmra.mrb[4].mxu0 %vm569_vm1, %v258_v2 }
  0x48   : > { %5367 = vmatprep.mubr.msk.bf16.mxu0 %vm569_vm1, %v259_v3 }
  0x4f   : > { %5368 = vmatmul.mubr.msk.bf16.gmra.mrb[8].mxu0 %vm569_vm1, %v260_v8 }
  0x50   : > { %5371 = vmatprep.mubr.msk.bf16.mxu0 %vm569_vm1, %v261_v9 }
  0x57   : > { %5372 = vmatmul.mubr.msk.bf16.gmra.mrb[12].mxu0 %vm569_vm1, %v262_v14 }
  0x58   : > { %5375 = vmatprep.mubr.msk.bf16.mxu0 %vm569_vm1, %v263_v15 }
  0x5f   : > { %5376 = vmatmul.mubr.msk.bf16.gmra.mrb[16].mxu0 %vm569_vm1, %v264_v20 }
  0x60   : > { %5379 = vmatprep.mubr.msk.bf16.mxu0 %vm569_vm1, %v265_v21 }
  0x67   : > { %5380 = vmatmul.mubr.msk.bf16.gmra.mrb[20].mxu0 %vm569_vm1, %v266_v26 }
  0x68   : > { %5383 = vmatprep.mubr.msk.bf16.mxu0 %vm569_vm1, %v267_v27 }
  0x6f   : > { %5384 = vmatmul.mubr.msk.bf16.gmra.mrb[24].mxu0 %vm569_vm1, %v268_v32 }
  0x70   : > { %5387 = vmatprep.mubr.msk.bf16.mxu0 %vm569_vm1, %v269_v33 }
  0x77   : > { %5388 = vmatmul.mubr.msk.bf16.gmra.mrb[28].mxu0 %vm569_vm1, %v270_v36 }
  0xf6   : > { %v6917_v41 = vpop.f32.mrb[0].mxu1 }
  0xf7   : > { %v6919_v42 = vpop.f32.mrb[1].mxu1 }
  0xf8   : > { %v6921_v43 = vpop.f32.mrb[2].mxu1 }
  0xf9   : > { %v6923_v44 = vpop.f32.mrb[3].mxu1 }
  0xfe   : > { %v6925_v46 = vpop.f32.mrb[4].mxu1 }
  0xff   : > { %v6927_v47 = vpop.f32.mrb[5].mxu1 }
 0x100   : > { %v6932_v49 = vpop.f32.mrb[6].mxu1 }
 0x101   : > { %v6934_v50 = vpop.f32.mrb[7].mxu1 }
 0x106   : > { %v6942_v53 = vpop.f32.mrb[8].mxu1 }
 0x107   : > { %v6944_v54 = vpop.f32.mrb[9].mxu1 }
 0x108   : > { %v6949_v56 = vpop.f32.mrb[10].mxu1 }
 0x109   : > { %v6951_v57 = vpop.f32.mrb[11].mxu1 }
 0x10e   : > { %v6963_v2 = vpop.f32.mrb[12].mxu1 }
 0x10f   : > { %v6969_v5 = vpop.f32.mrb[13].mxu1 }
 0x110   : > { %v6972_v7 = vpop.f32.mrb[14].mxu1 }
 0x111   : > { %v6975_v9 = vpop.f32.mrb[15].mxu1 }
 0x112   : > { %v5361_v58 = vpop.f32.mrb[0].mxu0 }
 0x113   : > { %v6954_v59 = vadd.f32 %v5361_v58, %v6947_v55  ;;  %v652_v60 = vpop.f32.mrb[1].mxu0 }
 0x114   : > { %v6957_v61 = vadd.f32 %v6947_v55, %v652_v60  ;;  %v5362_v62 = vpop.f32.mrb[2].mxu0 }
 0x115   : > { %v4900_v63 = vmul.f32 -1.442695, %v6954_v59  ;;  %v6961_v0 = vadd.f32 %v5362_v62, %v6947_v55  ;;  %v655_v1 = vpop.f32.mrb[3].mxu0  ;;  %v7010_v62 = vand.u32 127, %v779_v45 }
 0x116   : > { %v4898_v3 = vmul.f32 -1.442695, %v6957_v61  ;;  %v6967_v4 = vadd.f32 %v6947_v55, %v655_v1 }
 0x117   : > { %5670 = vpow2.f32 %v4900_v63  ;;  %v4901_v6 = vmul.f32 -1.442695, %v6961_v0  ;;  %vm817_vm2 = vcmp.lt.s32.totalorder %v7010_v62, 32 }
 0x118   : > { %5672 = vpow2.f32 %v4898_v3  ;;  %v4899_v8 = vmul.f32 -1.442695, %v6967_v4 }
 0x119   : > { %5674 = vpow2.f32 %v4901_v6 }
 0x11a   : > { %5676 = vpow2.f32 %v4899_v8  ;;  %v5365_v10 = vpop.f32.mrb[4].mxu0 }
 0x11b   : > { %v6978_v11 = vadd.f32 %v5365_v10, %v6947_v55  ;;  %v668_v12 = vpop.f32.mrb[5].mxu0 }
 0x11c   : > { %v6981_v13 = vadd.f32 %v6947_v55, %v668_v12  ;;  %v5366_v14 = vpop.f32.mrb[6].mxu0 }
 0x11d   : > { %v4904_v15 = vmul.f32 -1.442695, %v6978_v11  ;;  %v6985_v16 = vadd.f32 %v5366_v14, %v6947_v55  ;;  %v671_v17 = vpop.f32.mrb[7].mxu0 }
 0x11e   : > { %v4902_v18 = vmul.f32 -1.442695, %v6981_v13  ;;  %v6989_v19 = vadd.f32 %v6947_v55, %v671_v17 }
 0x11f   : > { %5678 = vpow2.f32 %v4904_v15  ;;  %v4905_v20 = vmul.f32 -1.442695, %v6985_v16 }
 0x120   : > { %5680 = vpow2.f32 %v4902_v18  ;;  %v4903_v21 = vmul.f32 -1.442695, %v6989_v19 }
 0x121   : > { %v5671_v22 = vpop.eup %5670  ;;  %5682 = vpow2.f32 %v4905_v20 }
 0x122   : > { %v5673_v23 = vpop.eup %5672  ;;  %v948_v24 = vadd.f32 1.0, %v5671_v22  ;;  %5684 = vpow2.f32 %v4903_v21  ;;  %v5369_v25 = vpop.f32.mrb[8].mxu0 }
 0x123   : > { %v5675_v26 = vpop.eup %5674  ;;  %v946_v27 = vadd.f32 1.0, %v5673_v23  ;;  %v6994_v28 = vadd.f32 %v5369_v25, %v6947_v55  ;;  %v684_v29 = vpop.f32.mrb[9].mxu0  ;;  %v820_v25 = vmax.f32 %v6954_v59, 0.0 }
 0x124   : > { %v5677_v30 = vpop.eup %5676  ;;  %5686 = vrcp.f32 %v948_v24  ;;  %v949_v31 = vadd.f32 1.0, %v5675_v26  ;;  %v6997_v32 = vadd.f32 %v6947_v55, %v684_v29  ;;  %v5370_v33 = vpop.f32.mrb[10].mxu0  ;;  %v821_v26 = vmax.f32 %v6961_v0, 0.0 }
 0x125   : > { %5688 = vrcp.f32 %v946_v27  ;;  %v947_v34 = vadd.f32 1.0, %v5677_v30  ;;  %v4908_v35 = vmul.f32 -1.442695, %v6994_v28  ;;  %v687_v36 = vpop.f32.mrb[11].mxu0  ;;  %v7002_v38 = vadd.f32 %v5370_v33, %v6947_v55 }
 0x126   : > { %5690 = vrcp.f32 %v949_v31  ;;  %v4906_v37 = vmul.f32 -1.442695, %v6997_v32  ;;  %v7005_v39 = vadd.f32 %v6947_v55, %v687_v36  ;;  %v818_v30 = vmax.f32 %v6957_v61, 0.0 }
 0x127   : > { %5692 = vrcp.f32 %v947_v34  ;;  %v4909_v40 = vmul.f32 -1.442695, %v7002_v38  ;;  %v819_v31 = vmax.f32 %v6967_v4, 0.0 }
 0x128   : > { %5694 = vpow2.f32 %v4908_v35  ;;  %v4907_v58 = vmul.f32 -1.442695, %v7005_v39 }
 0x129   : > { %v5679_v51 = vpop.eup %5678  ;;  %5696 = vpow2.f32 %v4906_v37 }
 0x12a   : > { %v5681_v60 = vpop.eup %5680  ;;  %v952_v63 = vadd.f32 1.0, %v5679_v51  ;;  %5698 = vpow2.f32 %v4909_v40  ;;  %v5373_v1 = vpop.f32.mrb[12].mxu0 }
 0x12b   : > { %v5683_v3 = vpop.eup %5682  ;;  %v950_v6 = vadd.f32 1.0, %v5681_v60  ;;  %5700 = vpow2.f32 %v4907_v58  ;;  %v7013_v8 = vadd.f32 %v5373_v1, %v6947_v55  ;;  %v700_v10 = vpop.f32.mrb[13].mxu0 }
 0x12c   : > { %v5685_v12 = vpop.eup %5684  ;;  %5702 = vrcp.f32 %v952_v63  ;;  %v953_v14 = vadd.f32 1.0, %v5683_v3  ;;  %v7016_v15 = vadd.f32 %v6947_v55, %v700_v10  ;;  %v5374_v17 = vpop.f32.mrb[14].mxu0 }
 0x12d   : > { %5704 = vrcp.f32 %v950_v6  ;;  %v951_v45 = vadd.f32 1.0, %v5685_v12  ;;  %v4912_v18 = vmul.f32 -1.442695, %v7013_v8  ;;  %v703_v20 = vpop.f32.mrb[15].mxu0  ;;  %v7022_v23 = vadd.f32 %v5374_v17, %v6947_v55 }
 0x12e   : > { %v5687_v21 = vpop.eup %5686  ;;  %5706 = vrcp.f32 %v953_v14  ;;  %v4910_v22 = vmul.f32 -1.442695, %v7016_v15  ;;  %v7027_v27 = vadd.f32 %v6947_v55, %v703_v20 }
 0x12f   : > { %v5689_v24 = vpop.eup %5688  ;;  %5708 = vrcp.f32 %v951_v45  ;;  %v4913_v33 = vmul.f32 -1.442695, %v7022_v23  ;;  %v7039_v36 = vsel %vm817_vm2, %v820_v25, %v5687_v21  ;;  %v824_v25 = vmax.f32 %v6978_v11, 0.0 }
 0x130   : > { %v5691_v29 = vpop.eup %5690  ;;  %5710 = vpow2.f32 %v4912_v18  ;;  %v4911_v59 = vmul.f32 -1.442695, %v7027_v27  ;;  %v7043_v61 = vsel %vm817_vm2, %v818_v30, %v5689_v24  ;;  %v822_v30 = vmax.f32 %v6981_v13, 0.0 }
 0x131   : > { %v5693_v34 = vpop.eup %5692  ;;  %v7034_v35 = vsel %vm817_vm2, %v821_v26, %v5691_v29  ;;  %5712 = vpow2.f32 %v4910_v22  ;;  %v825_v26 = vmax.f32 %v6985_v16, 0.0 }
 0x132   : > { %v5695_v0 = vpop.eup %5694  ;;  %v7047_v4 = vsel %vm817_vm2, %v819_v31, %v5693_v34  ;;  %5714 = vpow2.f32 %v4913_v33  ;;  %v5377_v37 = vpop.f32.mrb[16].mxu0  ;;  %v1075_v3 = vpack.c.bf16 %v7034_v35, %v7039_v36  ;;  %v823_v31 = vmax.f32 %v6989_v19, 0.0 }
 0x133   : > { %v5697_v40 = vpop.eup %5696  ;;  %v956_v51 = vadd.f32 1.0, %v5695_v0  ;;  %5716 = vpow2.f32 %v4911_v59  ;;  %v725_v58 = vadd.f32 %v5377_v37, %v6917_v41  ;;  %v716_v60 = vpop.f32.mrb[17].mxu0  ;;  %v1074_v63 = vpack.c.bf16 %v7047_v4, %v7043_v61 }
 0x134   : > { %v5699_v1 = vpop.eup %5698  ;;  %v954_v6 = vadd.f32 1.0, %v5697_v40  ;;  %v717_v10 = vadd.f32 %v716_v60, %v6919_v42  ;;  %v5378_v12 = vpop.f32.mrb[18].mxu0 }
 0x135   : > { %v5701_v14 = vpop.eup %5700  ;;  %5718 = vrcp.f32 %v956_v51  ;;  %v957_v17 = vadd.f32 1.0, %v5699_v1  ;;  %v7056_v45 = vadd.f32 %v6947_v55, %v725_v58  ;;  %v728_v41 = vadd.f32 %v5378_v12, %v6921_v43  ;;  %v719_v18 = vpop.f32.mrb[19].mxu0  ;;  %5399 = vmatprep.mubr.msk.bf16.mxu1 %vm569_vm1, %v1074_v63 }
 0x136   : > { %v5703_v20 = vpop.eup %5702  ;;  %5720 = vrcp.f32 %v954_v6  ;;  %v955_v21 = vadd.f32 1.0, %v5701_v14  ;;  %v7061_v22 = vadd.f32 %v6947_v55, %v717_v10  ;;  %v720_v42 = vadd.f32 %v719_v18, %v6923_v44  ;;  %5400 = vmatmul.mubr.msk.bf16.vlgmr.msra.gmra.mrb[16].mxu1 %vm569_vm1, %v1075_v3 }
 0x137   : > { %v5705_v24 = vpop.eup %5704  ;;  %5722 = vrcp.f32 %v957_v17  ;;  %v4916_v43 = vmul.f32 -1.442695, %v7056_v45  ;;  %v7076_v11 = vadd.f32 %v6947_v55, %v728_v41  ;;  %v7083_v13 = vsel %vm817_vm2, %v824_v25, %v5703_v20 }
 0x138   : > { %v5707_v29 = vpop.eup %5706  ;;  %5724 = vrcp.f32 %v955_v21  ;;  %v4914_v33 = vmul.f32 -1.442695, %v7061_v22  ;;  %v7079_v16 = vadd.f32 %v6947_v55, %v720_v42  ;;  %9014 = vst [vmem:[#allocation7_spill] sm:$0xff] %v7083_v13  ;;  %v7091_v40 = vsel %vm817_vm2, %v822_v30, %v5705_v24 }
 0x139   : > { %v5709_v34 = vpop.eup %5708  ;;  %v7073_v44 = vsel %vm817_vm2, %v825_v26, %v5707_v29  ;;  %5726 = vpow2.f32 %v4916_v43  ;;  %v4917_v58 = vmul.f32 -1.442695, %v7076_v11  ;;  %v826_v43 = vmax.f32 %v6997_v32, 0.0 }
 0x13a   : > { %9013 = vst [vmem:[#allocation6_spill] sm:$0xff] %v7073_v44  ;;  %v5711_v59 = vpop.eup %5710  ;;  %v7087_v19 = vsel %vm817_vm2, %v823_v31, %v5709_v34  ;;  %5728 = vpow2.f32 %v4914_v33  ;;  %v5381_v0 = vpop.f32.mrb[20].mxu0  ;;  %v1077_v63 = vpack.c.bf16 %v7073_v44, %v7083_v13  ;;  %v4915_v6 = vmul.f32 -1.442695, %v7079_v16 }
 0x13b   : > { %v5713_v37 = vpop.eup %5712  ;;  %v960_v51 = vadd.f32 1.0, %v5711_v59  ;;  %v732_v60 = vpop.f32.mrb[21].mxu0  ;;  %v741_v10 = vadd.f32 %v5381_v0, %v6925_v46  ;;  %v1076_v21 = vpack.c.bf16 %v7087_v19, %v7091_v40  ;;  %v828_v31 = vmax.f32 %v6994_v28, 0.0 }
 0x13c   : > { %v5715_v1 = vpop.eup %5714  ;;  %v958_v3 = vadd.f32 1.0, %v5713_v37  ;;  %v733_v12 = vadd.f32 %v732_v60, %v6927_v47  ;;  %v5382_v14 = vpop.f32.mrb[22].mxu0  ;;  %v827_v33 = vmax.f32 %v7005_v39, 0.0  ;;  %v829_v32 = vmax.f32 %v7002_v38, 0.0 }
 0x13d   : > { %v5717_v17 = vpop.eup %5716  ;;  %5730 = vrcp.f32 %v960_v51  ;;  %v961_v41 = vadd.f32 1.0, %v5715_v1  ;;  %v744_v18 = vadd.f32 %v5382_v14, %v6932_v49  ;;  %v735_v20 = vpop.f32.mrb[23].mxu0  ;;  %v7103_v24 = vadd.f32 %v6947_v55, %v741_v10  ;;  %5403 = vmatprep.mubr.msk.bf16.mxu1 %vm569_vm1, %v1076_v21 }
 0x13e   : > { %5732 = vrcp.f32 %v958_v3  ;;  %v959_v42 = vadd.f32 1.0, %v5717_v17  ;;  %v7106_v25 = vadd.f32 %v6947_v55, %v733_v12  ;;  %v736_v26 = vadd.f32 %v735_v20, %v6934_v50  ;;  %5404 = vmatmul.mubr.msk.bf16.gmra.mrb[20].mxu1 %vm569_vm1, %v1077_v63 }
 0x13f   : > { %v5719_v46 = vpop.eup %5718  ;;  %5734 = vrcp.f32 %v961_v41  ;;  %v7109_v47 = vadd.f32 %v6947_v55, %v744_v18  ;;  %v4920_v29 = vmul.f32 -1.442695, %v7103_v24 }
 0x140   : > { %v5721_v49 = vpop.eup %5720  ;;  %5736 = vrcp.f32 %v959_v42  ;;  %v4918_v34 = vmul.f32 -1.442695, %v7106_v25  ;;  %v7130_v39 = vadd.f32 %v6947_v55, %v736_v26  ;;  %v7142_v10 = vsel %vm817_vm2, %v828_v31, %v5719_v46 }
 0x141   : > { %v5723_v30 = vpop.eup %5722  ;;  %5738 = vpow2.f32 %v4917_v58  ;;  %v7121_v50 = vsel %vm817_vm2, %v826_v43, %v5721_v49  ;;  %v4921_v0 = vmul.f32 -1.442695, %v7109_v47  ;;  %9018 = vst [vmem:[#allocation11_spill] sm:$0xff] %v7142_v10  ;;  %v831_v43 = vmax.f32 %v7027_v27, 0.0 }
 0x142   : > { %v5725_v59 = vpop.eup %5724  ;;  %9015 = vst [vmem:[#allocation8_spill] sm:$0xff] %v7121_v50  ;;  %5740 = vpow2.f32 %v4915_v6  ;;  %v5385_v37 = vpop.f32.mrb[24].mxu0  ;;  %v7135_v38 = vsel %vm817_vm2, %v829_v32, %v5723_v30  ;;  %v830_v31 = vmax.f32 %v7016_v15, 0.0  ;;  %v833_v27 = vmax.f32 %v7022_v23, 0.0 }
 0x143   : > { %v5727_v51 = vpop.eup %5726  ;;  %v7127_v28 = vsel %vm817_vm2, %v827_v33, %v5725_v59  ;;  %5742 = vpow2.f32 %v4920_v29  ;;  %v757_v58 = vadd.f32 %v5385_v37, %v6942_v53  ;;  %v748_v60 = vpop.f32.mrb[25].mxu0  ;;  %9017 = vst [vmem:[#allocation10_spill] sm:$0xff] %v7135_v38  ;;  %v4919_v53 = vmul.f32 -1.442695, %v7130_v39 }
 0x144   : > { %9016 = vst [vmem:[#allocation9_spill] sm:$0xff] %v7127_v28  ;;  %v5729_v63 = vpop.eup %5728  ;;  %5744 = vpow2.f32 %v4918_v34  ;;  %v749_v1 = vadd.f32 %v748_v60, %v6944_v54  ;;  %v5386_v3 = vpop.f32.mrb[26].mxu0  ;;  %v1078_v6 = vpack.c.bf16 %v7127_v28, %v7121_v50  ;;  %v964_v12 = vadd.f32 1.0, %v5727_v51 }
 0x145   : > { %5746 = vpow2.f32 %v4921_v0  ;;  %v751_v14 = vpop.f32.mrb[27].mxu0  ;;  %v962_v17 = vadd.f32 1.0, %v5729_v63  ;;  %v7146_v41 = vadd.f32 %v6947_v55, %v757_v58  ;;  %v760_v54 = vadd.f32 %v5386_v3, %v6949_v56 }
 0x146   : > { %v7149_v18 = vadd.f32 %v6947_v55, %v749_v1  ;;  %5407 = vmatprep.mubr.msk.bf16.mxu1 %vm569_vm1, %v1078_v6  ;;  %v752_v21 = vadd.f32 %v751_v14, %v6951_v57  ;;  %v1079_v42 = vpack.c.bf16 %v7135_v38, %v7142_v10  ;;  %5748 = vpow2.f32 %v4919_v53 }
 0x147   : > { %v5731_v20 = vpop.eup %5730  ;;  %v4924_v26 = vmul.f32 -1.442695, %v7146_v41  ;;  %5750 = vrcp.f32 %v964_v12  ;;  %v7160_v56 = vadd.f32 %v6947_v55, %v760_v54  ;;  %v832_v57 = vmax.f32 %v7013_v8, 0.0 }
 0x148   : > { %v5733_v46 = vpop.eup %5732  ;;  %v4922_v29 = vmul.f32 -1.442695, %v7149_v18  ;;  %5408 = vmatmul.mubr.msk.bf16.gmra.mrb[24].mxu1 %vm569_vm1, %v1079_v42  ;;  %5752 = vrcp.f32 %v962_v17  ;;  %v7166_v33 = vadd.f32 %v6947_v55, %v752_v21 }
 0x149   : > { %v5735_v49 = vpop.eup %5734  ;;  %5754 = vpow2.f32 %v4924_v26  ;;  %v4925_v0 = vmul.f32 -1.442695, %v7160_v56 }
 0x14a   : > { %v5737_v30 = vpop.eup %5736  ;;  %v5389_v34 = vpop.f32.mrb[28].mxu0  ;;  %5756 = vpow2.f32 %v4922_v29  ;;  %v4923_v15 = vmul.f32 -1.442695, %v7166_v33 }
 0x14b   : > { %v5739_v59 = vpop.eup %5738  ;;  %v7171_v32 = vsel %vm817_vm2, %v831_v43, %v5737_v30  ;;  %v764_v37 = vpop.f32.mrb[29].mxu0  ;;  %v773_v58 = vadd.f32 %v5389_v34, %v6963_v2  ;;  %5758 = vpow2.f32 %v4925_v0  ;;  %v7199_v43 = vsel %vm817_vm2, %v830_v31, %v5733_v46 }
 0x14c   : > { %9019 = vst [vmem:[#allocation12_spill] sm:$0xff] %v7171_v32  ;;  %v5741_v51 = vpop.eup %5740  ;;  %v965_v8 = vadd.f32 1.0, %v5739_v59  ;;  %v5390_v60 = vpop.f32.mrb[30].mxu0  ;;  %v765_v23 = vadd.f32 %v764_v37, %v6969_v5  ;;  %v7190_v5 = vsel %vm817_vm2, %v833_v27, %v5735_v49  ;;  %9022 = vst [vmem:[#allocation15_spill] sm:$0xff] %v7199_v43  ;;  %v1080_v34 = vpack.c.bf16 %v7171_v32, %v7199_v43 }
 0x14d   : > { %v5743_v63 = vpop.eup %5742  ;;  %v963_v1 = vadd.f32 1.0, %v5741_v51  ;;  %v776_v3 = vadd.f32 %v5390_v60, %v6972_v7  ;;  %v767_v6 = vpop.f32.mrb[31].mxu0  ;;  %v7179_v14 = vadd.f32 %v6947_v55, %v773_v58  ;;  %9020 = vst [vmem:[#allocation13_spill] sm:$0xff] %v7190_v5  ;;  %v837_v37 = vmax.f32 %v7076_v11, 0.0 }
 0x14e   : > { %v5745_v12 = vpop.eup %5744  ;;  %5760 = vrcp.f32 %v965_v8  ;;  %v968_v53 = vadd.f32 1.0, %v5743_v63  ;;  %v768_v17 = vadd.f32 %v767_v6, %v6975_v9  ;;  %v7183_v21 = vadd.f32 %v6947_v55, %v765_v23  ;;  %5411 = vmatprep.mubr.msk.bf16.mxu1 %vm569_vm1, %v1080_v34 }
 0x14f   : > { %v5747_v54 = vpop.eup %5746  ;;  %5762 = vrcp.f32 %v963_v1  ;;  %v966_v2 = vadd.f32 1.0, %v5745_v12  ;;  %v7186_v42 = vadd.f32 %v6947_v55, %v776_v3  ;;  %v4928_v26 = vmul.f32 -1.442695, %v7179_v14 }
 0x150   : > { %5764 = vrcp.f32 %v968_v53  ;;  %v969_v7 = vadd.f32 1.0, %v5747_v54  ;;  %v7195_v9 = vsel %vm817_vm2, %v832_v57, %v5731_v20  ;;  %v5749_v29 = vpop.eup %5748  ;;  %v4926_v30 = vmul.f32 -1.442695, %v7183_v21 }
 0x151   : > { %9021 = vst [vmem:[#allocation14_spill] sm:$0xff] %v7195_v9  ;;  %5766 = vrcp.f32 %v966_v2  ;;  %v7203_v49 = vadd.f32 %v6947_v55, %v768_v17  ;;  %v5751_v59 = vpop.eup %5750  ;;  %v967_v27 = vadd.f32 1.0, %v5749_v29  ;;  %v1081_v20 = vpack.c.bf16 %v7190_v5, %v7195_v9 }
 0x152   : > { %5768 = vrcp.f32 %v969_v7  ;;  %v5753_v57 = vpop.eup %5752  ;;  %v4929_v31 = vmul.f32 -1.442695, %v7186_v42  ;;  %v835_v58 = vmax.f32 %v7079_v16, 0.0  ;;  %v836_v63 = vmax.f32 %v7056_v45, 0.0 }
 0x153   : > { %5770 = vpow2.f32 %v4923_v15  ;;  %v5755_v46 = vpop.eup %5754  ;;  %5412 = vmatmul.mubr.msk.bf16.gmra.mrb[28].mxu1 %vm569_vm1, %v1081_v20  ;;  %v4927_v51 = vmul.f32 -1.442695, %v7203_v49  ;;  %v834_v15 = vmax.f32 %v7061_v22, 0.0  ;;  %v839_v29 = vmax.f32 %v7130_v39, 0.0 }
 0x154   : > { %5772 = vpow2.f32 %v4928_v26  ;;  %v5757_v55 = vpop.eup %5756  ;;  %v972_v12 = vadd.f32 1.0, %v5755_v46  ;;  %v7233_v53 = vsel %vm817_vm2, %v836_v63, %v5751_v59  ;;  %v838_v26 = vmax.f32 %v7106_v25, 0.0 }
 0x155   : > { %5774 = vrcp.f32 %v967_v27  ;;  %v5759_v0 = vpop.eup %5758  ;;  %v970_v6 = vadd.f32 1.0, %v5757_v55  ;;  %v7223_v11 = vsel %vm817_vm2, %v834_v15, %v5753_v57  ;;  %9026 = vst [vmem:[#allocation19_spill] sm:$0xff] %v7233_v53  ;;  %v841_v59 = vmax.f32 %v7109_v47, 0.0 }
 0x156   : > { %5776 = vpow2.f32 %v4926_v30  ;;  %v973_v1 = vadd.f32 1.0, %v5759_v0  ;;  %9024 = vst [vmem:[#allocation17_spill] sm:$0xff] %v7223_v11  ;;  %v840_v25 = vmax.f32 %v7103_v24, 0.0 }
 0x157   : > { %5778 = vpow2.f32 %v4929_v31 }
 0x158   : > { %v5761_v8 = vpop.eup %5760  ;;  %5780 = vpow2.f32 %v4927_v51 }
 0x159   : > { %v5763_v60 = vpop.eup %5762  ;;  %v7219_v23 = vsel %vm817_vm2, %v837_v37, %v5761_v8  ;;  %5782 = vrcp.f32 %v973_v1  ;;  %v842_v1 = vmax.f32 %v7149_v18, 0.0 }
 0x15a   : > { %9023 = vst [vmem:[#allocation16_spill] sm:$0xff] %v7219_v23  ;;  %v5765_v3 = vpop.eup %5764  ;;  %v7227_v22 = vsel %vm817_vm2, %v835_v58, %v5763_v60  ;;  %v1083_v54 = vpack.c.bf16 %v7219_v23, %v7233_v53  ;;  %5784 = vrcp.f32 %v970_v6  ;;  %v845_v60 = vmax.f32 %v7160_v56, 0.0 }
 0x15b   : > { %9025 = vst [vmem:[#allocation18_spill] sm:$0xff] %v7227_v22  ;;  %v5767_v16 = vpop.eup %5766  ;;  %v1082_v45 = vpack.c.bf16 %v7227_v22, %v7223_v11  ;;  %5786 = vrcp.f32 %v972_v12  ;;  %v7260_v0 = vsel %vm817_vm2, %v840_v25, %v5765_v3  ;;  %v843_v3 = vmax.f32 %v7166_v33, 0.0 }
 0x15c   : > { %v5769_v17 = vpop.eup %5768  ;;  %v7244_v20 = vsel %vm817_vm2, %v838_v26, %v5767_v16  ;;  %9030 = vst [vmem:[#allocation23_spill] sm:$0xff] %v7260_v0  ;;  %v844_v16 = vmax.f32 %v7146_v41, 0.0  ;;  %v846_v26 = vmax.f32 %v7183_v21, 0.0 }
 0x15d   : > { %v5771_v2 = vpop.eup %5770  ;;  %5415 = vmatprep.mubr.msk.bf16.mxu1 %vm569_vm1, %v1082_v45  ;;  %9027 = vst [vmem:[#allocation20_spill] sm:$0xff] %v7244_v20  ;;  %v7255_v47 = vsel %vm817_vm2, %v841_v59, %v5769_v17 }
 0x15e   : > { %v5773_v7 = vpop.eup %5772  ;;  %v971_v30 = vadd.f32 1.0, %v5771_v2  ;;  %5416 = vmatmul.mubr.msk.bf16.gmra.mrb[32].mxu1 %vm569_vm1, %v1083_v54  ;;  %9029 = vst [vmem:[#allocation22_spill] sm:$0xff] %v7255_v47  ;;  %v1085_v24 = vpack.c.bf16 %v7255_v47, %v7260_v0  ;;  %v849_v2 = vmax.f32 %v7186_v42, 0.0 }
 0x15f   : > { %v5775_v34 = vpop.eup %5774  ;;  %v976_v55 = vadd.f32 1.0, %v5773_v7 }
 0x160   : > { %v5777_v27 = vpop.eup %5776  ;;  %5788 = vrcp.f32 %v971_v30  ;;  %v7248_v57 = vsel %vm817_vm2, %v839_v29, %v5775_v34  ;;  %v847_v29 = vmax.f32 %v7203_v49, 0.0  ;;  %v848_v34 = vmax.f32 %v7179_v14, 0.0 }
 0x161   : > { %9028 = vst [vmem:[#allocation21_spill] sm:$0xff] %v7248_v57  ;;  %v974_v39 = vadd.f32 1.0, %v5777_v27  ;;  %v1084_v46 = vpack.c.bf16 %v7248_v57, %v7244_v20  ;;  %v5779_v31 = vpop.eup %5778  ;;  %v1100_v49 = vsub.s32 1, %v6930_v48 }
 0x162   : > { %v977_v37 = vadd.f32 1.0, %v5779_v31  ;;  %v5781_v51 = vpop.eup %5780 }
 0x163   : > { %5419 = vmatprep.mubr.msk.bf16.mxu1 %vm569_vm1, %v1084_v46  ;;  %5790 = vrcp.f32 %v974_v39  ;;  %v975_v8 = vadd.f32 1.0, %v5781_v51  ;;  %v5783_v15 = vpop.eup %5782  ;;  %v7319_v39 = vrot.slane %v6940_v52, %v1100_v49 }
 0x164   : > { %5792 = vrcp.f32 %v977_v37  ;;  %v5785_v58 = vpop.eup %5784  ;;  %v7271_v12 = vsel %vm817_vm2, %v845_v60, %v5783_v15 }
 0x165   : > { %5794 = vrcp.f32 %v976_v55  ;;  %v5787_v63 = vpop.eup %5786  ;;  %9031 = vst [vmem:[#allocation24_spill] sm:$0xff] %v7271_v12  ;;  %v7275_v45 = vsel %vm817_vm2, %v842_v1, %v5785_v58 }
 0x166   : > { %5420 = vmatmul.mubr.msk.bf16.gmra.mrb[36].mxu1 %vm569_vm1, %v1085_v24  ;;  %5796 = vrcp.f32 %v975_v8  ;;  %9032 = vst [vmem:[#allocation25_spill] sm:$0xff] %v7275_v45  ;;  %v7285_v33 = vsel %vm817_vm2, %v844_v16, %v5787_v63 }
 0x167   : > { %9034 = vst [vmem:[#allocation27_spill] sm:$0xff] %v7285_v33  ;;  %v1087_v41 = vpack.c.bf16 %v7271_v12, %v7285_v33 }
 0x16a   : > { %v5789_v6 = vpop.eup %5788 }
 0x16b   : > { %v7279_v56 = vsel %vm817_vm2, %v843_v3, %v5789_v6 }
 0x16c   : > { %9033 = vst [vmem:[#allocation26_spill] sm:$0xff] %v7279_v56  ;;  %v1086_v18 = vpack.c.bf16 %v7279_v56, %v7275_v45 }
 0x16d   : > { %v5791_v17 = vpop.eup %5790 }
 0x16e   : > { %5423 = vmatprep.mubr.msk.bf16.mxu1 %vm569_vm1, %v1086_v18  ;;  %v5793_v54 = vpop.eup %5792  ;;  %v7301_v27 = vsel %vm817_vm2, %v846_v26, %v5791_v17 }
 0x16f   : > { %5424 = vmatmul.mubr.msk.bf16.gmra.mrb[40].mxu1 %vm569_vm1, %v1087_v41  ;;  %v5795_v7 = vpop.eup %5794  ;;  %v7297_v59 = vsel %vm817_vm2, %v849_v2, %v5793_v54  ;;  %9036 = vst [vmem:[#allocation29_spill] sm:$0xff] %v7301_v27 }
 0x170   : > { %v5797_v30 = vpop.eup %5796  ;;  %9035 = vst [vmem:[#allocation28_spill] sm:$0xff] %v7297_v59  ;;  %v7311_v42 = vsel %vm817_vm2, %v848_v34, %v5795_v7 }
 0x171   : > { %v7305_v25 = vsel %vm817_vm2, %v847_v29, %v5797_v30  ;;  %9038 = vst [vmem:[#allocation31_spill] sm:$0xff] %v7311_v42  ;;  %v1089_v14 = vpack.c.bf16 %v7297_v59, %v7311_v42 }
 0x172   : > { %9037 = vst [vmem:[#allocation30_spill] sm:$0xff] %v7305_v25  ;;  %v1088_v21 = vpack.c.bf16 %v7305_v25, %v7301_v27 }
 0x174   : > { %5427 = vmatprep.mubr.msk.bf16.mxu1 %vm569_vm1, %v1088_v21 }
 0x177   : > { %5428 = vmatmul.mubr.msk.bf16.gmra.mrb[44].mxu1 %vm569_vm1, %v1089_v14 }
 0x209   : > { %v5401_v46 = vpop.f32.mrb[16].mxu1 }
 0x20a   : > { %v7322_v31 = vadd.f32 %v5401_v46, %v7319_v39  ;;  %v1208_v55 = vpop.f32.mrb[17].mxu1 }
 0x20b   : > { %v7325_v62 = vadd.f32 %v1208_v55, %v7319_v39  ;;  %v5402_v37 = vpop.f32.mrb[18].mxu1 }
 0x20c   : > { %1563 = vrot.lane.b32.xlu1 %v7322_v31, %s6697_s12  ;;  %v1211_v24 = vpop.f32.mrb[19].mxu1  ;;  %v7332_v52 = vadd.f32 %v5402_v37, %v7319_v39  ;;  %v4952_v12 = vmul.f32 -1.442695, %v7322_v31 }
 0x20d   : > { %1559 = vrot.lane.b32.xlu0 %v7325_v62, %s6697_s12  ;;  %v7335_v51 = vadd.f32 %v1211_v24, %v7319_v39 }
 0x20f   : > { %v4951_v33 = vmul.f32 -1.442695, %v7335_v51 }
 0x210   : > { %1565 = vrot.lane.b32.xlu1 %v7332_v52, %s6697_s12 }
 0x211   : > { %1561 = vrot.lane.b32.xlu0 %v7335_v51, %s6697_s12  ;;  %v5405_v8 = vpop.f32.mrb[20].mxu1 }
 0x212   : > { %v7342_v15 = vadd.f32 %v5405_v8, %v7319_v39  ;;  %v1224_v58 = vpop.f32.mrb[21].mxu1 }
 0x213   : > { %v5406_v60 = vpop.f32.mrb[22].mxu1  ;;  %v7350_v3 = vadd.f32 %v1224_v58, %v7319_v39 }
 0x214   : > { %v7345_v63 = vadd.f32 %v5406_v60, %v7319_v39  ;;  %v1227_v1 = vpop.f32.mrb[23].mxu1  ;;  %v4956_v47 = vmul.f32 -1.442695, %v7342_v15 }
 0x215   : > { %1571 = vrot.lane.b32.xlu0 %v7342_v15, %s6697_s12  ;;  %v7355_v6 = vadd.f32 %v1227_v1, %v7319_v39 }
 0x216   : > { %1573 = vrot.lane.b32.xlu1 %v7345_v63, %s6697_s12  ;;  %v4957_v20 = vmul.f32 -1.442695, %v7345_v63 }
 0x217   : > { %v4955_v56 = vmul.f32 -1.442695, %v7355_v6 }
 0x219   : > { %1567 = vrot.lane.b32.xlu0 %v7350_v3, %s6697_s12 }
 0x21a   : > { %1569 = vrot.lane.b32.xlu1 %v7355_v6, %s6697_s12 }
 0x21b   : > { %v5409_v16 = vpop.f32.mrb[24].mxu1 }
 0x21c   : > { %v7362_v18 = vadd.f32 %v5409_v16, %v7319_v39  ;;  %v1240_v41 = vpop.f32.mrb[25].mxu1 }
 0x21d   : > { %v5410_v17 = vpop.f32.mrb[26].mxu1  ;;  %v7370_v7 = vadd.f32 %v1240_v41, %v7319_v39 }
 0x21e   : > { %v7365_v54 = vadd.f32 %v5410_v17, %v7319_v39  ;;  %v1243_v2 = vpop.f32.mrb[27].mxu1  ;;  %1579 = vrot.lane.b32.xlu0 %v7362_v18, %s6697_s12 }
 0x21f   : > { %v7375_v26 = vadd.f32 %v1243_v2, %v7319_v39 }
 0x220   : > { %1581 = vrot.lane.b32.xlu1 %v7365_v54, %s6697_s12  ;;  %v4961_v22 = vmul.f32 -1.442695, %v7365_v54 }
 0x222   : > { %1575 = vrot.lane.b32.xlu0 %v7370_v7, %s6697_s12 }
 0x224   : > { %1577 = vrot.lane.b32.xlu1 %v7375_v26, %s6697_s12 }
 0x226   : > { %v5413_v29 = vpop.f32.mrb[28].mxu1 }
 0x227   : > { %v7382_v30 = vadd.f32 %v5413_v29, %v7319_v39  ;;  %v1256_v34 = vpop.f32.mrb[29].mxu1 }
 0x228   : > { %v5414_v21 = vpop.f32.mrb[30].mxu1  ;;  %v7390_v46 = vadd.f32 %v1256_v34, %v7319_v39 }
 0x229   : > { %v7385_v14 = vadd.f32 %v5414_v21, %v7319_v39  ;;  %v1259_v49 = vpop.f32.mrb[31].mxu1  ;;  %1587 = vrot.lane.b32.xlu0 %v7382_v30, %s6697_s12 }
 0x22a   : > { %v7395_v55 = vadd.f32 %v1259_v49, %v7319_v39 }
 0x22b   : > { %1589 = vrot.lane.b32.xlu1 %v7385_v14, %s6697_s12 }
 0x22d   : > { %1583 = vrot.lane.b32.xlu0 %v7390_v46, %s6697_s12 }
 0x22f   : > { %1585 = vrot.lane.b32.xlu1 %v7395_v55, %s6697_s12 }
 0x231   : > { %v5417_v37 = vpop.f32.mrb[32].mxu1 }
 0x232   : > { %v7402_v24 = vadd.f32 %v5417_v37, %v7319_v39  ;;  %v1272_v8 = vpop.f32.mrb[33].mxu1 }
 0x233   : > { %v5418_v58 = vpop.f32.mrb[34].mxu1  ;;  %v7410_v16 = vadd.f32 %v1272_v8, %v7319_v39 }
 0x234   : > { %v7405_v60 = vadd.f32 %v5418_v58, %v7319_v39  ;;  %1595 = vrot.lane.b32.xlu0 %v7402_v24, %s6697_s12  ;;  %v1275_v1 = vpop.f32.mrb[35].mxu1 }
 0x235   : > { %v7415_v41 = vadd.f32 %v1275_v1, %v7319_v39 }
 0x236   : > { %1597 = vrot.lane.b32.xlu1 %v7405_v60, %s6697_s12 }
 0x238   : > { %1591 = vrot.lane.b32.xlu0 %v7410_v16, %s6697_s12 }
 0x239   : > { %v5421_v17 = vpop.f32.mrb[36].mxu1 }
 0x23a   : > { %v7420_v2 = vadd.f32 %v5421_v17, %v7319_v39  ;;  %v1288_v29 = vpop.f32.mrb[37].mxu1  ;;  %1593 = vrot.lane.b32.xlu1 %v7415_v41, %s6697_s12 }
 0x23b   : > { %v5422_v34 = vpop.f32.mrb[38].mxu1  ;;  %v7430_v37 = vadd.f32 %v1288_v29, %v7319_v39 }
 0x23c   : > { %v7425_v21 = vadd.f32 %v5422_v34, %v7319_v39  ;;  %v1291_v49 = vpop.f32.mrb[39].mxu1  ;;  %1603 = vrot.lane.b32.xlu0 %v7420_v2, %s6697_s12 }
 0x23d   : > { %v7435_v8 = vadd.f32 %v1291_v49, %v7319_v39 }
 0x23e   : > { %1605 = vrot.lane.b32.xlu1 %v7425_v21, %s6697_s12 }
 0x23f   : > { %v4971_v44 = vmul.f32 -1.442695, %v7435_v8 }
 0x240   : > { %1599 = vrot.lane.b32.xlu0 %v7430_v37, %s6697_s12 }
 0x242   : > { %v5425_v58 = vpop.f32.mrb[40].mxu1  ;;  %1601 = vrot.lane.b32.xlu1 %v7435_v8, %s6697_s12 }
 0x243   : > { %v7442_v1 = vadd.f32 %v5425_v58, %v7319_v39  ;;  %v1304_v17 = vpop.f32.mrb[41].mxu1 }
 0x244   : > { %v5426_v34 = vpop.f32.mrb[42].mxu1  ;;  %v7450_v49 = vadd.f32 %v1304_v17, %v7319_v39 }
 0x245   : > { %v7445_v29 = vadd.f32 %v5426_v34, %v7319_v39  ;;  %v1307_v48 = vpop.f32.mrb[43].mxu1  ;;  %1611 = vrot.lane.b32.xlu0 %v7442_v1, %s6697_s12 }
 0x246   : > { %v7455_v59 = vadd.f32 %v1307_v48, %v7319_v39 }
 0x247   : > { %1613 = vrot.lane.b32.xlu1 %v7445_v29, %s6697_s12 }
 0x249   : > { %1607 = vrot.lane.b32.xlu0 %v7450_v49, %s6697_s12 }
 0x24a   : > { %v5429_v58 = vpop.f32.mrb[44].mxu1 }
 0x24b   : > { %v7460_v34 = vadd.f32 %v5429_v58, %v7319_v39  ;;  %v1320_v42 = vpop.f32.mrb[45].mxu1  ;;  %1609 = vrot.lane.b32.xlu1 %v7455_v59, %s6697_s12 }
 0x24c   : > { %v5430_v25 = vpop.f32.mrb[46].mxu1  ;;  %v7470_v48 = vadd.f32 %v1320_v42, %v7319_v39  ;;  %v4953_v42 = vmul.f32 -1.442695, %v7332_v52 }
 0x24d   : > { %v7465_v17 = vadd.f32 %v5430_v25, %v7319_v39  ;;  %v1323_v27 = vpop.f32.mrb[47].mxu1  ;;  %1619 = vrot.lane.b32.xlu0 %v7460_v34, %s6697_s12  ;;  %v4950_v25 = vmul.f32 -1.442695, %v7325_v62 }
 0x24e   : > { %v7475_v58 = vadd.f32 %v1323_v27, %v7319_v39  ;;  %v4954_v27 = vmul.f32 -1.442695, %v7350_v3 }
 0x24f   : > { %1621 = vrot.lane.b32.xlu1 %v7465_v17, %s6697_s12  ;;  %5798 = vpow2.f32 %v4950_v25 }
 0x250   : > { %5800 = vpow2.f32 %v4952_v12 }
 0x251   : > { %1615 = vrot.lane.b32.xlu0 %v7470_v48, %s6697_s12  ;;  %5802 = vpow2.f32 %v4951_v33  ;;  %v4958_v33 = vmul.f32 -1.442695, %v7370_v7 }
 0x252   : > { %5804 = vpow2.f32 %v4953_v42  ;;  %v4959_v42 = vmul.f32 -1.442695, %v7375_v26 }
 0x253   : > { %1617 = vrot.lane.b32.xlu1 %v7475_v58, %s6697_s12  ;;  %5806 = vpow2.f32 %v4954_v27  ;;  %s6700_s12 = smov [#allocation2]  }
 0x254   : > { %5808 = vpow2.f32 %v4955_v56 }
 0x255   : > { %5810 = vpow2.f32 %v4956_v47 }
 0x259   : > { %v5799_v39 = vpop.eup %5798 }
 0x25a   : > { %v5801_v45 = vpop.eup %5800  ;;  %v1431_v57 = vadd.f32 1.0, %v5799_v39  ;;  %v4960_v39 = vmul.f32 -1.442695, %v7362_v18 }
 0x25b   : > { %v5803_v0 = vpop.eup %5802  ;;  %v1433_v23 = vadd.f32 1.0, %v5801_v45 }
 0x25c   : > { %v1432_v12 = vadd.f32 1.0, %v5803_v0  ;;  %5812 = vrcp.f32 %v1431_v57  ;;  %v5805_v25 = vpop.eup %5804 }
 0x25d   : > { %5814 = vpow2.f32 %v4957_v20  ;;  %v1434_v53 = vadd.f32 1.0, %v5805_v25  ;;  %v5807_v27 = vpop.eup %5806 }
 0x25e   : > { %5816 = vrcp.f32 %v1433_v23  ;;  %v5809_v45 = vpop.eup %5808  ;;  %v1435_v57 = vadd.f32 1.0, %v5807_v27 }
 0x25f   : > { %5818 = vrcp.f32 %v1432_v12  ;;  %v5811_v47 = vpop.eup %5810  ;;  %v1436_v12 = vadd.f32 1.0, %v5809_v45 }
 0x260   : > { %5820 = vpow2.f32 %v4958_v33  ;;  %v1437_v11 = vadd.f32 1.0, %v5811_v47  ;;  %v4964_v47 = vmul.f32 -1.442695, %v7382_v30 }
 0x261   : > { %5822 = vpow2.f32 %v4959_v42 }
 0x262   : > { %5824 = vrcp.f32 %v1434_v53  ;;  %v4962_v53 = vmul.f32 -1.442695, %v7390_v46 }
 0x263   : > { %5826 = vpow2.f32 %v4960_v39  ;;  %v4963_v39 = vmul.f32 -1.442695, %v7395_v55 }
 0x264   : > { %5828 = vpow2.f32 %v4961_v22 }
 0x265   : > { %5830 = vrcp.f32 %v1435_v57 }
 0x266   : > { %v7493_v0 = vpop.eup %5812  ;;  %5832 = vrcp.f32 %v1436_v12 }
 0x267   : > { %v5815_v56 = vpop.eup %5814  ;;  %5834 = vrcp.f32 %v1437_v11 }
 0x268   : > { %v7496_v25 = vpop.eup %5816  ;;  %v1438_v9 = vadd.f32 1.0, %v5815_v56  ;;  %5836 = vpow2.f32 %v4962_v53  ;;  %v4965_v56 = vmul.f32 -1.442695, %v7385_v14  ;;  %v4966_v53 = vmul.f32 -1.442695, %v7410_v16 }
 0x269   : > { %v7498_v5 = vpop.eup %5818  ;;  %5838 = vpow2.f32 %v4963_v39  ;;  %v4967_v39 = vmul.f32 -1.442695, %v7415_v41 }
 0x26a   : > { %v5821_v42 = vpop.eup %5820  ;;  %5840 = vrcp.f32 %v1438_v9 }
 0x26b   : > { %v5823_v57 = vpop.eup %5822  ;;  %v1439_v32 = vadd.f32 1.0, %v5821_v42  ;;  %5842 = vpow2.f32 %v4964_v47 }
 0x26d   : > { %5844 = vrcp.f32 %v1439_v32  ;;  %v4968_v32 = vmul.f32 -1.442695, %v7402_v24 }
 0x26e   : > { %5846 = vpow2.f32 %v4965_v56 }
 0x27e   : > { %v1564_v20 = vpop.permute.xlu1 %1563 }
 0x27f   : > { %v1560_v23 = vpop.permute.xlu0 %1559  ;;  %v1657_v22 = vmul.f32 %v7496_v25, %v1564_v20 }
 0x280   : > { %v1655_v33 = vmul.f32 %v7493_v0, %v1560_v23 }
 0x282   : > { %1719 = vrot.lane.b32.xlu0 %v1655_v33, %s6698_s13  ;;  %v1566_v23 = vpop.permute.xlu1 %1565  ;;  %v7508_v33 = vpop.eup %5824 }
 0x283   : > { %v1562_v27 = vpop.permute.xlu0 %1561  ;;  %v5827_v12 = vpop.eup %5826  ;;  %v1658_v20 = vmul.f32 %v7508_v33, %v1566_v23 }
 0x284   : > { %v1656_v45 = vmul.f32 %v7498_v5, %v1562_v27  ;;  %v1440_v27 = vadd.f32 1.0, %v5823_v57  ;;  %v5829_v43 = vpop.eup %5828 }
 0x285   : > { %v1442_v9 = vadd.f32 1.0, %v5829_v43 }
 0x286   : > { %1721 = vrot.lane.b32.xlu1 %v1656_v45, %s6698_s13  ;;  %1723 = vrot.lane.b32.xlu0 %v1657_v22, %s6698_s13  ;;  %v1441_v22 = vadd.f32 1.0, %v5827_v12  ;;  %v7514_v45 = vpop.eup %5830  ;;  %5848 = vrcp.f32 %v1440_v27 }
 0x287   : > { %v1572_v11 = vpop.permute.xlu0 %1571  ;;  %v7518_v57 = vpop.eup %5832  ;;  %5850 = vpow2.f32 %v4966_v53 }
 0x288   : > { %v1574_v42 = vpop.permute.xlu1 %1573  ;;  %v7521_v10 = vpop.eup %5834  ;;  %5852 = vrcp.f32 %v1441_v22  ;;  %v4970_v22 = vmul.f32 -1.442695, %v7430_v37 }
 0x289   : > { %9039 = vst [vmem:[#allocation32_spill] sm:$0xff] %v7521_v10  ;;  %v5837_v12 = vpop.eup %5836  ;;  %5854 = vpow2.f32 %v4967_v39 }
 0x28a   : > { %1725 = vrot.lane.b32.xlu1 %v1658_v20, %s6698_s13  ;;  %v4969_v20 = vmul.f32 -1.442695, %v7405_v60  ;;  %v5839_v43 = vpop.eup %5838  ;;  %5856 = vrcp.f32 %v1442_v9 }
 0x28b   : > { %v1568_v38 = vpop.permute.xlu0 %1567  ;;  %v7528_v53 = vpop.eup %5840  ;;  %5858 = vpow2.f32 %v4968_v32  ;;  %v1444_v9 = vadd.f32 1.0, %v5839_v43  ;;  %v4972_v32 = vmul.f32 -1.442695, %v7420_v2 }
 0x28c   : > { %v1659_v23 = vmul.f32 %v7514_v45, %v1568_v38  ;;  %v1570_v47 = vpop.permute.xlu1 %1569  ;;  %v1661_v38 = vmul.f32 %v7521_v10, %v1572_v11  ;;  %9040 = vst [vmem:[#allocation33_spill] sm:$0xff] %v7528_v53  ;;  %v5843_v28 = vpop.eup %5842  ;;  %5860 = vpow2.f32 %v4969_v20 }
 0x28d   : > { %v1660_v56 = vmul.f32 %v7518_v57, %v1570_v47  ;;  %v1443_v47 = vadd.f32 1.0, %v5837_v12  ;;  %v7533_v39 = vpop.eup %5844  ;;  %5862 = vpow2.f32 %v4970_v22 }
 0x28e   : > { %1727 = vrot.lane.b32.xlu0 %v1659_v23, %s6698_s13  ;;  %v1662_v23 = vmul.f32 %v7528_v53, %v1574_v42  ;;  %9041 = vst [vmem:[#allocation34_spill] sm:$0xff] %v7533_v39  ;;  %v5847_v11 = vpop.eup %5846  ;;  %v1445_v42 = vadd.f32 1.0, %v5843_v28 }
 0x28f   : > { %1729 = vrot.lane.b32.xlu1 %v1660_v56, %s6698_s13  ;;  %5864 = vrcp.f32 %v1443_v47  ;;  %v1446_v10 = vadd.f32 1.0, %v5847_v11  ;;  %v4974_v11 = vmul.f32 -1.442695, %v7450_v49 }
 0x290   : > { %v1580_v27 = vpop.permute.xlu0 %1579  ;;  %v7539_v13 = vpop.eup %5848  ;;  %5866 = vrcp.f32 %v1444_v9 }
 0x291   : > { %9042 = vst [vmem:[#allocation35_spill] sm:$0xff] %v7539_v13  ;;  %v5851_v53 = vpop.eup %5850  ;;  %5868 = vpow2.f32 %v4971_v44 }
 0x292   : > { %v1582_v50 = vpop.permute.xlu1 %1581  ;;  %1731 = vrot.lane.b32.xlu0 %v1661_v38, %s6698_s13  ;;  %v7543_v43 = vpop.eup %5852  ;;  %5870 = vpow2.f32 %v4972_v32  ;;  %v1447_v47 = vadd.f32 1.0, %v5851_v53 }
 0x293   : > { %1733 = vrot.lane.b32.xlu1 %v1662_v23, %s6698_s13  ;;  %9043 = vst [vmem:[#allocation36_spill] sm:$0xff] %v7543_v43  ;;  %v4973_v23 = vmul.f32 -1.442695, %v7425_v21  ;;  %v5855_v22 = vpop.eup %5854  ;;  %5872 = vrcp.f32 %v1445_v42 }
 0x294   : > { %v1576_v56 = vpop.permute.xlu0 %1575  ;;  %v7548_v28 = vpop.eup %5856  ;;  %5874 = vrcp.f32 %v1446_v10  ;;  %v4976_v10 = vmul.f32 -1.442695, %v7442_v1 }
 0x295   : > { %v1663_v12 = vmul.f32 %v7533_v39, %v1576_v56  ;;  %v1665_v56 = vmul.f32 %v7543_v43, %v1580_v27  ;;  %9044 = vst [vmem:[#allocation37_spill] sm:$0xff] %v7548_v28  ;;  %v5859_v9 = vpop.eup %5858  ;;  %5876 = vpow2.f32 %v4973_v23  ;;  %v4975_v27 = vmul.f32 -1.442695, %v7455_v59 }
 0x296   : > { %v1578_v38 = vpop.permute.xlu1 %1577  ;;  %v5861_v32 = vpop.eup %5860  ;;  %5878 = vrcp.f32 %v1447_v47  ;;  %v4977_v23 = vmul.f32 -1.442695, %v7445_v29 }
 0x297   : > { %v1664_v20 = vmul.f32 %v7539_v13, %v1578_v38  ;;  %1735 = vrot.lane.b32.xlu0 %v1663_v12, %s6698_s13  ;;  %v1666_v12 = vmul.f32 %v7548_v28, %v1582_v50  ;;  %v1448_v38 = vadd.f32 1.0, %v5855_v22  ;;  %v5863_v53 = vpop.eup %5862  ;;  %5880 = vpow2.f32 %v4974_v11 }
 0x298   : > { %v1450_v50 = vadd.f32 1.0, %v5861_v32  ;;  %v1451_v47 = vadd.f32 1.0, %v5863_v53  ;;  %v4978_v11 = vmul.f32 -1.442695, %v7470_v48  ;;  %v4979_v32 = vmul.f32 -1.442695, %v7475_v58 }
 0x299   : > { %1737 = vrot.lane.b32.xlu1 %v1664_v20, %s6698_s13  ;;  %v1449_v20 = vadd.f32 1.0, %v5859_v9  ;;  %v7556_v43 = vpop.eup %5864  ;;  %5882 = vrcp.f32 %v1448_v38 }
 0x29a   : > { %9045 = vst [vmem:[#allocation38_spill] sm:$0xff] %v7556_v43  ;;  %v7558_v22 = vpop.eup %5866  ;;  %5884 = vpow2.f32 %v4975_v27 }
 0x29b   : > { %1739 = vrot.lane.b32.xlu0 %v1665_v56, %s6698_s13  ;;  %v1588_v44 = vpop.permute.xlu0 %1587  ;;  %9046 = vst [vmem:[#allocation39_spill] sm:$0xff] %v7558_v22  ;;  %5886 = vrcp.f32 %v1449_v20 }
 0x29c   : > { %5888 = vpow2.f32 %v4976_v10 }
 0x29d   : > { %1741 = vrot.lane.b32.xlu1 %v1666_v12, %s6698_s13  ;;  %v1590_v42 = vpop.permute.xlu1 %1589  ;;  %v5869_v12 = vpop.eup %5868  ;;  %5890 = vrcp.f32 %v1450_v50 }
 0x29e   : > { %v5871_v13 = vpop.eup %5870  ;;  %5892 = vpow2.f32 %v4977_v23  ;;  %v4981_v23 = vmul.f32 -1.442695, %v7465_v17 }
 0x29f   : > { %v1584_v56 = vpop.permute.xlu0 %1583  ;;  %v7565_v38 = vpop.eup %5872  ;;  %5894 = vrcp.f32 %v1451_v47 }
 0x2a0   : > { %v1667_v28 = vmul.f32 %v7556_v43, %v1584_v56  ;;  %9047 = vst [vmem:[#allocation40_spill] sm:$0xff] %v7565_v38  ;;  %v7568_v27 = vpop.eup %5874  ;;  %v1452_v56 = vadd.f32 1.0, %v5869_v12  ;;  %v1669_v20 = vmul.f32 %v7565_v38, %v1588_v44  ;;  %v1453_v43 = vadd.f32 1.0, %v5871_v13 }
 0x2a1   : > { %v1586_v9 = vpop.permute.xlu1 %1585  ;;  %9048 = vst [vmem:[#allocation41_spill] sm:$0xff] %v7568_v27  ;;  %v5877_v10 = vpop.eup %5876  ;;  %5896 = vpow2.f32 %v4978_v11 }
 0x2a2   : > { %v1668_v39 = vmul.f32 %v7558_v22, %v1586_v9  ;;  %1743 = vrot.lane.b32.xlu0 %v1667_v28, %s6698_s13  ;;  %v4980_v9 = vmul.f32 -1.442695, %v7460_v34  ;;  %v1670_v28 = vmul.f32 %v7568_v27, %v1590_v42  ;;  %v7575_v22 = vpop.eup %5878  ;;  %5898 = vpow2.f32 %v4979_v32 }
 0x2a3   : > { %9049 = vst [vmem:[#allocation42_spill] sm:$0xff] %v7575_v22  ;;  %v5881_v44 = vpop.eup %5880  ;;  %v1454_v12 = vadd.f32 1.0, %v5877_v10  ;;  %5900 = vrcp.f32 %v1452_v56 }
 0x2a4   : > { %1745 = vrot.lane.b32.xlu1 %v1668_v39, %s6698_s13  ;;  %v7579_v39 = vpop.eup %5882  ;;  %5902 = vrcp.f32 %v1453_v43  ;;  %v1455_v27 = vadd.f32 1.0, %v5881_v44 }
 0x2a5   : > { %9050 = vst [vmem:[#allocation43_spill] sm:$0xff] %v7579_v39  ;;  %v5885_v42 = vpop.eup %5884  ;;  %5904 = vpow2.f32 %v4980_v9 }
 0x2a6   : > { %v1596_v53 = vpop.permute.xlu0 %1595  ;;  %1747 = vrot.lane.b32.xlu0 %v1669_v20, %s6698_s13  ;;  %v7582_v20 = vpop.eup %5886  ;;  %5906 = vpow2.f32 %v4981_v23  ;;  %v1456_v38 = vadd.f32 1.0, %v5885_v42 }
 0x2a7   : > { %9051 = vst [vmem:[#allocation44_spill] sm:$0xff] %v7582_v20  ;;  %v5889_v56 = vpop.eup %5888  ;;  %5908 = vrcp.f32 %v1454_v12  ;;  %v1673_v43 = vmul.f32 %v7582_v20, %v1596_v53 }
 0x2a8   : > { %v1598_v50 = vpop.permute.xlu1 %1597  ;;  %1749 = vrot.lane.b32.xlu1 %v1670_v28, %s6698_s13  ;;  %v7586_v28 = vpop.eup %5890  ;;  %v1457_v44 = vadd.f32 1.0, %v5889_v56  ;;  %5910 = vrcp.f32 %v1455_v27 }
 0x2a9   : > { %v5893_v9 = vpop.eup %5892  ;;  %v1674_v23 = vmul.f32 %v7586_v28, %v1598_v50  ;;  %5912 = vrcp.f32 %v1456_v38 }
 0x2aa   : > { %v1592_v13 = vpop.permute.xlu0 %1591  ;;  %5914 = vrcp.f32 %v1457_v44 }
 0x2ab   : > { %v1671_v47 = vmul.f32 %v7575_v22, %v1592_v13  ;;  %v7590_v22 = vpop.eup %5894 }
 0x2ac   : > { %v1594_v11 = vpop.permute.xlu1 %1593  ;;  %9052 = vst [vmem:[#allocation45_spill] sm:$0xff] %v7590_v22 }
 0x2ad   : > { %v1672_v32 = vmul.f32 %v7579_v39, %v1594_v11  ;;  %1751 = vrot.lane.b32.xlu0 %v1671_v47, %s6698_s13  ;;  %v5897_v47 = vpop.eup %5896  ;;  %v1458_v39 = vadd.f32 1.0, %v5893_v9 }
 0x2ae   : > { %v1604_v10 = vpop.permute.xlu0 %1603  ;;  %v5899_v11 = vpop.eup %5898  ;;  %v1459_v27 = vadd.f32 1.0, %v5897_v47 }
 0x2af   : > { %1753 = vrot.lane.b32.xlu1 %v1672_v32, %s6698_s13  ;;  %v7596_v53 = vpop.eup %5900  ;;  %5916 = vrcp.f32 %v1458_v39  ;;  %v1460_v9 = vadd.f32 1.0, %v5899_v11 }
 0x2b0   : > { %v1606_v13 = vpop.permute.xlu1 %1605  ;;  %v7598_v20 = vpop.eup %5902  ;;  %5918 = vrcp.f32 %v1459_v27 }
 0x2b1   : > { %1755 = vrot.lane.b32.xlu0 %v1673_v43, %s6698_s13  ;;  %v5905_v56 = vpop.eup %5904  ;;  %v1677_v38 = vmul.f32 %v7598_v20, %v1604_v10  ;;  %5920 = vrcp.f32 %v1460_v9 }
 0x2b2   : > { %v1600_v12 = vpop.permute.xlu0 %1599  ;;  %v5907_v43 = vpop.eup %5906 }
 0x2b3   : > { %v1675_v42 = vmul.f32 %v7590_v22, %v1600_v12  ;;  %1757 = vrot.lane.b32.xlu1 %v1674_v23, %s6698_s13  ;;  %v7604_v23 = vpop.eup %5908  ;;  %v1461_v22 = vadd.f32 1.0, %v5905_v56 }
 0x2b4   : > { %v1602_v32 = vpop.permute.xlu1 %1601  ;;  %v1678_v44 = vmul.f32 %v7604_v23, %v1606_v13 }
 0x2b5   : > { %v1676_v50 = vmul.f32 %v7596_v53, %v1602_v32  ;;  %1759 = vrot.lane.b32.xlu0 %v1675_v42, %s6698_s13  ;;  %v7608_v32 = vpop.eup %5910  ;;  %v1462_v42 = vadd.f32 1.0, %v5907_v43  ;;  %5922 = vrcp.f32 %v1461_v22 }
 0x2b6   : > { %v7612_v11 = vpop.eup %5912 }
 0x2b7   : > { %v1612_v12 = vpop.permute.xlu0 %1611  ;;  %1761 = vrot.lane.b32.xlu1 %v1676_v50, %s6698_s13  ;;  %v7616_v13 = vpop.eup %5914  ;;  %5924 = vrcp.f32 %v1462_v42 }
 0x2b8   : > { %v1681_v43 = vmul.f32 %v7616_v13, %v1612_v12 }
 0x2b9   : > { %v1614_v47 = vpop.permute.xlu1 %1613  ;;  %1763 = vrot.lane.b32.xlu0 %v1677_v38, %s6698_s13  ;;  %v7620_v9 = vpop.eup %5916 }
 0x2ba   : > { %9053 = vst [vmem:[#allocation46_spill] sm:$0xff] %v7620_v9  ;;  %v7624_v22 = vpop.eup %5918 }
 0x2bb   : > { %v1608_v39 = vpop.permute.xlu0 %1607  ;;  %1765 = vrot.lane.b32.xlu1 %v1678_v44, %s6698_s13  ;;  %v1682_v44 = vmul.f32 %v7620_v9, %v1614_v47  ;;  %v7628_v42 = vpop.eup %5920 }
 0x2bc   : > { %v1679_v10 = vmul.f32 %v7608_v32, %v1608_v39  ;;  %9054 = vst [vmem:[#allocation47_spill] sm:$0xff] %v7628_v42 }
 0x2bd   : > { %v1610_v50 = vpop.permute.xlu1 %1609 }
 0x2be   : > { %v1680_v27 = vmul.f32 %v7612_v11, %v1610_v50  ;;  %1767 = vrot.lane.b32.xlu0 %v1679_v10, %s6698_s13 }
 0x2bf   : > { %v1620_v56 = vpop.permute.xlu0 %1619 }
 0x2c0   : > { %1769 = vrot.lane.b32.xlu1 %v1680_v27, %s6698_s13  ;;  %v7632_v27 = vpop.eup %5922 }
 0x2c1   : > { %v1622_v38 = vpop.permute.xlu1 %1621  ;;  %9055 = vst [vmem:[#allocation48_spill] sm:$0xff] %v7632_v27  ;;  %v1685_v47 = vmul.f32 %v7632_v27, %v1620_v56 }
 0x2c2   : > { %1771 = vrot.lane.b32.xlu0 %v1681_v43, %s6698_s13  ;;  %v7636_v43 = vpop.eup %5924 }
 0x2c3   : > { %v1616_v39 = vpop.permute.xlu0 %1615  ;;  %v1686_v9 = vmul.f32 %v7636_v43, %v1622_v38 }
 0x2c4   : > { %v1683_v10 = vmul.f32 %v7624_v22, %v1616_v39  ;;  %1773 = vrot.lane.b32.xlu1 %v1682_v44, %s6698_s13 }
 0x2c5   : > { %v1618_v50 = vpop.permute.xlu1 %1617 }
 0x2c6   : > { %v1684_v12 = vmul.f32 %v7628_v42, %v1618_v50  ;;  %1775 = vrot.lane.b32.xlu0 %v1683_v10, %s6698_s13 }
 0x2c8   : > { %1777 = vrot.lane.b32.xlu1 %v1684_v12, %s6698_s13 }
 0x2ca   : > { %1779 = vrot.lane.b32.xlu0 %v1685_v47, %s6698_s13 }
 0x2cc   : > { %1781 = vrot.lane.b32.xlu1 %v1686_v9, %s6698_s13  ;;  %s6637_s13 = sshll.u32 %s6700_s12, 4  ;;  %s6638_s13 = int_to_ptr.vmem [resolvable:$false] %s6637_s13 }
 0x2cd   : > { %p6640_p0 = scmp.lt.s32.totalorder %s8895_s7, %s6638_s13 }
 0x2f4   : > { %v1720_v44 = vpop.permute.xlu0 %1719 }
 0x2f5   : > { %v1815_v39 = vadd.f32 %v1720_v44, %v7325_v62 }
 0x2f7   : > { %5926 = vtanh.f32 %v1815_v39 }
 0x2f8   : > { %v1722_v50 = vpop.permute.xlu1 %1721  ;;  %v1724_v10 = vpop.permute.xlu0 %1723 }
 0x2f9   : > { %v1816_v42 = vadd.f32 %v1722_v50, %v7335_v51  ;;  %v1817_v56 = vadd.f32 %v1724_v10, %v7322_v31 }
 0x2fb   : > { %5928 = vtanh.f32 %v1816_v42 }
 0x2fc   : > { %5930 = vtanh.f32 %v1817_v56  ;;  %v1726_v12 = vpop.permute.xlu1 %1725 }
 0x2fd   : > { %v1818_v27 = vadd.f32 %v1726_v12, %v7332_v52 }
 0x2ff   : > { %5932 = vtanh.f32 %v1818_v27 }
 0x300   : > { %v1728_v47 = vpop.permute.xlu0 %1727 }
 0x301   : > { %v5927_v38 = vpop.eup %5926  ;;  %v1819_v9 = vadd.f32 %v1728_v47, %v7350_v3  ;;  %v1730_v62 = vpop.permute.xlu1 %1729 }
 0x302   : > { %1943 = vrot.lane.b32.xlu0 %v5927_v38, %s6699_s14  ;;  %v1820_v44 = vadd.f32 %v1730_v62, %v7355_v6 }
 0x303   : > { %5934 = vtanh.f32 %v1819_v9 }
 0x304   : > { %v1732_v39 = vpop.permute.xlu0 %1731  ;;  %5936 = vtanh.f32 %v1820_v44 }
 0x305   : > { %v5929_v51 = vpop.eup %5928  ;;  %v1821_v42 = vadd.f32 %v1732_v39, %v7342_v15  ;;  %v1734_v52 = vpop.permute.xlu1 %1733 }
 0x306   : > { %v5931_v31 = vpop.eup %5930  ;;  %1945 = vrot.lane.b32.xlu1 %v5929_v51, %s6699_s14  ;;  %v1822_v3 = vadd.f32 %v1734_v52, %v7345_v63 }
 0x307   : > { %1947 = vrot.lane.b32.xlu0 %v5931_v31, %s6699_s14  ;;  %5938 = vtanh.f32 %v1821_v42 }
 0x308   : > { %5940 = vtanh.f32 %v1822_v3 }
 0x309   : > { %v5933_v27 = vpop.eup %5932  ;;  %v1736_v50 = vpop.permute.xlu0 %1735 }
 0x30a   : > { %1949 = vrot.lane.b32.xlu1 %v5933_v27, %s6699_s14  ;;  %v1823_v6 = vadd.f32 %v1736_v50, %v7370_v7 }
 0x30b   : > { %v1738_v10 = vpop.permute.xlu1 %1737 }
 0x30c   : > { %5942 = vtanh.f32 %v1823_v6  ;;  %v1824_v56 = vadd.f32 %v1738_v10, %v7375_v26 }
 0x30d   : > { %v5935_v15 = vpop.eup %5934  ;;  %v1740_v12 = vpop.permute.xlu0 %1739 }
 0x30e   : > { %5944 = vtanh.f32 %v1824_v56  ;;  %v1825_v38 = vadd.f32 %v1740_v12, %v7362_v18  ;;  %1951 = vrot.lane.b32.xlu0 %v5935_v15, %s6699_s14  ;;  %v5937_v47 = vpop.eup %5936 }
 0x30f   : > { %v1742_v63 = vpop.permute.xlu1 %1741  ;;  %1953 = vrot.lane.b32.xlu1 %v5937_v47, %s6699_s14 }
 0x310   : > { %5946 = vtanh.f32 %v1825_v38  ;;  %v1826_v9 = vadd.f32 %v1742_v63, %v7365_v54 }
 0x311   : > { %v5939_v62 = vpop.eup %5938 }
 0x312   : > { %5948 = vtanh.f32 %v1826_v9  ;;  %1955 = vrot.lane.b32.xlu0 %v5939_v62, %s6699_s14  ;;  %v5941_v7 = vpop.eup %5940 }
 0x313   : > { %1957 = vrot.lane.b32.xlu1 %v5941_v7, %s6699_s14 }
 0x314   : > { %v1744_v26 = vpop.permute.xlu0 %1743 }
 0x315   : > { %v1827_v18 = vadd.f32 %v1744_v26, %v7390_v46 }
 0x316   : > { %v5943_v44 = vpop.eup %5942  ;;  %v1746_v51 = vpop.permute.xlu1 %1745 }
 0x317   : > { %1959 = vrot.lane.b32.xlu0 %v5943_v44, %s6699_s14  ;;  %5950 = vtanh.f32 %v1827_v18  ;;  %v1828_v54 = vadd.f32 %v1746_v51, %v7395_v55 }
 0x318   : > { %v5945_v39 = vpop.eup %5944  ;;  %v1748_v31 = vpop.permute.xlu0 %1747 }
 0x319   : > { %1961 = vrot.lane.b32.xlu1 %v5945_v39, %s6699_s14  ;;  %5952 = vtanh.f32 %v1828_v54  ;;  %v1829_v52 = vadd.f32 %v1748_v31, %v7382_v30 }
 0x31a   : > { %v5947_v42 = vpop.eup %5946  ;;  %v1750_v3 = vpop.permute.xlu1 %1749 }
 0x31b   : > { %1963 = vrot.lane.b32.xlu0 %v5947_v42, %s6699_s14  ;;  %5954 = vtanh.f32 %v1829_v52  ;;  %v1830_v46 = vadd.f32 %v1750_v3, %v7385_v14 }
 0x31c   : > { %v5949_v27 = vpop.eup %5948 }
 0x31d   : > { %1965 = vrot.lane.b32.xlu1 %v5949_v27, %s6699_s14  ;;  %5956 = vtanh.f32 %v1830_v46 }
 0x31f   : > { %v1752_v50 = vpop.permute.xlu0 %1751 }
 0x320   : > { %v1831_v55 = vadd.f32 %v1752_v50, %v7410_v16 }
 0x321   : > { %v1754_v6 = vpop.permute.xlu1 %1753  ;;  %v5951_v56 = vpop.eup %5950 }
 0x322   : > { %5958 = vtanh.f32 %v1831_v55  ;;  %v1832_v10 = vadd.f32 %v1754_v6, %v7415_v41  ;;  %1967 = vrot.lane.b32.xlu0 %v5951_v56, %s6699_s14 }
 0x323   : > { %v1756_v15 = vpop.permute.xlu0 %1755  ;;  %v5953_v12 = vpop.eup %5952 }
 0x324   : > { %5960 = vtanh.f32 %v1832_v10  ;;  %v1833_v30 = vadd.f32 %v1756_v15, %v7402_v24  ;;  %1969 = vrot.lane.b32.xlu1 %v5953_v12, %s6699_s14 }
 0x325   : > { %v1758_v38 = vpop.permute.xlu1 %1757  ;;  %v5955_v47 = vpop.eup %5954 }
 0x326   : > { %5962 = vtanh.f32 %v1833_v30  ;;  %v1834_v14 = vadd.f32 %v1758_v38, %v7405_v60  ;;  %1971 = vrot.lane.b32.xlu0 %v5955_v47, %s6699_s14  ;;  %v5662_v30 = vld [vmem:[%s8945_s2 + $0x48] sm:$0xff]  }
 0x327   : > { %v1760_v16 = vpop.permute.xlu0 %1759  ;;  %v5957_v41 = vpop.eup %5956  ;;  %5431 = vmatprep.subr.bf16.mxu1 %v5662_v30 }
 0x328   : > { %5964 = vtanh.f32 %v1834_v14  ;;  %v1835_v63 = vadd.f32 %v1760_v16, %v7430_v37  ;;  %1973 = vrot.lane.b32.xlu1 %v5957_v41, %s6699_s14  ;;  %5432 = vmatpush3.bf16.msra.mxu1 %v5662_v30 }
 0x329   : > { %v1762_v9 = vpop.permute.xlu1 %1761 }
 0x32a   : > { %5966 = vtanh.f32 %v1835_v63  ;;  %v1836_v24 = vadd.f32 %v1762_v9, %v7435_v8  ;;  %v1879_v63 = vsub.f32 1.0, %v7493_v0  ;;  %v1880_v9 = vsub.f32 1.0, %v7498_v5 }
 0x32b   : > { %v1764_v62 = vpop.permute.xlu0 %1763 }
 0x32c   : > { %v5959_v7 = vpop.eup %5958  ;;  %5968 = vtanh.f32 %v1836_v24  ;;  %v1837_v26 = vadd.f32 %v1764_v62, %v7420_v2  ;;  %v2071_v62 = vmul.f32 %v7493_v0, %v7043_v61 }
 0x32d   : > { %v1766_v60 = vpop.permute.xlu1 %1765  ;;  %1975 = vrot.lane.b32.xlu0 %v5959_v7, %s6699_s14  ;;  %v2072_v7 = vmul.f32 %v7498_v5, %v7047_v4  ;;  %v1883_v5 = vsub.f32 1.0, %v7514_v45 }
 0x32e   : > { %v5961_v44 = vpop.eup %5960  ;;  %5970 = vtanh.f32 %v1837_v26  ;;  %v1838_v37 = vadd.f32 %v1766_v60, %v7425_v21  ;;  %v1881_v60 = vsub.f32 1.0, %v7496_v25 }
 0x32f   : > { %1977 = vrot.lane.b32.xlu1 %v5961_v44, %s6699_s14 }
 0x330   : > { %v5963_v18 = vpop.eup %5962  ;;  %5972 = vtanh.f32 %v1838_v37  ;;  %v1768_v51 = vpop.permute.xlu0 %1767 }
 0x331   : > { %v1839_v39 = vadd.f32 %v1768_v51, %v7450_v49  ;;  %1979 = vrot.lane.b32.xlu0 %v5963_v18, %s6699_s14 }
 0x332   : > { %v5965_v8 = vpop.eup %5964  ;;  %v1770_v54 = vpop.permute.xlu1 %1769 }
 0x333   : > { %5974 = vtanh.f32 %v1839_v39  ;;  %v1840_v2 = vadd.f32 %v1770_v54, %v7455_v59  ;;  %1981 = vrot.lane.b32.xlu1 %v5965_v8, %s6699_s14  ;;  %v1882_v39 = vsub.f32 1.0, %v7508_v33  ;;  %v2073_v54 = vmul.f32 %v7496_v25, %v7039_v36 }
 0x334   : > { %v5967_v31 = vpop.eup %5966  ;;  %v1772_v42 = vpop.permute.xlu0 %1771  ;;  %v2076_v25 = vmul.f32 %v7518_v57, %v7087_v19 }
 0x335   : > { %5976 = vtanh.f32 %v1840_v2  ;;  %v1841_v21 = vadd.f32 %v1772_v42, %v7442_v1  ;;  %1983 = vrot.lane.b32.xlu0 %v5967_v31, %s6699_s14  ;;  %v2074_v2 = vmul.f32 %v7508_v33, %v7034_v35 }
 0x336   : > { %v5969_v52 = vpop.eup %5968  ;;  %v1774_v3 = vpop.permute.xlu1 %1773 }
 0x337   : > { %5978 = vtanh.f32 %v1841_v21  ;;  %v1842_v49 = vadd.f32 %v1774_v3, %v7445_v29  ;;  %1985 = vrot.lane.b32.xlu1 %v5969_v52, %s6699_s14  ;;  %v2075_v52 = vmul.f32 %v7514_v45, %v7091_v40  ;;  %v9058_v40 = vld [vmem:[#allocation33_spill] sm:$0xff] }
 0x338   : > { %v5971_v27 = vpop.eup %5970  ;;  %v1776_v46 = vpop.permute.xlu0 %1775  ;;  %v1886_v45 = vsub.f32 1.0, %v9058_v40 }
 0x339   : > { %5980 = vtanh.f32 %v1842_v49  ;;  %v1843_v59 = vadd.f32 %v1776_v46, %v7470_v48  ;;  %1987 = vrot.lane.b32.xlu0 %v5971_v27, %s6699_s14  ;;  %v1884_v49 = vsub.f32 1.0, %v7518_v57  ;;  %v9056_v27 = vld [vmem:[#allocation32_spill] sm:$0xff] }
 0x33a   : > { %v5973_v50 = vpop.eup %5972  ;;  %v1778_v55 = vpop.permute.xlu1 %1777  ;;  %v1885_v46 = vsub.f32 1.0, %v9056_v27 }
 0x33b   : > { %5982 = vtanh.f32 %v1843_v59  ;;  %v1844_v1 = vadd.f32 %v1778_v55, %v7475_v58  ;;  %1989 = vrot.lane.b32.xlu1 %v5973_v50, %s6699_s14  ;;  %v9057_v55 = vld [vmem:[#allocation7_spill] sm:$0xff] }
 0x33c   : > { %v1780_v6 = vpop.permute.xlu0 %1779 }
 0x33d   : > { %v5975_v10 = vpop.eup %5974  ;;  %5984 = vtanh.f32 %v1844_v1  ;;  %v1845_v29 = vadd.f32 %v1780_v6, %v7460_v34  ;;  %v2077_v1 = vmul.f32 %v9056_v27, %v9057_v55 }
 0x33e   : > { %v1782_v56 = vpop.permute.xlu1 %1781  ;;  %1991 = vrot.lane.b32.xlu0 %v5975_v10, %s6699_s14 }
 0x33f   : > { %v5977_v15 = vpop.eup %5976  ;;  %5986 = vtanh.f32 %v1845_v29  ;;  %v1846_v48 = vadd.f32 %v1782_v56, %v7465_v17  ;;  %v5663_v17 = vld [vmem:[%s8945_s2 + $0x50] sm:$0xff]  }
 0x340   : > { %1993 = vrot.lane.b32.xlu1 %v5977_v15, %s6699_s14  ;;  %5433 = vmatprep.subr.bf16.mxu1 %v5663_v17  ;;  %v9059_v15 = vld [vmem:[#allocation6_spill] sm:$0xff] }
 0x341   : > { %v5979_v58 = vpop.eup %5978  ;;  %5988 = vtanh.f32 %v1846_v48  ;;  %5434 = vmatpush3.bf16.msra.mxu1 %v5663_v17  ;;  %v2078_v48 = vmul.f32 %v9058_v40, %v9059_v15  ;;  %v9074_v15 = vld [vmem:[#allocation41_spill] sm:$0xff] }
 0x342   : > { %1995 = vrot.lane.b32.xlu0 %v5979_v58, %s6699_s14  ;;  %v9060_v58 = vld [vmem:[#allocation34_spill] sm:$0xff] }
 0x343   : > { %v5981_v34 = vpop.eup %5980  ;;  %v1887_v19 = vsub.f32 1.0, %v9060_v58 }
 0x344   : > { %1997 = vrot.lane.b32.xlu1 %v5981_v34, %s6699_s14 }
 0x345   : > { %v5983_v12 = vpop.eup %5982 }
 0x346   : > { %1999 = vrot.lane.b32.xlu0 %v5983_v12, %s6699_s14  ;;  %v9061_v12 = vld [vmem:[#allocation8_spill] sm:$0xff] }
 0x347   : > { %v5985_v38 = vpop.eup %5984  ;;  %v2079_v17 = vmul.f32 %v9060_v58, %v9061_v12 }
 0x348   : > { %2001 = vrot.lane.b32.xlu1 %v5985_v38, %s6699_s14 }
 0x349   : > { %v5987_v14 = vpop.eup %5986 }
 0x34a   : > { %2003 = vrot.lane.b32.xlu0 %v5987_v14, %s6699_s14  ;;  %v9062_v14 = vld [vmem:[#allocation35_spill] sm:$0xff] }
 0x34b   : > { %v5989_v47 = vpop.eup %5988 }
 0x34c   : > { %2005 = vrot.lane.b32.xlu1 %v5989_v47, %s6699_s14  ;;  %v1888_v47 = vsub.f32 1.0, %v9062_v14 }
 0x374   : > { %v1944_v16 = vpop.permute.xlu0 %1943 }
 0x375   : > { %v2039_v41 = vmul.f32 %v1944_v16, %v1879_v63 }
 0x377   : > { %v2103_v37 = vadd.f32 %v2071_v62, %v2039_v41 }
 0x378   : > { %v1946_v24 = vpop.permute.xlu1 %1945 }
 0x379   : > { %v2040_v26 = vmul.f32 %v1946_v24, %v1880_v9  ;;  %v1948_v44 = vpop.permute.xlu0 %1947  ;;  %v9063_v9 = vld [vmem:[#allocation9_spill] sm:$0xff] }
 0x37a   : > { %v2041_v51 = vmul.f32 %v1948_v44, %v1881_v60  ;;  %v2080_v24 = vmul.f32 %v9062_v14, %v9063_v9 }
 0x37b   : > { %v2104_v18 = vadd.f32 %v2072_v7, %v2040_v26  ;;  %v9064_v7 = vld [vmem:[#allocation36_spill] sm:$0xff] }
 0x37c   : > { %v1950_v8 = vpop.permute.xlu1 %1949  ;;  %v2105_v31 = vadd.f32 %v2073_v54, %v2041_v51  ;;  %v1889_v26 = vsub.f32 1.0, %v9064_v7 }
 0x37d   : > { %v2042_v61 = vmul.f32 %v1950_v8, %v1882_v39  ;;  %v2135_v0 = vpack.c.bf16 %v2104_v18, %v2103_v37  ;;  %v9065_v37 = vld [vmem:[#allocation11_spill] sm:$0xff]  ;;  %v9066_v39 = vld [vmem:[#allocation37_spill] sm:$0xff] }
 0x37e   : > { %v2081_v18 = vmul.f32 %v9064_v7, %v9065_v37  ;;  %v1890_v8 = vsub.f32 1.0, %v9066_v39  ;;  %v9080_v37 = vld [vmem:[#allocation44_spill] sm:$0xff] }
 0x37f   : > { %v2106_v4 = vadd.f32 %v2074_v2, %v2042_v61  ;;  %2171 = vrot.lane.b32.xlu0 %v2135_v0, %s6699_s14  ;;  %v9067_v0 = vld [vmem:[#allocation10_spill] sm:$0xff] }
 0x380   : > { %v1952_v42 = vpop.permute.xlu0 %1951 }
 0x381   : > { %v2136_v21 = vpack.c.bf16 %v2106_v4, %v2105_v31  ;;  %v2043_v3 = vmul.f32 %v1952_v42, %v1883_v5  ;;  %v1954_v36 = vpop.permute.xlu1 %1953  ;;  %v2082_v31 = vmul.f32 %v9066_v39, %v9067_v0 }
 0x382   : > { %v2044_v33 = vmul.f32 %v1954_v36, %v1884_v49  ;;  %v9069_v49 = vld [vmem:[#allocation15_spill] sm:$0xff] }
 0x383   : > { %2173 = vrot.lane.b32.xlu1 %v2136_v21, %s6699_s14  ;;  %v2107_v35 = vadd.f32 %v2075_v52, %v2043_v3  ;;  %v9068_v21 = vld [vmem:[#allocation38_spill] sm:$0xff] }
 0x384   : > { %v1956_v59 = vpop.permute.xlu0 %1955  ;;  %v2108_v50 = vadd.f32 %v2076_v25, %v2044_v33  ;;  %v1891_v52 = vsub.f32 1.0, %v9068_v21  ;;  %v2083_v36 = vmul.f32 %v9068_v21, %v9069_v49  ;;  %v9070_v25 = vld [vmem:[#allocation39_spill] sm:$0xff] }
 0x385   : > { %v2045_v6 = vmul.f32 %v1956_v59, %v1885_v46  ;;  %v1958_v10 = vpop.permute.xlu1 %1957  ;;  %v1892_v33 = vsub.f32 1.0, %v9070_v25  ;;  %v9071_v59 = vld [vmem:[#allocation12_spill] sm:$0xff] }
 0x386   : > { %v2137_v29 = vpack.c.bf16 %v2108_v50, %v2107_v35  ;;  %v2046_v30 = vmul.f32 %v1958_v10, %v1886_v45  ;;  %v2084_v50 = vmul.f32 %v9070_v25, %v9071_v59  ;;  %v9073_v10 = vld [vmem:[#allocation14_spill] sm:$0xff] }
 0x387   : > { %v2109_v56 = vadd.f32 %v2077_v1, %v2045_v6  ;;  %v9072_v1 = vld [vmem:[#allocation40_spill] sm:$0xff] }
 0x388   : > { %v2110_v57 = vadd.f32 %v2078_v48, %v2046_v30  ;;  %2175 = vrot.lane.b32.xlu0 %v2137_v29, %s6699_s14  ;;  %v1893_v6 = vsub.f32 1.0, %v9072_v1  ;;  %v2085_v29 = vmul.f32 %v9072_v1, %v9073_v10  ;;  %v1894_v48 = vsub.f32 1.0, %v9074_v15  ;;  %v9085_v1 = vld [vmem:[#allocation21_spill] sm:$0xff] }
 0x389   : > { %v1960_v34 = vpop.permute.xlu0 %1959 }
 0x38a   : > { %v2047_v38 = vmul.f32 %v1960_v34, %v1887_v19  ;;  %v2138_v16 = vpack.c.bf16 %v2110_v57, %v2109_v56  ;;  %v9075_v57 = vld [vmem:[#allocation13_spill] sm:$0xff] }
 0x38b   : > { %v1962_v63 = vpop.permute.xlu1 %1961  ;;  %v2086_v34 = vmul.f32 %v9074_v15, %v9075_v57 }
 0x38c   : > { %v2111_v41 = vadd.f32 %v2079_v17, %v2047_v38  ;;  %v2048_v62 = vmul.f32 %v1962_v63, %v1888_v47  ;;  %2177 = vrot.lane.b32.xlu1 %v2138_v16, %s6699_s14  ;;  %v9076_v17 = vld [vmem:[#allocation42_spill] sm:$0xff]  ;;  %v9077_v63 = vld [vmem:[#allocation43_spill] sm:$0xff] }
 0x38d   : > { %v1964_v60 = vpop.permute.xlu0 %1963  ;;  %v1895_v38 = vsub.f32 1.0, %v9076_v17 }
 0x38e   : > { %v2112_v44 = vadd.f32 %v2080_v24, %v2048_v62  ;;  %v2049_v51 = vmul.f32 %v1964_v60, %v1889_v26  ;;  %v9078_v62 = vld [vmem:[#allocation17_spill] sm:$0xff]  ;;  %v9079_v26 = vld [vmem:[#allocation18_spill] sm:$0xff] }
 0x38f   : > { %v1966_v54 = vpop.permute.xlu1 %1965  ;;  %v2087_v7 = vmul.f32 %v9076_v17, %v9078_v62  ;;  %v2088_v60 = vmul.f32 %v9077_v63, %v9079_v26  ;;  %v1905_v62 = vsub.f32 1.0, %v7616_v13 }
 0x390   : > { %v2139_v2 = vpack.c.bf16 %v2112_v44, %v2111_v41  ;;  %v2113_v61 = vadd.f32 %v2081_v18, %v2049_v51  ;;  %v2050_v4 = vmul.f32 %v1966_v54, %v1890_v8  ;;  %v1896_v41 = vsub.f32 1.0, %v9077_v63 }
 0x391   : > { %v1897_v18 = vsub.f32 1.0, %v9080_v37 }
 0x392   : > { %v2114_v5 = vadd.f32 %v2082_v31, %v2050_v4  ;;  %2179 = vrot.lane.b32.xlu0 %v2139_v2, %s6699_s14  ;;  %v1898_v2 = vsub.f32 1.0, %v7586_v28 }
 0x394   : > { %v2140_v42 = vpack.c.bf16 %v2114_v5, %v2113_v61  ;;  %v1968_v3 = vpop.permute.xlu0 %1967  ;;  %v9081_v61 = vld [vmem:[#allocation19_spill] sm:$0xff]  ;;  %v9082_v5 = vld [vmem:[#allocation16_spill] sm:$0xff] }
 0x395   : > { %v2051_v35 = vmul.f32 %v1968_v3, %v1891_v52  ;;  %v2089_v0 = vmul.f32 %v9080_v37, %v9081_v61  ;;  %v9083_v52 = vld [vmem:[#allocation45_spill] sm:$0xff]  ;;  %v9090_v37 = vld [vmem:[#allocation46_spill] sm:$0xff]  ;;  %v1907_v61 = vsub.f32 1.0, %v7624_v22 }
 0x396   : > { %2181 = vrot.lane.b32.xlu1 %v2140_v42, %s6699_s14  ;;  %v1970_v27 = vpop.permute.xlu1 %1969  ;;  %v2090_v42 = vmul.f32 %v7586_v28, %v9082_v5  ;;  %v1899_v3 = vsub.f32 1.0, %v9083_v52  ;;  %v2092_v28 = vmul.f32 %v7596_v53, %v9085_v1 }
 0x397   : > { %v2115_v46 = vadd.f32 %v2083_v36, %v2051_v35  ;;  %v2052_v55 = vmul.f32 %v1970_v27, %v1892_v33  ;;  %v1900_v33 = vsub.f32 1.0, %v7596_v53  ;;  %v1903_v53 = vsub.f32 1.0, %v7608_v32 }
 0x398   : > { %v1972_v40 = vpop.permute.xlu0 %1971 }
 0x399   : > { %v2116_v45 = vadd.f32 %v2084_v50, %v2052_v55  ;;  %v2053_v56 = vmul.f32 %v1972_v40, %v1893_v6  ;;  %v9084_v50 = vld [vmem:[#allocation20_spill] sm:$0xff] }
 0x39a   : > { %v1974_v30 = vpop.permute.xlu1 %1973  ;;  %v2091_v55 = vmul.f32 %v9083_v52, %v9084_v50 }
 0x39b   : > { %v2141_v58 = vpack.c.bf16 %v2116_v45, %v2115_v46  ;;  %v2117_v19 = vadd.f32 %v2085_v29, %v2053_v56  ;;  %v2054_v12 = vmul.f32 %v1974_v30, %v1894_v48  ;;  %v1901_v46 = vsub.f32 1.0, %v7598_v20  ;;  %v9086_v30 = vld [vmem:[#allocation23_spill] sm:$0xff] }
 0x39c   : > { %v1902_v56 = vsub.f32 1.0, %v7604_v23 }
 0x39d   : > { %v2118_v14 = vadd.f32 %v2086_v34, %v2054_v12  ;;  %2183 = vrot.lane.b32.xlu0 %v2141_v58, %s6699_s14  ;;  %v2093_v58 = vmul.f32 %v7598_v20, %v9086_v30  ;;  %v9089_v20 = vld [vmem:[#allocation26_spill] sm:$0xff] }
 0x39f   : > { %v1976_v47 = vpop.permute.xlu0 %1975  ;;  %v2142_v9 = vpack.c.bf16 %v2118_v14, %v2117_v19  ;;  %v9087_v19 = vld [vmem:[#allocation22_spill] sm:$0xff] }
 0x3a0   : > { %v2055_v16 = vmul.f32 %v1976_v47, %v1895_v38  ;;  %v2094_v57 = vmul.f32 %v7604_v23, %v9087_v19  ;;  %v1904_v47 = vsub.f32 1.0, %v7612_v11 }
 0x3a1   : > { %v1978_v24 = vpop.permute.xlu1 %1977  ;;  %2185 = vrot.lane.b32.xlu1 %v2142_v9, %s6699_s14 }
 0x3a2   : > { %v2056_v44 = vmul.f32 %v1978_v24, %v1896_v41  ;;  %v2119_v39 = vadd.f32 %v2087_v7, %v2055_v16  ;;  %v9088_v41 = vld [vmem:[#allocation25_spill] sm:$0xff]  ;;  %v2096_v24 = vmul.f32 %v7612_v11, %v9089_v20 }
 0x3a3   : > { %v1980_v51 = vpop.permute.xlu0 %1979  ;;  %v2095_v9 = vmul.f32 %v7608_v32, %v9088_v41  ;;  %v9092_v32 = vld [vmem:[#allocation24_spill] sm:$0xff] }
 0x3a4   : > { %v2120_v8 = vadd.f32 %v2088_v60, %v2056_v44  ;;  %v2057_v54 = vmul.f32 %v1980_v51, %v1897_v18  ;;  %v1906_v18 = vsub.f32 1.0, %v9090_v37  ;;  %v9091_v51 = vld [vmem:[#allocation27_spill] sm:$0xff] }
 0x3a5   : > { %v1982_v31 = vpop.permute.xlu1 %1981 }
 0x3a6   : > { %v2143_v4 = vpack.c.bf16 %v2120_v8, %v2119_v39  ;;  %v2058_v21 = vmul.f32 %v1982_v31, %v1898_v2  ;;  %v2121_v36 = vadd.f32 %v2089_v0, %v2057_v54  ;;  %v2097_v39 = vmul.f32 %v7616_v13, %v9091_v51  ;;  %v5664_v31 = vld [vmem:[%s8945_s2 + $0x58] sm:$0xff]  }
 0x3a7   : > { %v1984_v49 = vpop.permute.xlu0 %1983  ;;  %v2098_v2 = vmul.f32 %v9090_v37, %v9092_v32  ;;  %5467 = vmatprep.subr.bf16.mxu0 %v5664_v31 }
 0x3a8   : > { %v2122_v35 = vadd.f32 %v2090_v42, %v2058_v21  ;;  %v2059_v25 = vmul.f32 %v1984_v49, %v1899_v3  ;;  %2187 = vrot.lane.b32.xlu0 %v2143_v4, %s6699_s14  ;;  %v9093_v21 = vld [vmem:[#allocation47_spill] sm:$0xff]  ;;  %v9094_v3 = vld [vmem:[#allocation48_spill] sm:$0xff]  ;;  %5468 = vmatpush3.bf16.msra.mxu0 %v5664_v31 }
 0x3a9   : > { %v1986_v27 = vpop.permute.xlu1 %1985  ;;  %v1908_v13 = vsub.f32 1.0, %v9093_v21  ;;  %v1909_v49 = vsub.f32 1.0, %v9094_v3 }
 0x3aa   : > { %v2144_v59 = vpack.c.bf16 %v2122_v35, %v2121_v36  ;;  %v2060_v6 = vmul.f32 %v1986_v27, %v1900_v33  ;;  %v2123_v45 = vadd.f32 %v2091_v55, %v2059_v25  ;;  %v9095_v35 = vld [vmem:[#allocation29_spill] sm:$0xff]  ;;  %v9096_v33 = vld [vmem:[#allocation30_spill] sm:$0xff] }
 0x3ab   : > { %v1988_v40 = vpop.permute.xlu0 %1987  ;;  %v2099_v25 = vmul.f32 %v7624_v22, %v9095_v35  ;;  %v2100_v27 = vmul.f32 %v9093_v21, %v9096_v33 }
 0x3ac   : > { %v2124_v10 = vadd.f32 %v2092_v28, %v2060_v6  ;;  %v2061_v29 = vmul.f32 %v1988_v40, %v1901_v46  ;;  %2189 = vrot.lane.b32.xlu1 %v2144_v59, %s6699_s14  ;;  %v1910_v28 = vsub.f32 1.0, %v7636_v43 }
 0x3ad   : > { %v1990_v15 = vpop.permute.xlu1 %1989 }
 0x3ae   : > { %v2145_v48 = vpack.c.bf16 %v2124_v10, %v2123_v45  ;;  %v2062_v34 = vmul.f32 %v1990_v15, %v1902_v56  ;;  %v2125_v12 = vadd.f32 %v2093_v58, %v2061_v29  ;;  %v9097_v45 = vld [vmem:[#allocation31_spill] sm:$0xff]  ;;  %v9098_v29 = vld [vmem:[#allocation28_spill] sm:$0xff] }
 0x3af   : > { %v2101_v10 = vmul.f32 %v9094_v3, %v9097_v45  ;;  %v2102_v22 = vmul.f32 %v7636_v43, %v9098_v29 }
 0x3b0   : > { %v2126_v17 = vadd.f32 %v2094_v57, %v2062_v34  ;;  %v1992_v38 = vpop.permute.xlu0 %1991  ;;  %2191 = vrot.lane.b32.xlu0 %v2145_v48, %s6699_s14 }
 0x3b1   : > { %v2063_v14 = vmul.f32 %v1992_v38, %v1903_v53 }
 0x3b2   : > { %v2146_v16 = vpack.c.bf16 %v2126_v17, %v2125_v12  ;;  %v1994_v63 = vpop.permute.xlu1 %1993 }
 0x3b3   : > { %v2064_v23 = vmul.f32 %v1994_v63, %v1904_v47  ;;  %v2127_v26 = vadd.f32 %v2095_v9, %v2063_v14 }
 0x3b4   : > { %v1996_v7 = vpop.permute.xlu0 %1995  ;;  %2193 = vrot.lane.b32.xlu1 %v2146_v16, %s6699_s14 }
 0x3b5   : > { %v2128_v60 = vadd.f32 %v2096_v24, %v2064_v23  ;;  %v2065_v44 = vmul.f32 %v1996_v7, %v1905_v62  ;;  %v5665_v24 = vld [vmem:[%s8945_s2 + $0x60] sm:$0xff]  }
 0x3b6   : > { %v1998_v8 = vpop.permute.xlu1 %1997  ;;  %5469 = vmatprep.subr.bf16.mxu0 %v5665_v24  ;;  %v9099_v23 = vld [vmem:[#allocation5_spill] sm:$0xff] }
 0x3b7   : > { %v2147_v54 = vpack.c.bf16 %v2128_v60, %v2127_v26  ;;  %v2066_v11 = vmul.f32 %v1998_v8, %v1906_v18  ;;  %v2129_v4 = vadd.f32 %v2097_v39, %v2065_v44  ;;  %5470 = vmatpush3.bf16.msra.mxu0 %v5665_v24  ;;  %v2427_v62 = vsub.s32 2, %v9099_v23  ;;  %v7849_v7 = vld [vmem:[%s8946_s3] sm:$0xff] }
 0x3b8   : > { %v2000_v0 = vpop.permute.xlu0 %1999 }
 0x3b9   : > { %v2130_v5 = vadd.f32 %v2098_v2, %v2066_v11  ;;  %v2067_v42 = vmul.f32 %v2000_v0, %v1907_v61  ;;  %2195 = vrot.lane.b32.xlu0 %v2147_v54, %s6699_s14  ;;  %v7852_v26 = vrot.slane %v7849_v7, %v2427_v62 }
 0x3ba   : > { %v2002_v52 = vpop.permute.xlu1 %2001 }
 0x3bb   : > { %v2148_v36 = vpack.c.bf16 %v2130_v5, %v2129_v4  ;;  %v2068_v46 = vmul.f32 %v2002_v52, %v1908_v13  ;;  %v2131_v50 = vadd.f32 %v2099_v25, %v2067_v42 }
 0x3bc   : > { %v2004_v59 = vpop.permute.xlu0 %2003 }
 0x3bd   : > { %v2132_v55 = vadd.f32 %v2100_v27, %v2068_v46  ;;  %v2069_v1 = vmul.f32 %v2004_v59, %v1909_v49  ;;  %2197 = vrot.lane.b32.xlu1 %v2148_v36, %s6699_s14 }
 0x3be   : > { %v2006_v6 = vpop.permute.xlu1 %2005 }
 0x3bf   : > { %v2149_v40 = vpack.c.bf16 %v2132_v55, %v2131_v50  ;;  %v2070_v56 = vmul.f32 %v2006_v6, %v1910_v28  ;;  %v2133_v15 = vadd.f32 %v2101_v10, %v2069_v1 }
 0x3c1   : > { %v2134_v48 = vadd.f32 %v2102_v22, %v2070_v56  ;;  %2199 = vrot.lane.b32.xlu0 %v2149_v40, %s6699_s14 }
 0x3c3   : > { %v2150_v30 = vpack.c.bf16 %v2134_v48, %v2133_v15 }
 0x3c5   : > { %2201 = vrot.lane.b32.xlu1 %v2150_v30, %s6699_s14  ;;  %s6639_s14 = scalar_lea.vmem %s6638_s13, 8192 }
 0x3c6   : > { %p6641_p1 = scmp.lt.s32.totalorder %s6639_s14, %s6633_s11 }
 0x3c8   : > { %p6642_p2 = por %p6641_p1, %p6640_p0 }
 0x3ca   : > { %p6643_p3 = pnand %p6642_p2, %p6636_p13 }
 0x3f1   : > { %v2172_v58 = vpop.permute.xlu0 %2171 }
 0x3f2   : > { %5435 = vmatprep.mubr.msk.bf16.mxu1 %vm2215_vm3, %v2172_v58 }
 0x3f5   : > { %v2174_v19 = vpop.permute.xlu1 %2173 }
 0x3f6   : > { %5436 = vmatmul.mubr.msk.bf16.vlgmr.msra.gmra.mrb[48].mxu1 %vm2215_vm3, %v2174_v19 }
 0x3fa   : > { %v2176_v57 = vpop.permute.xlu0 %2175 }
 0x3fb   : > { %5439 = vmatprep.mubr.msk.bf16.mxu1 %vm2215_vm3, %v2176_v57 }
 0x3fe   : > { %v2178_v34 = vpop.permute.xlu1 %2177 }
 0x3ff   : > { %5440 = vmatmul.mubr.msk.bf16.gmra.mrb[52].mxu1 %vm2215_vm3, %v2178_v34 }
 0x404   : > { %v2180_v43 = vpop.permute.xlu0 %2179 }
 0x405   : > { %5443 = vmatprep.mubr.msk.bf16.mxu1 %vm2215_vm3, %v2180_v43 }
 0x408   : > { %v2182_v53 = vpop.permute.xlu1 %2181 }
 0x409   : > { %5444 = vmatmul.mubr.msk.bf16.gmra.mrb[56].mxu1 %vm2215_vm3, %v2182_v53 }
 0x40f   : > { %v2184_v12 = vpop.permute.xlu0 %2183 }
 0x410   : > { %5447 = vmatprep.mubr.msk.bf16.mxu1 %vm2215_vm3, %v2184_v12 }
 0x413   : > { %v2186_v17 = vpop.permute.xlu1 %2185 }
 0x414   : > { %5448 = vmatmul.mubr.msk.bf16.gmra.mrb[60].mxu1 %vm2215_vm3, %v2186_v17 }
 0x41a   : > { %v2188_v38 = vpop.permute.xlu0 %2187 }
 0x41b   : > { %5451 = vmatprep.mubr.msk.bf16.mxu1 %vm2215_vm3, %v2188_v38 }
 0x41e   : > { %v2190_v14 = vpop.permute.xlu1 %2189 }
 0x41f   : > { %5452 = vmatmul.mubr.msk.bf16.gmra.mrb[64].mxu1 %vm2215_vm3, %v2190_v14 }
 0x422   : > { %v2192_v47 = vpop.permute.xlu0 %2191 }
 0x423   : > { %5455 = vmatprep.mubr.msk.bf16.mxu1 %vm2215_vm3, %v2192_v47 }
 0x426   : > { %v2194_v16 = vpop.permute.xlu1 %2193 }
 0x427   : > { %5456 = vmatmul.mubr.msk.bf16.gmra.mrb[68].mxu1 %vm2215_vm3, %v2194_v16 }
 0x42b   : > { %v2196_v63 = vpop.permute.xlu0 %2195 }
 0x42c   : > { %5459 = vmatprep.mubr.msk.bf16.mxu1 %vm2215_vm3, %v2196_v63 }
 0x42f   : > { %v2198_v41 = vpop.permute.xlu1 %2197 }
 0x430   : > { %5460 = vmatmul.mubr.msk.bf16.gmra.mrb[72].mxu1 %vm2215_vm3, %v2198_v41 }
 0x433   : > { %v2200_v9 = vpop.permute.xlu0 %2199 }
 0x434   : > { %5463 = vmatprep.mubr.msk.bf16.mxu1 %vm2215_vm3, %v2200_v9 }
 0x437   : > { %v2202_v20 = vpop.permute.xlu1 %2201 }
 0x438   : > { %5464 = vmatmul.mubr.msk.bf16.gmra.mrb[76].mxu1 %vm2215_vm3, %v2202_v20 }
 0x4c9   : > { %v5437_v60 = vpop.f32.mrb[48].mxu1 }
 0x4ca   : > { %v2431_v44 = vadd.f32 %v5437_v60, %v7852_v26  ;;  %v2298_v37 = vpop.f32.mrb[49].mxu1 }
 0x4cb   : > { %v2429_v18 = vadd.f32 %v7852_v26, %v2298_v37  ;;  %v5438_v51 = vpop.f32.mrb[50].mxu1 }
 0x4cc   : > { %v5002_v39 = vmul.f32 -1.442695, %v2431_v44  ;;  %v2432_v8 = vadd.f32 %v5438_v51, %v7852_v26  ;;  %v2301_v54 = vpop.f32.mrb[51].mxu1 }
 0x4cd   : > { %v5000_v32 = vmul.f32 -1.442695, %v2429_v18  ;;  %v2430_v2 = vadd.f32 %v7852_v26, %v2301_v54 }
 0x4ce   : > { %5990 = vpow2.f32 %v5002_v39  ;;  %v5003_v11 = vmul.f32 -1.442695, %v2432_v8 }
 0x4cf   : > { %5992 = vpow2.f32 %v5000_v32  ;;  %v5001_v61 = vmul.f32 -1.442695, %v2430_v2 }
 0x4d0   : > { %5994 = vpow2.f32 %v5003_v11 }
 0x4d1   : > { %5996 = vpow2.f32 %v5001_v61 }
 0x4d2   : > { %v5441_v0 = vpop.f32.mrb[52].mxu1 }
 0x4d3   : > { %v2435_v31 = vadd.f32 %v5441_v0, %v7852_v26  ;;  %v2314_v4 = vpop.f32.mrb[53].mxu1 }
 0x4d4   : > { %v2433_v5 = vadd.f32 %v7852_v26, %v2314_v4  ;;  %v5442_v42 = vpop.f32.mrb[54].mxu1 }
 0x4d5   : > { %v5006_v21 = vmul.f32 -1.442695, %v2435_v31  ;;  %v2436_v13 = vadd.f32 %v5442_v42, %v7852_v26  ;;  %v2317_v52 = vpop.f32.mrb[55].mxu1 }
 0x4d6   : > { %v5004_v49 = vmul.f32 -1.442695, %v2433_v5  ;;  %v2434_v36 = vadd.f32 %v7852_v26, %v2317_v52 }
 0x4d7   : > { %5998 = vpow2.f32 %v5006_v21  ;;  %v5007_v50 = vmul.f32 -1.442695, %v2436_v13 }
 0x4d8   : > { %v5991_v3 = vpop.eup %5990  ;;  %6000 = vpow2.f32 %v5004_v49  ;;  %v5005_v1 = vmul.f32 -1.442695, %v2434_v36 }
 0x4d9   : > { %v5993_v35 = vpop.eup %5992  ;;  %v2559_v25 = vadd.f32 1.0, %v5991_v3 }
 0x4da   : > { %v5995_v33 = vpop.eup %5994  ;;  %v2557_v27 = vadd.f32 1.0, %v5993_v35 }
 0x4db   : > { %v5997_v46 = vpop.eup %5996  ;;  %6002 = vrcp.f32 %v2559_v25  ;;  %v2560_v59 = vadd.f32 1.0, %v5995_v33 }
 0x4dc   : > { %6004 = vrcp.f32 %v2557_v27  ;;  %v2558_v55 = vadd.f32 1.0, %v5997_v46  ;;  %v5445_v28 = vpop.f32.mrb[56].mxu1 }
 0x4dd   : > { %6006 = vrcp.f32 %v2560_v59  ;;  %v2439_v6 = vadd.f32 %v5445_v28, %v7852_v26  ;;  %v2330_v40 = vpop.f32.mrb[57].mxu1 }
 0x4de   : > { %6008 = vrcp.f32 %v2558_v55  ;;  %v2437_v45 = vadd.f32 %v7852_v26, %v2330_v40  ;;  %v5446_v10 = vpop.f32.mrb[58].mxu1 }
 0x4df   : > { %6010 = vpow2.f32 %v5007_v50  ;;  %v5010_v29 = vmul.f32 -1.442695, %v2439_v6  ;;  %v2440_v22 = vadd.f32 %v5446_v10, %v7852_v26  ;;  %v2333_v56 = vpop.f32.mrb[59].mxu1 }
 0x4e0   : > { %6012 = vpow2.f32 %v5005_v1  ;;  %v5008_v15 = vmul.f32 -1.442695, %v2437_v45  ;;  %v2438_v48 = vadd.f32 %v7852_v26, %v2333_v56 }
 0x4e1   : > { %6014 = vpow2.f32 %v5010_v29  ;;  %v5011_v30 = vmul.f32 -1.442695, %v2440_v22  ;;  %v5999_v58 = vpop.eup %5998 }
 0x4e2   : > { %6016 = vpow2.f32 %v5008_v15  ;;  %v5009_v19 = vmul.f32 -1.442695, %v2438_v48  ;;  %v6001_v57 = vpop.eup %6000  ;;  %v2563_v53 = vadd.f32 1.0, %v5999_v58 }
 0x4e3   : > { %6018 = vpow2.f32 %v5011_v30  ;;  %v2561_v17 = vadd.f32 1.0, %v6001_v57 }
 0x4e4   : > { %6020 = vpow2.f32 %v5009_v19 }
 0x4e5   : > { %v6003_v34 = vpop.eup %6002  ;;  %6022 = vrcp.f32 %v2563_v53 }
 0x4e6   : > { %v6005_v43 = vpop.eup %6004  ;;  %6024 = vrcp.f32 %v2561_v17 }
 0x4e7   : > { %v6007_v12 = vpop.eup %6006  ;;  %v5449_v16 = vpop.f32.mrb[60].mxu1 }
 0x4e8   : > { %v6009_v38 = vpop.eup %6008  ;;  %v2654_v14 = vpack.c.bf16 %v6007_v12, %v6003_v34  ;;  %v2443_v20 = vadd.f32 %v5449_v16, %v7852_v26  ;;  %v2346_v24 = vpop.f32.mrb[61].mxu1 }
 0x4e9   : > { %v6011_v47 = vpop.eup %6010  ;;  %v2653_v63 = vpack.c.bf16 %v6009_v38, %v6005_v43  ;;  %v2441_v60 = vadd.f32 %v7852_v26, %v2346_v24  ;;  %v5450_v44 = vpop.f32.mrb[62].mxu1 }
 0x4ea   : > { %v6013_v41 = vpop.eup %6012  ;;  %v2564_v9 = vadd.f32 1.0, %v6011_v47  ;;  %v5014_v18 = vmul.f32 -1.442695, %v2443_v20  ;;  %v2444_v51 = vadd.f32 %v5450_v44, %v7852_v26  ;;  %v2349_v39 = vpop.f32.mrb[63].mxu1 }
 0x4eb   : > { %v2562_v62 = vadd.f32 1.0, %v6013_v41  ;;  %5471 = vmatprep.mubr.msk.bf16.mxu0 %vm2215_vm3, %v2653_v63  ;;  %v6015_v37 = vpop.eup %6014  ;;  %v2442_v32 = vadd.f32 %v7852_v26, %v2349_v39  ;;  %v5012_v31 = vmul.f32 -1.442695, %v2441_v60 }
 0x4ec   : > { %6026 = vrcp.f32 %v2564_v9  ;;  %5472 = vmatmul.mubr.msk.bf16.vlgmr.msra.gmra.mrb[32].mxu0 %vm2215_vm3, %v2654_v14  ;;  %v6017_v8 = vpop.eup %6016  ;;  %v2567_v54 = vadd.f32 1.0, %v6015_v37  ;;  %v5015_v5 = vmul.f32 -1.442695, %v2444_v51 }
 0x4ed   : > { %6028 = vrcp.f32 %v2562_v62  ;;  %v6019_v2 = vpop.eup %6018  ;;  %v2565_v11 = vadd.f32 1.0, %v6017_v8  ;;  %v5013_v42 = vmul.f32 -1.442695, %v2442_v32 }
 0x4ee   : > { %6030 = vpow2.f32 %v5014_v18  ;;  %v6021_v61 = vpop.eup %6020  ;;  %v2568_v0 = vadd.f32 1.0, %v6019_v2 }
 0x4ef   : > { %6032 = vrcp.f32 %v2567_v54  ;;  %v2566_v4 = vadd.f32 1.0, %v6021_v61  ;;  %v6023_v3 = vpop.eup %6022 }
 0x4f0   : > { %6034 = vrcp.f32 %v2565_v11  ;;  %v6025_v35 = vpop.eup %6024 }
 0x4f1   : > { %6036 = vrcp.f32 %v2568_v0 }
 0x4f2   : > { %6038 = vrcp.f32 %v2566_v4  ;;  %v5453_v21 = vpop.f32.mrb[64].mxu1 }
 0x4f3   : > { %6040 = vpow2.f32 %v5012_v31  ;;  %v2447_v13 = vadd.f32 %v5453_v21, %v7852_v26  ;;  %v2362_v52 = vpop.f32.mrb[65].mxu1 }
 0x4f4   : > { %6042 = vpow2.f32 %v5015_v5  ;;  %v2445_v49 = vadd.f32 %v7852_v26, %v2362_v52  ;;  %v5454_v36 = vpop.f32.mrb[66].mxu1 }
 0x4f5   : > { %6044 = vpow2.f32 %v5013_v42  ;;  %v5018_v25 = vmul.f32 -1.442695, %v2447_v13  ;;  %v2448_v33 = vadd.f32 %v5454_v36, %v7852_v26  ;;  %v2365_v27 = vpop.f32.mrb[67].mxu1 }
 0x4f6   : > { %v6027_v46 = vpop.eup %6026  ;;  %v5016_v59 = vmul.f32 -1.442695, %v2445_v49  ;;  %v2446_v50 = vadd.f32 %v7852_v26, %v2365_v27 }
 0x4f7   : > { %v6029_v55 = vpop.eup %6028  ;;  %6046 = vpow2.f32 %v5018_v25  ;;  %v5019_v1 = vmul.f32 -1.442695, %v2448_v33  ;;  %v2656_v28 = vpack.c.bf16 %v6027_v46, %v6023_v3 }
 0x4f8   : > { %v6031_v6 = vpop.eup %6030  ;;  %6048 = vpow2.f32 %v5016_v59  ;;  %v5017_v40 = vmul.f32 -1.442695, %v2446_v50  ;;  %v2655_v45 = vpack.c.bf16 %v6029_v55, %v6025_v35 }
 0x4f9   : > { %v6033_v10 = vpop.eup %6032  ;;  %6050 = vpow2.f32 %v5019_v1  ;;  %v2571_v22 = vadd.f32 1.0, %v6031_v6 }
 0x4fa   : > { %v6035_v29 = vpop.eup %6034  ;;  %6052 = vpow2.f32 %v5017_v40  ;;  %v5457_v56 = vpop.f32.mrb[68].mxu1  ;;  %5475 = vmatprep.mubr.msk.bf16.mxu0 %vm2215_vm3, %v2655_v45 }
 0x4fb   : > { %v6037_v15 = vpop.eup %6036  ;;  %v2451_v48 = vadd.f32 %v5457_v56, %v7852_v26  ;;  %v2378_v30 = vpop.f32.mrb[69].mxu1  ;;  %5476 = vmatmul.mubr.msk.bf16.gmra.mrb[36].mxu0 %vm2215_vm3, %v2656_v28  ;;  %6054 = vrcp.f32 %v2571_v22 }
 0x4fc   : > { %v6039_v58 = vpop.eup %6038  ;;  %v2449_v19 = vadd.f32 %v7852_v26, %v2378_v30  ;;  %v5458_v57 = vpop.f32.mrb[70].mxu1  ;;  %v2658_v34 = vpack.c.bf16 %v6037_v15, %v6033_v10 }
 0x4fd   : > { %v6041_v43 = vpop.eup %6040  ;;  %v5022_v53 = vmul.f32 -1.442695, %v2451_v48  ;;  %v2381_v12 = vpop.f32.mrb[71].mxu1  ;;  %v2657_v17 = vpack.c.bf16 %v6039_v58, %v6035_v29  ;;  %v2452_v9 = vadd.f32 %v5458_v57, %v7852_v26 }
 0x4fe   : > { %v6043_v38 = vpop.eup %6042  ;;  %v2569_v14 = vadd.f32 1.0, %v6041_v43  ;;  %v5020_v63 = vmul.f32 -1.442695, %v2449_v19  ;;  %v2450_v24 = vadd.f32 %v7852_v26, %v2381_v12 }
 0x4ff   : > { %v6045_v47 = vpop.eup %6044  ;;  %v2572_v16 = vadd.f32 1.0, %v6043_v38  ;;  %6056 = vpow2.f32 %v5022_v53  ;;  %5479 = vmatprep.mubr.msk.bf16.mxu0 %vm2215_vm3, %v2657_v17  ;;  %v5023_v8 = vmul.f32 -1.442695, %v2452_v9 }
 0x500   : > { %6058 = vrcp.f32 %v2569_v14  ;;  %v2570_v41 = vadd.f32 1.0, %v6045_v47  ;;  %v5021_v11 = vmul.f32 -1.442695, %v2450_v24 }
 0x501   : > { %v6047_v20 = vpop.eup %6046  ;;  %6060 = vrcp.f32 %v2572_v16 }
 0x502   : > { %v6049_v62 = vpop.eup %6048  ;;  %6062 = vrcp.f32 %v2570_v41  ;;  %v2575_v60 = vadd.f32 1.0, %v6047_v20 }
 0x503   : > { %v6051_v44 = vpop.eup %6050  ;;  %v2573_v37 = vadd.f32 1.0, %v6049_v62  ;;  %6064 = vpow2.f32 %v5020_v63  ;;  %v5461_v18 = vpop.f32.mrb[72].mxu1  ;;  %5480 = vmatmul.mubr.msk.bf16.gmra.mrb[40].mxu0 %vm2215_vm3, %v2658_v34 }
 0x504   : > { %v6053_v51 = vpop.eup %6052  ;;  %6066 = vrcp.f32 %v2575_v60  ;;  %v2576_v39 = vadd.f32 1.0, %v6051_v44  ;;  %v2455_v54 = vadd.f32 %v5461_v18, %v7852_v26  ;;  %v2394_v32 = vpop.f32.mrb[73].mxu1 }
 0x505   : > { %6068 = vrcp.f32 %v2573_v37  ;;  %v2574_v2 = vadd.f32 1.0, %v6053_v51  ;;  %v2453_v61 = vadd.f32 %v7852_v26, %v2394_v32  ;;  %v5462_v0 = vpop.f32.mrb[74].mxu1  ;;  %v6055_v13 = vpop.eup %6054 }
 0x506   : > { %6070 = vrcp.f32 %v2576_v39  ;;  %v5026_v31 = vmul.f32 -1.442695, %v2455_v54  ;;  %v2456_v4 = vadd.f32 %v5462_v0, %v7852_v26  ;;  %v2397_v5 = vpop.f32.mrb[75].mxu1 }
 0x507   : > { %6072 = vrcp.f32 %v2574_v2  ;;  %v5024_v42 = vmul.f32 -1.442695, %v2453_v61  ;;  %v2454_v21 = vadd.f32 %v7852_v26, %v2397_v5 }
 0x508   : > { %6074 = vpow2.f32 %v5023_v8  ;;  %v5027_v3 = vmul.f32 -1.442695, %v2456_v4 }
 0x509   : > { %v6057_v52 = vpop.eup %6056  ;;  %6076 = vpow2.f32 %v5021_v11  ;;  %v5025_v36 = vmul.f32 -1.442695, %v2454_v21 }
 0x50a   : > { %v6059_v49 = vpop.eup %6058  ;;  %6078 = vpow2.f32 %v5026_v31  ;;  %v2579_v25 = vadd.f32 1.0, %v6057_v52 }
 0x50b   : > { %v6061_v35 = vpop.eup %6060  ;;  %6080 = vpow2.f32 %v5024_v42  ;;  %v5465_v33 = vpop.f32.mrb[76].mxu1 }
 0x50c   : > { %v6063_v27 = vpop.eup %6062  ;;  %v2459_v46 = vadd.f32 %v5465_v33, %v7852_v26  ;;  %v2410_v59 = vpop.f32.mrb[77].mxu1  ;;  %v2660_v50 = vpack.c.bf16 %v6061_v35, %v6055_v13  ;;  %6082 = vpow2.f32 %v5027_v3 }
 0x50d   : > { %v6065_v55 = vpop.eup %6064  ;;  %v2659_v1 = vpack.c.bf16 %v6063_v27, %v6059_v49  ;;  %v2457_v28 = vadd.f32 %v7852_v26, %v2410_v59  ;;  %v5466_v6 = vpop.f32.mrb[78].mxu1  ;;  %6084 = vpow2.f32 %v5025_v36 }
 0x50e   : > { %v6067_v40 = vpop.eup %6066  ;;  %v2577_v45 = vadd.f32 1.0, %v6065_v55  ;;  %v5030_v10 = vmul.f32 -1.442695, %v2459_v46  ;;  %v2460_v29 = vadd.f32 %v5466_v6, %v7852_v26  ;;  %v2413_v22 = vpop.f32.mrb[79].mxu1  ;;  %6086 = vrcp.f32 %v2579_v25 }
 0x50f   : > { %v6069_v56 = vpop.eup %6068  ;;  %5483 = vmatprep.mubr.msk.bf16.mxu0 %vm2215_vm3, %v2659_v1  ;;  %v5028_v15 = vmul.f32 -1.442695, %v2457_v28  ;;  %v2458_v48 = vadd.f32 %v7852_v26, %v2413_v22  ;;  %v2896_v25 = vsub.s32 3, %v9099_v23 }
 0x510   : > { %v6071_v30 = vpop.eup %6070  ;;  %6088 = vrcp.f32 %v2577_v45  ;;  %5484 = vmatmul.mubr.msk.bf16.gmra.mrb[44].mxu0 %vm2215_vm3, %v2660_v50  ;;  %v5031_v58 = vmul.f32 -1.442695, %v2460_v29 }
 0x511   : > { %v6073_v19 = vpop.eup %6072  ;;  %6090 = vpow2.f32 %v5030_v10  ;;  %v5029_v57 = vmul.f32 -1.442695, %v2458_v48  ;;  %v2662_v34 = vpack.c.bf16 %v6071_v30, %v6067_v40  ;;  %v7904_v33 = vrot.slane %v7849_v7, %v2896_v25  ;;  %v5666_v48 = vld [vmem:[%s8945_s2 + $0x68] sm:$0xff]   ;;  %v5667_v30 = vld [vmem:[%s8945_s2 + $0x70] sm:$0xff]  }
 0x512   : > { %v6075_v43 = vpop.eup %6074  ;;  %6092 = vpow2.f32 %v5028_v15  ;;  %v2661_v53 = vpack.c.bf16 %v6073_v19, %v6069_v56  ;;  %5503 = vmatprep.subr.bf16.mxu1 %v5666_v48 }
 0x513   : > { %v6077_v12 = vpop.eup %6076  ;;  %v2580_v17 = vadd.f32 1.0, %v6075_v43  ;;  %6094 = vpow2.f32 %v5031_v58  ;;  %5504 = vmatpush3.bf16.msra.mxu1 %v5666_v48 }
 0x514   : > { %v6079_v38 = vpop.eup %6078  ;;  %v2578_v14 = vadd.f32 1.0, %v6077_v12  ;;  %6096 = vpow2.f32 %v5029_v57  ;;  %5487 = vmatprep.mubr.msk.bf16.mxu0 %vm2215_vm3, %v2661_v53  ;;  %5505 = vmatprep.subr.bf16.mxu1 %v5667_v30 }
 0x515   : > { %v6081_v26 = vpop.eup %6080  ;;  %6098 = vrcp.f32 %v2580_v17  ;;  %v2583_v47 = vadd.f32 1.0, %v6079_v38 }
 0x516   : > { %6100 = vrcp.f32 %v2578_v14  ;;  %v2581_v16 = vadd.f32 1.0, %v6081_v26  ;;  %v6083_v63 = vpop.eup %6082 }
 0x517   : > { %v6085_v41 = vpop.eup %6084  ;;  %6102 = vrcp.f32 %v2583_v47  ;;  %v2584_v9 = vadd.f32 1.0, %v6083_v63  ;;  %5506 = vmatpush3.bf16.msra.mxu1 %v5667_v30 }
 0x518   : > { %5488 = vmatmul.mubr.msk.bf16.gmra.mrb[48].mxu0 %vm2215_vm3, %v2662_v34  ;;  %v6087_v20 = vpop.eup %6086  ;;  %6104 = vrcp.f32 %v2581_v16  ;;  %v2582_v24 = vadd.f32 1.0, %v6085_v41 }
 0x519   : > { %6106 = vrcp.f32 %v2584_v9 }
 0x51a   : > { %v6089_v62 = vpop.eup %6088  ;;  %6108 = vrcp.f32 %v2582_v24 }
 0x51b   : > { %v6091_v60 = vpop.eup %6090 }
 0x51c   : > { %v6093_v44 = vpop.eup %6092  ;;  %v2587_v37 = vadd.f32 1.0, %v6091_v60 }
 0x51d   : > { %v6095_v18 = vpop.eup %6094  ;;  %v2585_v51 = vadd.f32 1.0, %v6093_v44 }
 0x51e   : > { %v6097_v39 = vpop.eup %6096  ;;  %6110 = vrcp.f32 %v2587_v37  ;;  %v2588_v8 = vadd.f32 1.0, %v6095_v18 }
 0x51f   : > { %v6099_v54 = vpop.eup %6098  ;;  %6112 = vrcp.f32 %v2585_v51  ;;  %v2586_v32 = vadd.f32 1.0, %v6097_v39 }
 0x520   : > { %v6101_v2 = vpop.eup %6100  ;;  %6114 = vrcp.f32 %v2588_v8  ;;  %v2664_v11 = vpack.c.bf16 %v6099_v54, %v6087_v20 }
 0x521   : > { %6116 = vrcp.f32 %v2586_v32  ;;  %v2663_v61 = vpack.c.bf16 %v6101_v2, %v6089_v62  ;;  %v6103_v0 = vpop.eup %6102 }
 0x522   : > { %v6105_v31 = vpop.eup %6104 }
 0x523   : > { %5491 = vmatprep.mubr.msk.bf16.mxu0 %vm2215_vm3, %v2663_v61  ;;  %v6107_v4 = vpop.eup %6106 }
 0x524   : > { %5492 = vmatmul.mubr.msk.bf16.gmra.mrb[52].mxu0 %vm2215_vm3, %v2664_v11  ;;  %v6109_v5 = vpop.eup %6108  ;;  %v2666_v42 = vpack.c.bf16 %v6107_v4, %v6103_v0 }
 0x525   : > { %v2665_v21 = vpack.c.bf16 %v6109_v5, %v6105_v31 }
 0x527   : > { %5495 = vmatprep.mubr.msk.bf16.mxu0 %vm2215_vm3, %v2665_v21 }
 0x528   : > { %v6111_v13 = vpop.eup %6110 }
 0x529   : > { %v6113_v52 = vpop.eup %6112 }
 0x52a   : > { %v6115_v3 = vpop.eup %6114 }
 0x52b   : > { %v6117_v49 = vpop.eup %6116  ;;  %v2668_v36 = vpack.c.bf16 %v6115_v3, %v6111_v13 }
 0x52c   : > { %5496 = vmatmul.mubr.msk.bf16.gmra.mrb[56].mxu0 %vm2215_vm3, %v2666_v42  ;;  %v2667_v35 = vpack.c.bf16 %v6117_v49, %v6113_v52 }
 0x52e   : > { %5499 = vmatprep.mubr.msk.bf16.mxu0 %vm2215_vm3, %v2667_v35 }
 0x534   : > { %5500 = vmatmul.mubr.msk.bf16.gmra.mrb[60].mxu0 %vm2215_vm3, %v2668_v36 }
 0x5bf   : > { %v5473_v27 = vpop.f32.mrb[32].mxu0 }
 0x5c0   : > { %v7907_v46 = vadd.f32 %v5473_v27, %v7904_v33  ;;  %v2767_v59 = vpop.f32.mrb[33].mxu0 }
 0x5c1   : > { %v7910_v50 = vadd.f32 %v7904_v33, %v2767_v59  ;;  %v5474_v55 = vpop.f32.mrb[34].mxu0 }
 0x5c2   : > { %v2932_v1 = vmin.f32 %v7907_v46, 20.0  ;;  %v7914_v28 = vadd.f32 %v5474_v55, %v7904_v33  ;;  %v2770_v6 = vpop.f32.mrb[35].mxu0 }
 0x5c3   : > { %v2930_v40 = vmin.f32 %v7910_v50, 20.0  ;;  %v7918_v7 = vadd.f32 %v7904_v33, %v2770_v6 }
 0x5c4   : > { %v2966_v45 = vmul.f32 1.442695, %v2932_v1  ;;  %v2933_v10 = vmin.f32 %v7914_v28, 20.0 }
 0x5c5   : > { %v2962_v29 = vmul.f32 1.442695, %v2930_v40  ;;  %v2931_v22 = vmin.f32 %v7918_v7, 20.0 }
 0x5c6   : > { %6118 = vpow2.f32 %v2966_v45  ;;  %v2968_v56 = vmul.f32 1.442695, %v2933_v10 }
 0x5c7   : > { %6120 = vpow2.f32 %v2962_v29  ;;  %v2964_v15 = vmul.f32 1.442695, %v2931_v22 }
 0x5c8   : > { %6122 = vpow2.f32 %v2968_v56 }
 0x5c9   : > { %6124 = vpow2.f32 %v2964_v15 }
 0x5ce   : > { %v5477_v58 = vpop.f32.mrb[36].mxu0 }
 0x5cf   : > { %v7929_v19 = vadd.f32 %v5477_v58, %v7904_v33  ;;  %v2783_v57 = vpop.f32.mrb[37].mxu0 }
 0x5d0   : > { %v6119_v34 = vpop.eup %6118  ;;  %v7932_v43 = vadd.f32 %v7904_v33, %v2783_v57  ;;  %v5478_v53 = vpop.f32.mrb[38].mxu0 }
 0x5d1   : > { %v6121_v12 = vpop.eup %6120  ;;  %v3028_v17 = vadd.f32 1.0, %v6119_v34  ;;  %v2936_v38 = vmin.f32 %v7929_v19, 20.0  ;;  %v7936_v14 = vadd.f32 %v5478_v53, %v7904_v33  ;;  %v2786_v26 = vpop.f32.mrb[39].mxu0 }
 0x5d2   : > { %v6123_v47 = vpop.eup %6122  ;;  %v2934_v16 = vmin.f32 %v7932_v43, 20.0  ;;  %v7940_v63 = vadd.f32 %v7904_v33, %v2786_v26  ;;  %v3026_v9 = vadd.f32 1.0, %v6121_v12 }
 0x5d3   : > { %v6125_v41 = vpop.eup %6124  ;;  %v2974_v20 = vmul.f32 1.442695, %v2936_v38  ;;  %v3060_v62 = vmul.f32 %v3028_v17, %v3028_v17  ;;  %v2937_v44 = vmin.f32 %v7936_v14, 20.0  ;;  %v3029_v37 = vadd.f32 1.0, %v6123_v47 }
 0x5d4   : > { %v2970_v24 = vmul.f32 1.442695, %v2934_v16  ;;  %v3027_v60 = vadd.f32 1.0, %v6125_v41  ;;  %v2935_v18 = vmin.f32 %v7940_v63, 20.0  ;;  %v3058_v39 = vmul.f32 %v3026_v9, %v3026_v9 }
 0x5d5   : > { %6126 = vpow2.f32 %v2974_v20  ;;  %v3156_v32 = vadd.f32 1.0, %v3060_v62  ;;  %v2976_v11 = vmul.f32 1.442695, %v2937_v44  ;;  %v3061_v0 = vmul.f32 %v3029_v37, %v3029_v37 }
 0x5d6   : > { %v5481_v51 = vpop.f32.mrb[40].mxu0  ;;  %6128 = vpow2.f32 %v2970_v24  ;;  %v3059_v2 = vmul.f32 %v3027_v60, %v3027_v60  ;;  %v2972_v31 = vmul.f32 1.442695, %v2935_v18  ;;  %v3154_v42 = vadd.f32 1.0, %v3058_v39 }
 0x5d7   : > { %v2799_v8 = vpop.f32.mrb[41].mxu0  ;;  %v7945_v4 = vadd.f32 %v5481_v51, %v7904_v33  ;;  %6130 = vpow2.f32 %v2976_v11  ;;  %v3157_v35 = vadd.f32 1.0, %v3061_v0  ;;  %v5052_v57 = vadd.f32 -1.0, %v3060_v62 }
 0x5d8   : > { %v5482_v54 = vpop.f32.mrb[42].mxu0  ;;  %v7948_v5 = vadd.f32 %v7904_v33, %v2799_v8  ;;  %6132 = vrcp.f32 %v3156_v32  ;;  %v3155_v3 = vadd.f32 1.0, %v3059_v2  ;;  %v5050_v34 = vadd.f32 -1.0, %v3058_v39 }
 0x5d9   : > { %v2802_v61 = vpop.f32.mrb[43].mxu0  ;;  %v7951_v21 = vadd.f32 %v5482_v54, %v7904_v33  ;;  %v2940_v13 = vmin.f32 %v7945_v4, 20.0  ;;  %6134 = vpow2.f32 %v2972_v31  ;;  %v5053_v16 = vadd.f32 -1.0, %v3061_v0 }
 0x5da   : > { %v2938_v52 = vmin.f32 %v7948_v5, 20.0  ;;  %v7957_v36 = vadd.f32 %v7904_v33, %v2802_v61  ;;  %6136 = vrcp.f32 %v3154_v42  ;;  %v5051_v41 = vadd.f32 -1.0, %v3059_v2 }
 0x5db   : > { %v2941_v49 = vmin.f32 %v7951_v21, 20.0  ;;  %v2982_v25 = vmul.f32 1.442695, %v2940_v13  ;;  %v3124_v62 = vmul.f32 %v5052_v57, %v7907_v46  ;;  %v3122_v37 = vmul.f32 %v5050_v34, %v7910_v50 }
 0x5dc   : > { %v2978_v59 = vmul.f32 1.442695, %v2938_v52  ;;  %v2939_v40 = vmin.f32 %v7957_v36, 20.0  ;;  %v3125_v31 = vmul.f32 %v5053_v16, %v7914_v28  ;;  %v3123_v46 = vmul.f32 %v5051_v41, %v7918_v7 }
 0x5dd   : > { %6138 = vpow2.f32 %v2982_v25  ;;  %v2984_v55 = vmul.f32 1.442695, %v2941_v49 }
 0x5de   : > { %6140 = vrcp.f32 %v3155_v3  ;;  %v2980_v48 = vmul.f32 1.442695, %v2939_v40 }
 0x5df   : > { %v6127_v27 = vpop.eup %6126  ;;  %6142 = vrcp.f32 %v3157_v35 }
 0x5e0   : > { %v6129_v1 = vpop.eup %6128  ;;  %v3032_v6 = vadd.f32 1.0, %v6127_v27  ;;  %6144 = vpow2.f32 %v2978_v59 }
 0x5e1   : > { %v3030_v10 = vadd.f32 1.0, %v6129_v1  ;;  %6146 = vpow2.f32 %v2984_v55  ;;  %v6131_v56 = vpop.eup %6130 }
 0x5e2   : > { %v3064_v15 = vmul.f32 %v3032_v6, %v3032_v6  ;;  %v6133_v17 = vpop.eup %6132  ;;  %v3033_v38 = vadd.f32 1.0, %v6131_v56  ;;  %6148 = vpow2.f32 %v2980_v48 }
 0x5e3   : > { %v5485_v45 = vpop.f32.mrb[44].mxu0  ;;  %v6135_v47 = vpop.eup %6134  ;;  %v3062_v9 = vmul.f32 %v3030_v10, %v3030_v10  ;;  %v7977_v0 = vmul.f32 %v6133_v17, %v3124_v62 }
 0x5e4   : > { %v7961_v29 = vadd.f32 %v5485_v45, %v7904_v33  ;;  %v2815_v22 = vpop.f32.mrb[45].mxu0  ;;  %v6137_v24 = vpop.eup %6136  ;;  %v3160_v60 = vadd.f32 1.0, %v3064_v15  ;;  %v3065_v8 = vmul.f32 %v3033_v38, %v3033_v38  ;;  %v3031_v54 = vadd.f32 1.0, %v6135_v47 }
 0x5e5   : > { %v7964_v30 = vadd.f32 %v7904_v33, %v2815_v22  ;;  %v5486_v58 = vpop.f32.mrb[46].mxu0  ;;  %v3158_v42 = vadd.f32 1.0, %v3062_v9  ;;  %v7981_v52 = vmul.f32 %v6137_v24, %v3122_v37  ;;  %v5056_v3 = vadd.f32 -1.0, %v3064_v15 }
 0x5e6   : > { %v2944_v53 = vmin.f32 %v7961_v29, 20.0  ;;  %v2818_v12 = vpop.f32.mrb[47].mxu0  ;;  %v7969_v20 = vadd.f32 %v5486_v58, %v7904_v33  ;;  %6150 = vrcp.f32 %v3160_v60  ;;  %v5054_v59 = vadd.f32 -1.0, %v3062_v9 }
 0x5e7   : > { %v2942_v26 = vmin.f32 %v7964_v30, 20.0  ;;  %v6139_v44 = vpop.eup %6138  ;;  %v7974_v51 = vadd.f32 %v7904_v33, %v2818_v12  ;;  %v5057_v28 = vadd.f32 -1.0, %v3065_v8  ;;  %v3063_v6 = vmul.f32 %v3031_v54, %v3031_v54 }
 0x5e8   : > { %v2990_v18 = vmul.f32 1.442695, %v2944_v53  ;;  %v6141_v39 = vpop.eup %6140  ;;  %v2945_v2 = vmin.f32 %v7969_v20, 20.0  ;;  %v3036_v49 = vadd.f32 1.0, %v6139_v44  ;;  %v3128_v22 = vmul.f32 %v5056_v3, %v7929_v19 }
 0x5e9   : > { %v2986_v32 = vmul.f32 1.442695, %v2942_v26  ;;  %v6143_v61 = vpop.eup %6142  ;;  %v7983_v27 = vmul.f32 %v6141_v39, %v3123_v46  ;;  %v2943_v55 = vmin.f32 %v7974_v51, 20.0  ;;  %v3126_v58 = vmul.f32 %v5054_v59, %v7932_v43 }
 0x5ea   : > { %v6145_v13 = vpop.eup %6144  ;;  %6152 = vpow2.f32 %v2990_v18  ;;  %v2992_v7 = vmul.f32 1.442695, %v2945_v2  ;;  %v7986_v40 = vmul.f32 %v6143_v61, %v3125_v31  ;;  %v3068_v56 = vmul.f32 %v3036_v49, %v3036_v49 }
 0x5eb   : > { %v5489_v11 = vpop.f32.mrb[48].mxu0  ;;  %v6147_v25 = vpop.eup %6146  ;;  %6154 = vpow2.f32 %v2986_v32  ;;  %v3034_v45 = vadd.f32 1.0, %v6145_v13  ;;  %v2988_v48 = vmul.f32 1.442695, %v2943_v55  ;;  %v3161_v57 = vadd.f32 1.0, %v3065_v8 }
 0x5ec   : > { %v2831_v50 = vpop.f32.mrb[49].mxu0  ;;  %6156 = vrcp.f32 %v3158_v42  ;;  %v7989_v10 = vadd.f32 %v5489_v11, %v7904_v33  ;;  %v3037_v15 = vadd.f32 1.0, %v6147_v25  ;;  %v3250_v34 = vmul.f32 %v7981_v52, %v7981_v52  ;;  %v6149_v12 = vpop.eup %6148 }
 0x5ed   : > { %v5490_v35 = vpop.f32.mrb[50].mxu0  ;;  %v3251_v53 = vmul.f32 %v7983_v27, %v7983_v27  ;;  %v7998_v17 = vmul.f32 %v5057_v28, %v7936_v14  ;;  %v5055_v38 = vadd.f32 -1.0, %v3063_v6  ;;  %v3159_v26 = vadd.f32 1.0, %v3063_v6 }
 0x5ee   : > { %v2834_v1 = vpop.f32.mrb[51].mxu0  ;;  %6158 = vpow2.f32 %v2992_v7  ;;  %v3066_v19 = vmul.f32 %v3034_v45, %v3034_v45  ;;  %v2948_v47 = vmin.f32 %v7989_v10, 20.0  ;;  %v8002_v16 = vadd.f32 %v7904_v33, %v2831_v50 }
 0x5ef   : > { %v8005_v43 = vadd.f32 %v5490_v35, %v7904_v33  ;;  %v3164_v41 = vadd.f32 1.0, %v3068_v56  ;;  %v3069_v9 = vmul.f32 %v3037_v15, %v3037_v15  ;;  %6160 = vpow2.f32 %v2988_v48 }
 0x5f0   : > { %v8008_v24 = vadd.f32 %v7904_v33, %v2834_v1  ;;  %6162 = vrcp.f32 %v3161_v57  ;;  %v3035_v14 = vadd.f32 1.0, %v6149_v12  ;;  %v2998_v60 = vmul.f32 1.442695, %v2948_v47  ;;  %v6151_v62 = vpop.eup %6150 }
 0x5f1   : > { %v2946_v44 = vmin.f32 %v8002_v16, 20.0  ;;  %v8012_v37 = vmul.f32 %v5055_v38, %v7940_v63  ;;  %v2949_v18 = vmin.f32 %v8005_v43, 20.0  ;;  %v3282_v8 = vsel %vm2215_vm3, %v3250_v34, 0.0 }
 0x5f2   : > { %v2947_v39 = vmin.f32 %v8008_v24, 20.0  ;;  %6164 = vrcp.f32 %v3159_v26  ;;  %v5060_v2 = vadd.f32 -1.0, %v3068_v56  ;;  %v3162_v11 = vadd.f32 1.0, %v3066_v19  ;;  %3283 = vadd.xlane.f32.xlu0 %v3282_v8 }
 0x5f3   : > { %v2994_v61 = vmul.f32 1.442695, %v2946_v44  ;;  %6166 = vrcp.f32 %v3164_v41  ;;  %v5058_v42 = vadd.f32 -1.0, %v3066_v19  ;;  %v5061_v50 = vadd.f32 -1.0, %v3069_v9 }
 0x5f4   : > { %v6153_v32 = vpop.eup %6152  ;;  %v3165_v63 = vadd.f32 1.0, %v3069_v9  ;;  %v8017_v49 = vmul.f32 %v6151_v62, %v3128_v22  ;;  %v3067_v35 = vmul.f32 %v3035_v14, %v3035_v14  ;;  %6168 = vpow2.f32 %v2998_v60 }
 0x5f5   : > { %v6155_v46 = vpop.eup %6154  ;;  %v2996_v25 = vmul.f32 1.442695, %v2947_v39  ;;  %v3040_v55 = vadd.f32 1.0, %v6153_v32  ;;  %6170 = vpow2.f32 %v2994_v61  ;;  %v3000_v1 = vmul.f32 1.442695, %v2949_v18 }
 0x5f6   : > { %v6157_v3 = vpop.eup %6156  ;;  %v3285_v28 = vsel %vm2215_vm3, %v3251_v53, 0.0  ;;  %v8021_v6 = vmul.f32 %v5060_v2, %v7945_v4  ;;  %6172 = vrcp.f32 %v3162_v11  ;;  %v3038_v7 = vadd.f32 1.0, %v6155_v46 }
 0x5f7   : > { %v5493_v54 = vpop.f32.mrb[52].mxu0  ;;  %3286 = vadd.xlane.f32.xlu1 %v3285_v28  ;;  %v8026_v56 = vmul.f32 %v6157_v3, %v3126_v58  ;;  %v8029_v15 = vmul.f32 %v5058_v42, %v7948_v5  ;;  %v8032_v48 = vmul.f32 %v5061_v50, %v7951_v21  ;;  %6174 = vrcp.f32 %v3165_v63 }
 0x5f8   : > { %v2847_v31 = vpop.f32.mrb[53].mxu0  ;;  %v8024_v45 = vadd.f32 %v5493_v54, %v7904_v33  ;;  %v6159_v22 = vpop.eup %6158  ;;  %v5059_v57 = vadd.f32 -1.0, %v3067_v35  ;;  %6176 = vpow2.f32 %v2996_v25  ;;  %v3163_v12 = vadd.f32 1.0, %v3067_v35 }
 0x5f9   : > { %v5494_v13 = vpop.f32.mrb[54].mxu0  ;;  %v8036_v34 = vadd.f32 %v7904_v33, %v2847_v31  ;;  %v6161_v53 = vpop.eup %6160  ;;  %v3072_v38 = vmul.f32 %v3040_v55, %v3040_v55  ;;  %6178 = vpow2.f32 %v3000_v1  ;;  %v3252_v58 = vmul.f32 %v7977_v0, %v7977_v0 }
 0x5fa   : > { %v2850_v59 = vpop.f32.mrb[55].mxu0  ;;  %v2952_v4 = vmin.f32 %v8024_v45, 20.0  ;;  %v6163_v26 = vpop.eup %6162  ;;  %v3070_v19 = vmul.f32 %v3038_v7, %v3038_v7  ;;  %v3041_v21 = vadd.f32 1.0, %v6159_v22  ;;  %v8043_v60 = vadd.f32 %v5494_v13, %v7904_v33 }
 0x5fb   : > { %v2950_v41 = vmin.f32 %v8036_v34, 20.0  ;;  %v3288_v14 = vsel %vm2215_vm3, %v3252_v58, 0.0  ;;  %v8046_v44 = vadd.f32 %v7904_v33, %v2850_v59  ;;  %v3253_v62 = vmul.f32 %v7986_v40, %v7986_v40 }
 0x5fc   : > { %v3006_v47 = vmul.f32 1.442695, %v2952_v4  ;;  %v6165_v39 = vpop.eup %6164  ;;  %v8053_v8 = vmul.f32 %v5059_v57, %v7957_v36  ;;  %v3039_v54 = vadd.f32 1.0, %v6161_v53  ;;  %3289 = vadd.xlane.f32.xlu0 %v3288_v14  ;;  %v3168_v61 = vadd.f32 1.0, %v3072_v38 }
 0x5fd   : > { %v3002_v32 = vmul.f32 1.442695, %v2950_v41  ;;  %v6167_v11 = vpop.eup %6166  ;;  %v2953_v31 = vmin.f32 %v8043_v60, 20.0  ;;  %v2951_v46 = vmin.f32 %v8046_v44, 20.0  ;;  %v5064_v50 = vadd.f32 -1.0, %v3072_v38 }
 0x5fe   : > { %6180 = vpow2.f32 %v3006_v47  ;;  %v6169_v42 = vpop.eup %6168  ;;  %v3073_v63 = vmul.f32 %v3041_v21, %v3041_v21  ;;  %v3254_v36 = vmul.f32 %v8026_v56, %v8026_v56  ;;  %v5062_v35 = vadd.f32 -1.0, %v3070_v19 }
 0x5ff   : > { %v5497_v5 = vpop.f32.mrb[56].mxu0  ;;  %6182 = vrcp.f32 %v3163_v12  ;;  %v6171_v3 = vpop.eup %6170  ;;  %v3008_v25 = vmul.f32 1.442695, %v2953_v31  ;;  %v3291_v59 = vsel %vm2215_vm3, %v3253_v62, 0.0  ;;  %v8066_v1 = vmul.f32 %v6163_v26, %v7998_v17 }
 0x600   : > { %v2863_v9 = vpop.f32.mrb[57].mxu0  ;;  %v8062_v13 = vadd.f32 %v5497_v5, %v7904_v33  ;;  %6184 = vpow2.f32 %v3002_v32  ;;  %v6173_v55 = vpop.eup %6172  ;;  %v3071_v28 = vmul.f32 %v3039_v54, %v3039_v54  ;;  %v3004_v7 = vmul.f32 1.442695, %v2951_v46  ;;  %3292 = vadd.xlane.f32.xlu0 %v3291_v59 }
 0x601   : > { %v8050_v18 = vpop.f32.mrb[58].mxu0  ;;  %v3294_v22 = vsel %vm2215_vm3, %v3254_v36, 0.0  ;;  %v6175_v57 = vpop.eup %6174  ;;  %v8070_v4 = vmul.f32 %v6165_v39, %v8012_v37  ;;  %6186 = vrcp.f32 %v3168_v61  ;;  %v3166_v53 = vadd.f32 1.0, %v3070_v19 }
 0x602   : > { %v8055_v2 = vpop.f32.mrb[59].mxu0  ;;  %v3044_v12 = vadd.f32 1.0, %v6169_v42  ;;  %3295 = vadd.xlane.f32.xlu1 %v3294_v22  ;;  %v6177_v58 = vpop.eup %6176  ;;  %v3169_v5 = vadd.f32 1.0, %v3073_v63  ;;  %v3042_v21 = vadd.f32 1.0, %v6171_v3  ;;  %v2956_v17 = vmin.f32 %v8062_v13, 20.0 }
 0x603   : > { %v8076_v26 = vadd.f32 %v7904_v33, %v2863_v9  ;;  %v6179_v41 = vpop.eup %6178  ;;  %v8081_v37 = vmul.f32 %v6167_v11, %v8021_v6  ;;  %v8084_v19 = vmul.f32 %v5064_v50, %v7961_v29  ;;  %v8087_v14 = vmul.f32 %v5062_v35, %v7964_v30 }
 0x604   : > { %6188 = vpow2.f32 %v3008_v25  ;;  %v5065_v39 = vadd.f32 -1.0, %v3073_v63  ;;  %v3167_v54 = vadd.f32 1.0, %v3071_v28  ;;  %v3043_v32 = vadd.f32 1.0, %v6177_v58 }
 0x605   : > { %6190 = vpow2.f32 %v3004_v7  ;;  %v3076_v61 = vmul.f32 %v3044_v12, %v3044_v12  ;;  %v2954_v6 = vmin.f32 %v8076_v26, 20.0  ;;  %v3255_v29 = vmul.f32 %v8070_v4, %v8070_v4 }
 0x606   : > { %6192 = vrcp.f32 %v3166_v53  ;;  %v3074_v30 = vmul.f32 %v3042_v21, %v3042_v21  ;;  %v3045_v31 = vadd.f32 1.0, %v6179_v41  ;;  %v3014_v46 = vmul.f32 1.442695, %v2956_v17 }
 0x607   : > { %v8072_v38 = vpop.f32.mrb[60].mxu0  ;;  %6194 = vrcp.f32 %v3169_v5  ;;  %v8096_v50 = vmul.f32 %v3043_v32, %v3043_v32  ;;  %v3010_v63 = vmul.f32 1.442695, %v2954_v6  ;;  %v3297_v36 = vsel %vm2215_vm3, %v3255_v29, 0.0 }
 0x608   : > { %v8078_v47 = vpop.f32.mrb[61].mxu0  ;;  %v6181_v11 = vpop.eup %6180  ;;  %v8101_v3 = vadd.f32 %v8050_v18, %v7904_v33  ;;  %v8104_v35 = vmul.f32 %v6173_v55, %v8029_v15  ;;  %v8107_v25 = vmul.f32 %v6175_v57, %v8032_v48  ;;  %v8110_v59 = vmul.f32 %v5065_v39, %v7969_v20  ;;  %3298 = vadd.xlane.f32.xlu0 %v3297_v36 }
 0x609   : > { %v8089_v62 = vpop.f32.mrb[62].mxu0  ;;  %v6183_v42 = vpop.eup %6182  ;;  %6196 = vrcp.f32 %v3167_v54  ;;  %v3172_v22 = vadd.f32 1.0, %v3076_v61  ;;  %v3048_v53 = vadd.f32 1.0, %v6181_v11  ;;  %v3170_v58 = vadd.f32 1.0, %v3074_v30 }
 0x60a   : > { %v8091_v9 = vpop.f32.mrb[63].mxu0  ;;  %v6185_v7 = vpop.eup %6184  ;;  %6198 = vpow2.f32 %v3010_v63  ;;  %v2957_v12 = vmin.f32 %v8101_v3, 20.0  ;;  %v8113_v18 = vmul.f32 %v3045_v31, %v3045_v31  ;;  %v3256_v15 = vmul.f32 %v8017_v49, %v8017_v49 }
 0x60b   : > { %v3046_v5 = vadd.f32 1.0, %v6185_v7  ;;  %v6187_v48 = vpop.eup %6186  ;;  %v5063_v55 = vadd.f32 -1.0, %v3071_v28  ;;  %v3171_v20 = vadd.f32 1.0, %v8096_v50  ;;  %6200 = vpow2.f32 %v3014_v46 }
 0x60c   : > { %v8120_v57 = vadd.f32 %v7904_v33, %v8055_v2  ;;  %v3016_v21 = vmul.f32 1.442695, %v2957_v12  ;;  %v3300_v17 = vsel %vm2215_vm3, %v3256_v15, 0.0  ;;  %v3257_v41 = vmul.f32 %v8066_v1, %v8066_v1 }
 0x60d   : > { %v3258_v39 = vmul.f32 %v8104_v35, %v8104_v35  ;;  %6202 = vrcp.f32 %v3172_v22  ;;  %v3080_v32 = vmul.f32 %v3048_v53, %v3048_v53  ;;  %v8127_v28 = vmul.f32 %v3046_v5, %v3046_v5  ;;  %3301 = vadd.xlane.f32.xlu1 %v3300_v17 }
 0x60e   : > { %v6189_v54 = vpop.eup %6188  ;;  %v2955_v6 = vmin.f32 %v8120_v57, 20.0  ;;  %v8131_v2 = vmul.f32 %v6183_v42, %v8053_v8  ;;  %v5068_v11 = vadd.f32 -1.0, %v3076_v61  ;;  %6204 = vrcp.f32 %v3170_v58 }
 0x60f   : > { %v6191_v29 = vpop.eup %6190  ;;  %v3173_v31 = vadd.f32 1.0, %v8113_v18  ;;  %6206 = vrcp.f32 %v3171_v20  ;;  %v3303_v7 = vsel %vm2215_vm3, %v3257_v41, 0.0  ;;  %v3135_v53 = vmul.f32 %v5063_v55, %v7974_v51 }
 0x610   : > { %v6193_v46 = vpop.eup %6192  ;;  %v3047_v63 = vadd.f32 1.0, %v6191_v29  ;;  %v3012_v36 = vmul.f32 1.442695, %v2955_v6  ;;  %v5066_v12 = vadd.f32 -1.0, %v3074_v30  ;;  %6208 = vpow2.f32 %v3016_v21  ;;  %3304 = vadd.xlane.f32.xlu0 %v3303_v7 }
 0x611   : > { %v6195_v22 = vpop.eup %6194  ;;  %v3306_v5 = vsel %vm2215_vm3, %v3258_v39, 0.0  ;;  %v3176_v8 = vadd.f32 1.0, %v3080_v32  ;;  %v3174_v61 = vadd.f32 1.0, %v8127_v28  ;;  %v3049_v42 = vadd.f32 1.0, %v6189_v54 }
 0x612   : > { %v8138_v58 = vmul.f32 %v3047_v63, %v3047_v63  ;;  %3307 = vadd.xlane.f32.xlu1 %v3306_v5  ;;  %6210 = vpow2.f32 %v3012_v36  ;;  %v8142_v20 = vadd.f32 %v8072_v38, %v7904_v33  ;;  %v8146_v51 = vadd.f32 %v7904_v33, %v8078_v47 }
 0x613   : > { %v6197_v15 = vpop.eup %6196  ;;  %v3259_v30 = vmul.f32 %v8131_v2, %v8131_v2  ;;  %v8151_v21 = vmul.f32 %v6187_v48, %v8084_v19  ;;  %v8154_v17 = vmul.f32 %v6193_v46, %v8087_v14  ;;  %v8157_v41 = vmul.f32 %v5068_v11, %v7989_v10 }
 0x614   : > { %v6199_v55 = vpop.eup %6198  ;;  %6212 = vrcp.f32 %v3173_v31  ;;  %v5067_v38 = vadd.f32 -1.0, %v8096_v50  ;;  %v3175_v39 = vadd.f32 1.0, %v8138_v58  ;;  %v2960_v54 = vmin.f32 %v8142_v20, 20.0 }
 0x615   : > { %v3050_v47 = vadd.f32 1.0, %v6199_v55  ;;  %v6201_v6 = vpop.eup %6200  ;;  %v8163_v29 = vmul.f32 %v6195_v22, %v8110_v59  ;;  %6214 = vrcp.f32 %v3176_v8  ;;  %v2958_v19 = vmin.f32 %v8146_v51, 20.0 }
 0x616   : > { %v3309_v14 = vsel %vm2215_vm3, %v3259_v30, 0.0  ;;  %v3138_v10 = vmul.f32 %v5066_v12, %v8002_v16  ;;  %6216 = vrcp.f32 %v3174_v61  ;;  %v8168_v48 = vmul.f32 %v3049_v42, %v3049_v42 }
 0x617   : > { %v8170_v50 = vmul.f32 %v3050_v47, %v3050_v47  ;;  %3310 = vadd.xlane.f32.xlu0 %v3309_v14  ;;  %v6203_v11 = vpop.eup %6202  ;;  %v3022_v31 = vmul.f32 1.442695, %v2960_v54  ;;  %v3018_v46 = vmul.f32 1.442695, %v2958_v19  ;;  %v8174_v59 = vadd.f32 %v8089_v62, %v7904_v33 }
 0x618   : > { %v3260_v63 = vmul.f32 %v8081_v37, %v8081_v37  ;;  %v6205_v36 = vpop.eup %6204  ;;  %v8178_v7 = vmul.f32 %v6197_v15, %v3135_v53  ;;  %v5069_v16 = vadd.f32 -1.0, %v8113_v18  ;;  %v3139_v22 = vmul.f32 %v5067_v38, %v8008_v24 }
 0x619   : > { %6218 = vrcp.f32 %v3175_v39  ;;  %v6207_v12 = vpop.eup %6206  ;;  %v5072_v5 = vadd.f32 -1.0, %v3080_v32  ;;  %v3052_v8 = vadd.f32 1.0, %v6201_v6  ;;  %v2961_v61 = vmin.f32 %v8174_v59, 20.0 }
 0x61a   : > { %6220 = vpow2.f32 %v3022_v31  ;;  %v6209_v42 = vpop.eup %6208  ;;  %v3177_v62 = vadd.f32 1.0, %v8168_v48  ;;  %v3312_v30 = vsel %vm2215_vm3, %v3260_v63, 0.0  ;;  %v8187_v53 = vadd.f32 %v7904_v33, %v8091_v9 }
 0x61b   : > { %6222 = vpow2.f32 %v3018_v46  ;;  %v8189_v18 = vmul.f32 %v6205_v36, %v3138_v10  ;;  %v5070_v24 = vadd.f32 -1.0, %v8127_v28  ;;  %v3178_v32 = vadd.f32 1.0, %v8170_v50  ;;  %3313 = vadd.xlane.f32.xlu1 %v3312_v30 }
 0x61c   : > { %v3024_v15 = vmul.f32 1.442695, %v2961_v61  ;;  %v6211_v55 = vpop.eup %6210  ;;  %v2959_v38 = vmin.f32 %v8187_v53, 20.0  ;;  %v3261_v39 = vmul.f32 %v8107_v25, %v8107_v25  ;;  %v3262_v47 = vmul.f32 %v8154_v17, %v8154_v17 }
 0x61d   : > { %v3263_v33 = vmul.f32 %v8178_v7, %v8178_v7  ;;  %v8200_v54 = vmul.f32 %v3052_v8, %v3052_v8  ;;  %v3053_v28 = vadd.f32 1.0, %v6209_v42  ;;  %v3051_v6 = vadd.f32 1.0, %v6211_v55 }
 0x61e   : > { %v6213_v9 = vpop.eup %6212  ;;  %6224 = vpow2.f32 %v3024_v15  ;;  %v3020_v19 = vmul.f32 1.442695, %v2959_v38  ;;  %v3315_v14 = vsel %vm2215_vm3, %v3261_v39, 0.0  ;;  %v3318_v10 = vsel %vm2215_vm3, %v3262_v47, 0.0 }
 0x61f   : > { %6226 = vrcp.f32 %v3177_v62  ;;  %v6215_v31 = vpop.eup %6214  ;;  %v8204_v46 = vmul.f32 %v6207_v12, %v3139_v22  ;;  %v5071_v63 = vadd.f32 -1.0, %v8138_v58  ;;  %v3083_v36 = vmul.f32 %v3051_v6, %v3051_v6  ;;  %3316 = vadd.xlane.f32.xlu0 %v3315_v14  ;;  %3319 = vadd.xlane.f32.xlu1 %v3318_v10 }
 0x620   : > { %6228 = vrcp.f32 %v3178_v32  ;;  %v6217_v8 = vpop.eup %6216  ;;  %v3321_v61 = vsel %vm2215_vm3, %v3263_v33, 0.0  ;;  %v3264_v42 = vmul.f32 %v8151_v21, %v8151_v21  ;;  %v3266_v62 = vmul.f32 %v8189_v18, %v8189_v18 }
 0x621   : > { %6230 = vpow2.f32 %v3020_v19  ;;  %v3141_v30 = vmul.f32 %v5069_v16, %v8005_v43  ;;  %v3180_v22 = vadd.f32 1.0, %v8200_v54  ;;  %v8214_v12 = vmul.f32 %v3053_v28, %v3053_v28 }
 0x622   : > { %v3179_v58 = vadd.f32 1.0, %v3083_v36  ;;  %v8217_v15 = vmul.f32 %v6203_v11, %v8157_v41  ;;  %v3142_v55 = vmul.f32 %v5070_v24, %v8036_v34  ;;  %v3324_v38 = vsel %vm2215_vm3, %v3264_v42, 0.0 }
 0x623   : > { %v6219_v32 = vpop.eup %6218  ;;  %v3265_v39 = vmul.f32 %v8163_v29, %v8163_v29  ;;  %v3144_v33 = vmul.f32 %v5072_v5, %v8024_v45  ;;  %v5073_v43 = vadd.f32 -1.0, %v8168_v48  ;;  %v3143_v16 = vmul.f32 %v5071_v63, %v8046_v44  ;;  %3322 = vadd.xlane.f32.xlu0 %v3321_v61  ;;  %3325 = vadd.xlane.f32.xlu1 %v3324_v38 }
 0x624   : > { %v6221_v47 = vpop.eup %6220  ;;  %6232 = vrcp.f32 %v3179_v58  ;;  %v8226_v41 = vmul.f32 %v6217_v8, %v3142_v55  ;;  %v3330_v34 = vsel %vm2215_vm3, %v3266_v62, 0.0  ;;  %v3267_v24 = vmul.f32 %v8204_v46, %v8204_v46 }
 0x625   : > { %v6223_v28 = vpop.eup %6222  ;;  %v3056_v11 = vadd.f32 1.0, %v6221_v47  ;;  %6234 = vrcp.f32 %v3180_v22  ;;  %v5074_v6 = vadd.f32 -1.0, %v8170_v50  ;;  %v3181_v45 = vadd.f32 1.0, %v8214_v12 }
 0x626   : > { %v3054_v48 = vadd.f32 1.0, %v6223_v28  ;;  %v8233_v5 = vmul.f32 %v6213_v9, %v3141_v30  ;;  %v3327_v19 = vsel %vm2215_vm3, %v3265_v39, 0.0  ;;  %v3268_v14 = vmul.f32 %v8217_v15, %v8217_v15 }
 0x627   : > { %v3088_v44 = vmul.f32 %v3056_v11, %v3056_v11  ;;  %v3145_v63 = vmul.f32 %v5073_v43, %v8043_v60  ;;  %v8239_v8 = vmul.f32 %v6219_v32, %v3143_v16  ;;  %3328 = vadd.xlane.f32.xlu0 %v3327_v19  ;;  %3331 = vadd.xlane.f32.xlu1 %v3330_v34  ;;  %v3333_v9 = vsel %vm2215_vm3, %v3267_v24, 0.0 }
 0x628   : > { %v6225_v10 = vpop.eup %6224  ;;  %v3086_v61 = vmul.f32 %v3054_v48, %v3054_v48  ;;  %v8241_v42 = vmul.f32 %v6215_v31, %v3144_v33  ;;  %v3270_v30 = vmul.f32 %v8226_v41, %v8226_v41  ;;  %v3146_v58 = vmul.f32 %v5074_v6, %v8076_v26 }
 0x629   : > { %v6227_v50 = vpop.eup %6226  ;;  %v3057_v62 = vadd.f32 1.0, %v6225_v10  ;;  %6236 = vrcp.f32 %v3181_v45  ;;  %v3184_v55 = vadd.f32 1.0, %v3088_v44  ;;  %v5075_v38 = vadd.f32 -1.0, %v3083_v36 }
 0x62a   : > { %v6229_v22 = vpop.eup %6228  ;;  %v3182_v60 = vadd.f32 1.0, %v3086_v61  ;;  %v3336_v47 = vsel %vm2215_vm3, %v3268_v14, 0.0  ;;  %v3269_v31 = vmul.f32 %v8233_v5, %v8233_v5  ;;  %v5076_v33 = vadd.f32 -1.0, %v8200_v54 }
 0x62b   : > { %v6231_v32 = vpop.eup %6230  ;;  %v3089_v39 = vmul.f32 %v3057_v62, %v3057_v62  ;;  %3334 = vadd.xlane.f32.xlu0 %v3333_v9  ;;  %3337 = vadd.xlane.f32.xlu1 %v3336_v47  ;;  %v3271_v26 = vmul.f32 %v8239_v8, %v8239_v8  ;;  %v8253_v16 = vmul.f32 %v6229_v22, %v3146_v58  ;;  %v3342_v36 = vsel %vm2215_vm3, %v3270_v30, 0.0 }
 0x62c   : > { %6238 = vrcp.f32 %v3182_v60  ;;  %v3055_v43 = vadd.f32 1.0, %v6231_v32  ;;  %v8256_v34 = vmul.f32 %v6227_v50, %v3145_v63  ;;  %v3147_v6 = vmul.f32 %v5075_v38, %v8120_v57 }
 0x62d   : > { %v3185_v28 = vadd.f32 1.0, %v3089_v39  ;;  %6240 = vrcp.f32 %v3184_v55  ;;  %v3339_v54 = vsel %vm2215_vm3, %v3269_v31, 0.0  ;;  %v3272_v45 = vmul.f32 %v8241_v42, %v8241_v42 }
 0x62e   : > { %v6233_v11 = vpop.eup %6232  ;;  %v3087_v24 = vmul.f32 %v3055_v43, %v3055_v43  ;;  %v3148_v19 = vmul.f32 %v5076_v33, %v8062_v13  ;;  %v5077_v14 = vadd.f32 -1.0, %v8214_v12  ;;  %v3345_v63 = vsel %vm2215_vm3, %v3271_v26, 0.0 }
 0x62f   : > { %v6235_v48 = vpop.eup %6234  ;;  %3340 = vadd.xlane.f32.xlu0 %v3339_v54  ;;  %3343 = vadd.xlane.f32.xlu1 %v3342_v36  ;;  %v8265_v50 = vmul.f32 %v6233_v11, %v3147_v6  ;;  %v5078_v62 = vadd.f32 -1.0, %v3086_v61  ;;  %6242 = vrcp.f32 %v3185_v28  ;;  %v3274_v57 = vmul.f32 %v8253_v16, %v8253_v16 }
 0x630   : > { %v3183_v10 = vadd.f32 1.0, %v3087_v24  ;;  %v3273_v9 = vmul.f32 %v8256_v34, %v8256_v34  ;;  %v8271_v30 = vmul.f32 %v6235_v48, %v3148_v19  ;;  %v3348_v13 = vsel %vm2215_vm3, %v3272_v45, 0.0 }
 0x631   : > { %v3149_v22 = vmul.f32 %v5077_v14, %v8101_v3  ;;  %v5080_v58 = vadd.f32 -1.0, %v3088_v44  ;;  %v3150_v61 = vmul.f32 %v5078_v62, %v8146_v51  ;;  %v3354_v55 = vsel %vm2215_vm3, %v3274_v57, 0.0 }
 0x632   : > { %6244 = vrcp.f32 %v3183_v10  ;;  %v3275_v60 = vmul.f32 %v8265_v50, %v8265_v50  ;;  %v3351_v38 = vsel %vm2215_vm3, %v3273_v9, 0.0  ;;  %v5079_v33 = vadd.f32 -1.0, %v3087_v24 }
 0x633   : > { %v6237_v12 = vpop.eup %6236  ;;  %3346 = vadd.xlane.f32.xlu0 %v3345_v63  ;;  %3349 = vadd.xlane.f32.xlu1 %v3348_v13  ;;  %v3276_v3 = vmul.f32 %v8271_v30, %v8271_v30  ;;  %v3152_v51 = vmul.f32 %v5080_v58, %v8142_v20  ;;  %v5081_v44 = vadd.f32 -1.0, %v3089_v39 }
 0x634   : > { %v8280_v47 = vmul.f32 %v6237_v12, %v3149_v22  ;;  %v3357_v26 = vsel %vm2215_vm3, %v3275_v60, 0.0  ;;  %v3151_v6 = vmul.f32 %v5079_v33, %v8187_v53 }
 0x635   : > { %v3360_v24 = vsel %vm2215_vm3, %v3276_v3, 0.0  ;;  %v3153_v20 = vmul.f32 %v5081_v44, %v8174_v59 }
 0x636   : > { %v6239_v32 = vpop.eup %6238  ;;  %v3277_v54 = vmul.f32 %v8280_v47, %v8280_v47 }
 0x637   : > { %v8282_v31 = vmul.f32 %v6239_v32, %v3150_v61  ;;  %v6241_v43 = vpop.eup %6240  ;;  %3352 = vadd.xlane.f32.xlu0 %v3351_v38  ;;  %3355 = vadd.xlane.f32.xlu1 %v3354_v55 }
 0x638   : > { %v8290_v11 = vmul.f32 %v6241_v43, %v3152_v51  ;;  %v3363_v14 = vsel %vm2215_vm3, %v3277_v54, 0.0 }
 0x639   : > { %v3278_v28 = vmul.f32 %v8282_v31, %v8282_v31  ;;  %v6243_v36 = vpop.eup %6242 }
 0x63a   : > { %v8300_v19 = vmul.f32 %v6243_v36, %v3153_v20  ;;  %v3280_v10 = vmul.f32 %v8290_v11, %v8290_v11 }
 0x63b   : > { %3358 = vadd.xlane.f32.xlu0 %v3357_v26  ;;  %3361 = vadd.xlane.f32.xlu1 %v3360_v24  ;;  %v3366_v48 = vsel %vm2215_vm3, %v3278_v28, 0.0 }
 0x63c   : > { %v6245_v45 = vpop.eup %6244  ;;  %v3372_v59 = vsel %vm2215_vm3, %v3280_v10, 0.0  ;;  %v3281_v62 = vmul.f32 %v8300_v19, %v8300_v19 }
 0x63d   : > { %v8297_v39 = vmul.f32 %v6245_v45, %v3151_v6 }
 0x63e   : > { %v3375_v57 = vsel %vm2215_vm3, %v3281_v62, 0.0 }
 0x63f   : > { %v3279_v53 = vmul.f32 %v8297_v39, %v8297_v39  ;;  %3364 = vadd.xlane.f32.xlu0 %v3363_v14  ;;  %3367 = vadd.xlane.f32.xlu1 %v3366_v48 }
 0x641   : > { %v3369_v63 = vsel %vm2215_vm3, %v3279_v53, 0.0 }
 0x643   : > { %3370 = vadd.xlane.f32.xlu0 %v3369_v63  ;;  %3373 = vadd.xlane.f32.xlu1 %v3372_v59 }
 0x647   : > { %3376 = vadd.xlane.f32.xlu0 %v3375_v57 }
 0x67f   : > { %v3284_v9 = vpop.xlane.xlu0 %3283 }
 0x680   : > { %v3378_v13 = vmax.f32 %v3284_v9, 1e-10 }
 0x682   : > { %6246 = vrsqrt.f32 %v3378_v13 }
 0x684   : > { %v3287_v12 = vpop.xlane.xlu1 %3286 }
 0x685   : > { %v3379_v22 = vmax.f32 %v3287_v12, 1e-10 }
 0x687   : > { %6248 = vrsqrt.f32 %v3379_v22 }
 0x689   : > { %v3290_v58 = vpop.xlane.xlu0 %3289 }
 0x68a   : > { %v3380_v61 = vmax.f32 %v3290_v58, 1e-10 }
 0x68c   : > { %v6247_v60 = vpop.eup %6246  ;;  %6250 = vrsqrt.f32 %v3380_v61 }
 0x68d   : > { %v3293_v55 = vpop.xlane.xlu0 %3292  ;;  %v3442_v3 = vmul.f32 %v6247_v60, %v7981_v52 }
 0x68e   : > { %v3381_v32 = vmax.f32 %v3293_v55, 1e-10 }
 0x68f   : > { %v3296_v38 = vpop.xlane.xlu1 %3295 }
 0x690   : > { %6252 = vrsqrt.f32 %v3381_v32  ;;  %v3382_v51 = vmax.f32 %v3296_v38, 1e-10 }
 0x691   : > { %v6249_v33 = vpop.eup %6248 }
 0x692   : > { %v3443_v43 = vmul.f32 %v6249_v33, %v7983_v27  ;;  %6254 = vrsqrt.f32 %v3382_v51 }
 0x694   : > { %v3474_v44 = vpack.c.bf16 %v3443_v43, %v3442_v3 }
 0x695   : > { %v3299_v26 = vpop.xlane.xlu0 %3298 }
 0x696   : > { %5507 = vmatprep.mubr.msk.bf16.mxu1 %vm2215_vm3, %v3474_v44  ;;  %v3383_v28 = vmax.f32 %v3299_v26, 1e-10  ;;  %v6251_v36 = vpop.eup %6250 }
 0x697   : > { %v3444_v54 = vmul.f32 %v6251_v36, %v7977_v0 }
 0x698   : > { %6256 = vrsqrt.f32 %v3383_v28 }
 0x69a   : > { %v6253_v6 = vpop.eup %6252  ;;  %v3302_v24 = vpop.xlane.xlu1 %3301 }
 0x69b   : > { %v3445_v45 = vmul.f32 %v6253_v6, %v7986_v40  ;;  %v3384_v20 = vmax.f32 %v3302_v24, 1e-10 }
 0x69c   : > { %v6255_v10 = vpop.eup %6254 }
 0x69d   : > { %v3475_v48 = vpack.c.bf16 %v3445_v45, %v3444_v54  ;;  %v3305_v52 = vpop.xlane.xlu0 %3304  ;;  %6258 = vrsqrt.f32 %v3384_v20  ;;  %v3446_v62 = vmul.f32 %v6255_v10, %v8026_v56 }
 0x69e   : > { %v3385_v27 = vmax.f32 %v3305_v52, 1e-10 }
 0x69f   : > { %v3308_v14 = vpop.xlane.xlu1 %3307  ;;  %5508 = vmatmul.mubr.msk.bf16.vlgmr.msra.gmra.mrb[80].mxu1 %vm2215_vm3, %v3475_v48 }
 0x6a0   : > { %v3386_v53 = vmax.f32 %v3308_v14, 1e-10  ;;  %6260 = vrsqrt.f32 %v3385_v27 }
 0x6a2   : > { %v6257_v63 = vpop.eup %6256  ;;  %6262 = vrsqrt.f32 %v3386_v53 }
 0x6a3   : > { %v3447_v0 = vmul.f32 %v6257_v63, %v8070_v4 }
 0x6a4   : > { %v3311_v59 = vpop.xlane.xlu0 %3310 }
 0x6a5   : > { %v3387_v57 = vmax.f32 %v3311_v59, 1e-10  ;;  %v3476_v40 = vpack.c.bf16 %v3447_v0, %v3446_v62 }
 0x6a7   : > { %6264 = vrsqrt.f32 %v3387_v57  ;;  %5511 = vmatprep.mubr.msk.bf16.mxu1 %vm2215_vm3, %v3476_v40  ;;  %v6259_v9 = vpop.eup %6258 }
 0x6a8   : > { %v3314_v13 = vpop.xlane.xlu1 %3313  ;;  %v3448_v58 = vmul.f32 %v6259_v9, %v8017_v49 }
 0x6a9   : > { %v3388_v12 = vmax.f32 %v3314_v13, 1e-10 }
 0x6aa   : > { %v6261_v22 = vpop.eup %6260 }
 0x6ab   : > { %v3449_v61 = vmul.f32 %v6261_v22, %v8066_v1  ;;  %6266 = vrsqrt.f32 %v3388_v12 }
 0x6ac   : > { %v3317_v55 = vpop.xlane.xlu0 %3316  ;;  %v3320_v60 = vpop.xlane.xlu1 %3319 }
 0x6ad   : > { %v6263_v32 = vpop.eup %6262  ;;  %v3389_v56 = vmax.f32 %v3317_v55, 1e-10  ;;  %v3390_v38 = vmax.f32 %v3320_v60, 1e-10  ;;  %v3477_v4 = vpack.c.bf16 %v3449_v61, %v3448_v58 }
 0x6ae   : > { %v3450_v51 = vmul.f32 %v6263_v32, %v8104_v35 }
 0x6af   : > { %6268 = vrsqrt.f32 %v3389_v56  ;;  %5512 = vmatmul.mubr.msk.bf16.gmra.mrb[84].mxu1 %vm2215_vm3, %v3477_v4 }
 0x6b0   : > { %v3323_v3 = vpop.xlane.xlu0 %3322  ;;  %v3326_v43 = vpop.xlane.xlu1 %3325  ;;  %6270 = vrsqrt.f32 %v3390_v38 }
 0x6b1   : > { %v6265_v33 = vpop.eup %6264  ;;  %v3391_v44 = vmax.f32 %v3323_v3, 1e-10  ;;  %v3392_v49 = vmax.f32 %v3326_v43, 1e-10 }
 0x6b2   : > { %v3451_v1 = vmul.f32 %v6265_v33, %v8131_v2 }
 0x6b3   : > { %6272 = vrsqrt.f32 %v3391_v44 }
 0x6b4   : > { %v3478_v26 = vpack.c.bf16 %v3451_v1, %v3450_v51  ;;  %v3329_v28 = vpop.xlane.xlu0 %3328  ;;  %v3332_v36 = vpop.xlane.xlu1 %3331  ;;  %6274 = vrsqrt.f32 %v3392_v49 }
 0x6b5   : > { %v3393_v6 = vmax.f32 %v3329_v28, 1e-10  ;;  %v3394_v24 = vmax.f32 %v3332_v36, 1e-10  ;;  %v6267_v54 = vpop.eup %6266 }
 0x6b6   : > { %5515 = vmatprep.mubr.msk.bf16.mxu1 %vm2215_vm3, %v3478_v26  ;;  %v3452_v27 = vmul.f32 %v6267_v54, %v8081_v37 }
 0x6b7   : > { %6276 = vrsqrt.f32 %v3393_v6 }
 0x6b8   : > { %v3335_v45 = vpop.xlane.xlu0 %3334  ;;  %v3338_v20 = vpop.xlane.xlu1 %3337  ;;  %6278 = vrsqrt.f32 %v3394_v24 }
 0x6b9   : > { %v6269_v48 = vpop.eup %6268  ;;  %v3395_v35 = vmax.f32 %v3335_v45, 1e-10  ;;  %v3396_v52 = vmax.f32 %v3338_v20, 1e-10 }
 0x6ba   : > { %v3453_v2 = vmul.f32 %v6269_v48, %v8107_v25  ;;  %v6271_v14 = vpop.eup %6270 }
 0x6bb   : > { %6280 = vrsqrt.f32 %v3395_v35  ;;  %v3454_v57 = vmul.f32 %v6271_v14, %v8154_v17 }
 0x6bc   : > { %v3341_v53 = vpop.xlane.xlu0 %3340  ;;  %v3479_v10 = vpack.c.bf16 %v3453_v2, %v3452_v27  ;;  %v3344_v63 = vpop.xlane.xlu1 %3343  ;;  %6282 = vrsqrt.f32 %v3396_v52 }
 0x6bd   : > { %v6273_v59 = vpop.eup %6272  ;;  %v3397_v62 = vmax.f32 %v3341_v53, 1e-10  ;;  %v3398_v0 = vmax.f32 %v3344_v63, 1e-10 }
 0x6be   : > { %5516 = vmatmul.mubr.msk.bf16.gmra.mrb[88].mxu1 %vm2215_vm3, %v3479_v10  ;;  %v3455_v40 = vmul.f32 %v6273_v59, %v8178_v7  ;;  %v6275_v9 = vpop.eup %6274 }
 0x6bf   : > { %6284 = vrsqrt.f32 %v3397_v62  ;;  %v3456_v61 = vmul.f32 %v6275_v9, %v8151_v21 }
 0x6c0   : > { %v3347_v37 = vpop.xlane.xlu0 %3346  ;;  %v3480_v13 = vpack.c.bf16 %v3455_v40, %v3454_v57  ;;  %v3350_v25 = vpop.xlane.xlu1 %3349  ;;  %6286 = vrsqrt.f32 %v3398_v0 }
 0x6c1   : > { %v6277_v12 = vpop.eup %6276  ;;  %v3399_v22 = vmax.f32 %v3347_v37, 1e-10  ;;  %v3400_v58 = vmax.f32 %v3350_v25, 1e-10 }
 0x6c2   : > { %5519 = vmatprep.mubr.msk.bf16.mxu1 %vm2215_vm3, %v3480_v13  ;;  %v3457_v55 = vmul.f32 %v6277_v12, %v8163_v29  ;;  %v6279_v60 = vpop.eup %6278 }
 0x6c3   : > { %6288 = vrsqrt.f32 %v3399_v22  ;;  %v3458_v33 = vmul.f32 %v6279_v60, %v8189_v18 }
 0x6c4   : > { %v3353_v17 = vpop.xlane.xlu0 %3352  ;;  %v3481_v32 = vpack.c.bf16 %v3457_v55, %v3456_v61  ;;  %v3356_v7 = vpop.xlane.xlu1 %3355  ;;  %6290 = vrsqrt.f32 %v3400_v58 }
 0x6c5   : > { %v6281_v56 = vpop.eup %6280  ;;  %v3401_v38 = vmax.f32 %v3353_v17, 1e-10  ;;  %v3402_v4 = vmax.f32 %v3356_v7, 1e-10 }
 0x6c6   : > { %5520 = vmatmul.mubr.msk.bf16.gmra.mrb[92].mxu1 %vm2215_vm3, %v3481_v32  ;;  %v3459_v3 = vmul.f32 %v6281_v56, %v8204_v46  ;;  %v6283_v43 = vpop.eup %6282 }
 0x6c7   : > { %6292 = vrsqrt.f32 %v3401_v38  ;;  %v3460_v26 = vmul.f32 %v6283_v43, %v8217_v15 }
 0x6c8   : > { %v3359_v21 = vpop.xlane.xlu0 %3358  ;;  %v3362_v51 = vpop.xlane.xlu1 %3361  ;;  %v3482_v29 = vpack.c.bf16 %v3459_v3, %v3458_v33  ;;  %6294 = vrsqrt.f32 %v3402_v4 }
 0x6c9   : > { %v6285_v44 = vpop.eup %6284  ;;  %v3403_v49 = vmax.f32 %v3359_v21, 1e-10  ;;  %v3404_v1 = vmax.f32 %v3362_v51, 1e-10 }
 0x6ca   : > { %5523 = vmatprep.mubr.msk.bf16.mxu1 %vm2215_vm3, %v3482_v29  ;;  %v3461_v28 = vmul.f32 %v6285_v44, %v8233_v5  ;;  %v6287_v36 = vpop.eup %6286 }
 0x6cb   : > { %6296 = vrsqrt.f32 %v3403_v49  ;;  %v3462_v20 = vmul.f32 %v6287_v36, %v8226_v41 }
 0x6cc   : > { %v3365_v18 = vpop.xlane.xlu0 %3364  ;;  %v3368_v6 = vpop.xlane.xlu1 %3367  ;;  %v3483_v46 = vpack.c.bf16 %v3461_v28, %v3460_v26  ;;  %6298 = vrsqrt.f32 %v3404_v1  ;;  %v5668_v1 = vld [vmem:[%s8945_s2 + $0x78] sm:$0xff]   ;;  %v5669_v26 = vld [vmem:[%s8945_s2 + $0x80] sm:$0xff]  }
 0x6cd   : > { %v6289_v24 = vpop.eup %6288  ;;  %v3405_v54 = vmax.f32 %v3365_v18, 1e-10  ;;  %v3406_v45 = vmax.f32 %v3368_v6, 1e-10  ;;  %5539 = vmatprep.subr.bf16.mxu0 %v5668_v1 }
 0x6ce   : > { %5524 = vmatmul.mubr.msk.bf16.gmra.mrb[96].mxu1 %vm2215_vm3, %v3483_v46  ;;  %v3463_v48 = vmul.f32 %v6289_v24, %v8239_v8  ;;  %v6291_v35 = vpop.eup %6290  ;;  %5540 = vmatpush3.bf16.msra.mxu0 %v5668_v1 }
 0x6cf   : > { %6300 = vrsqrt.f32 %v3405_v54  ;;  %v3464_v53 = vmul.f32 %v6291_v35, %v8241_v42  ;;  %5541 = vmatprep.subr.bf16.mxu0 %v5669_v26 }
 0x6d0   : > { %v3371_v15 = vpop.xlane.xlu0 %3370  ;;  %v3374_v52 = vpop.xlane.xlu1 %3373  ;;  %v3484_v5 = vpack.c.bf16 %v3463_v48, %v3462_v20  ;;  %6302 = vrsqrt.f32 %v3406_v45 }
 0x6d1   : > { %v6293_v27 = vpop.eup %6292  ;;  %v3407_v2 = vmax.f32 %v3371_v15, 1e-10  ;;  %v3408_v14 = vmax.f32 %v3374_v52, 1e-10 }
 0x6d2   : > { %5527 = vmatprep.mubr.msk.bf16.mxu1 %vm2215_vm3, %v3484_v5  ;;  %v3465_v10 = vmul.f32 %v6293_v27, %v8256_v34  ;;  %v6295_v63 = vpop.eup %6294  ;;  %5542 = vmatpush3.bf16.msra.mxu0 %v5669_v26 }
 0x6d3   : > { %6304 = vrsqrt.f32 %v3407_v2  ;;  %v3466_v0 = vmul.f32 %v6295_v63, %v8253_v16 }
 0x6d4   : > { %v3377_v41 = vpop.xlane.xlu0 %3376  ;;  %v3485_v59 = vpack.c.bf16 %v3465_v10, %v3464_v53  ;;  %6306 = vrsqrt.f32 %v3408_v14 }
 0x6d5   : > { %v6297_v8 = vpop.eup %6296  ;;  %v3409_v62 = vmax.f32 %v3377_v41, 1e-10 }
 0x6d6   : > { %5528 = vmatmul.mubr.msk.bf16.gmra.mrb[100].mxu1 %vm2215_vm3, %v3485_v59  ;;  %v3467_v57 = vmul.f32 %v6297_v8, %v8265_v50  ;;  %v6299_v40 = vpop.eup %6298 }
 0x6d7   : > { %6308 = vrsqrt.f32 %v3409_v62  ;;  %v3468_v42 = vmul.f32 %v6299_v40, %v8271_v30 }
 0x6d8   : > { %v3486_v9 = vpack.c.bf16 %v3467_v57, %v3466_v0 }
 0x6d9   : > { %v6301_v37 = vpop.eup %6300 }
 0x6da   : > { %5531 = vmatprep.mubr.msk.bf16.mxu1 %vm2215_vm3, %v3486_v9  ;;  %v3469_v34 = vmul.f32 %v6301_v37, %v8280_v47  ;;  %v6303_v13 = vpop.eup %6302  ;;  %v3717_v47 = vsub.s32 4, %v9099_v23 }
 0x6db   : > { %v3470_v22 = vmul.f32 %v6303_v13, %v8282_v31  ;;  %v6631_v31 = vld [vmem:[%s8946_s3] sm:$0xff] }
 0x6dc   : > { %v3487_v25 = vpack.c.bf16 %v3469_v34, %v3468_v42  ;;  %v8364_v17 = vrot.slane %v6631_v31, %v3717_v47 }
 0x6dd   : > { %v6305_v12 = vpop.eup %6304 }
 0x6de   : > { %5532 = vmatmul.mubr.msk.bf16.gmra.mrb[104].mxu1 %vm2215_vm3, %v3487_v25  ;;  %v3471_v16 = vmul.f32 %v6305_v12, %v8297_v39  ;;  %v6307_v50 = vpop.eup %6306 }
 0x6df   : > { %v3472_v55 = vmul.f32 %v6307_v50, %v8290_v11 }
 0x6e0   : > { %v3488_v58 = vpack.c.bf16 %v3471_v16, %v3470_v22 }
 0x6e1   : > { %v6309_v61 = vpop.eup %6308 }
 0x6e2   : > { %5535 = vmatprep.mubr.msk.bf16.mxu1 %vm2215_vm3, %v3488_v58  ;;  %v3473_v30 = vmul.f32 %v6309_v61, %v8300_v19 }
 0x6e4   : > { %v3489_v60 = vpack.c.bf16 %v3473_v30, %v3472_v55 }
 0x6e6   : > { %5536 = vmatmul.mubr.msk.bf16.gmra.mrb[108].mxu1 %vm2215_vm3, %v3489_v60 }
 0x772   : > { %v5509_v39 = vpop.f32.mrb[80].mxu1 }
 0x773   : > { %v8367_v32 = vadd.f32 %v5509_v39, %v8364_v17  ;;  %v3588_v7 = vpop.f32.mrb[81].mxu1 }
 0x774   : > { %v8370_v11 = vadd.f32 %v8364_v17, %v3588_v7  ;;  %v5510_v19 = vpop.f32.mrb[82].mxu1 }
 0x775   : > { %v3753_v56 = vmin.f32 %v8367_v32, 20.0  ;;  %v8374_v38 = vadd.f32 %v5510_v19, %v8364_v17  ;;  %v3591_v4 = vpop.f32.mrb[83].mxu1 }
 0x776   : > { %v3751_v33 = vmin.f32 %v8370_v11, 20.0  ;;  %v8378_v3 = vadd.f32 %v8364_v17, %v3591_v4 }
 0x777   : > { %v3754_v43 = vmin.f32 %v8374_v38, 20.0  ;;  %v3787_v21 = vmul.f32 1.442695, %v3753_v56 }
 0x778   : > { %v3783_v51 = vmul.f32 1.442695, %v3751_v33  ;;  %v3752_v29 = vmin.f32 %v8378_v3, 20.0 }
 0x779   : > { %v3789_v44 = vmul.f32 1.442695, %v3754_v43  ;;  %6310 = vpow2.f32 %v3787_v21 }
 0x77a   : > { %6312 = vpow2.f32 %v3783_v51  ;;  %v3785_v49 = vmul.f32 1.442695, %v3752_v29 }
 0x77b   : > { %6314 = vpow2.f32 %v3789_v44 }
 0x77c   : > { %6316 = vpow2.f32 %v3785_v49 }
 0x782   : > { %v5513_v28 = vpop.f32.mrb[84].mxu1 }
 0x783   : > { %v8389_v36 = vadd.f32 %v5513_v28, %v8364_v17  ;;  %v3604_v18 = vpop.f32.mrb[85].mxu1  ;;  %v6311_v20 = vpop.eup %6310 }
 0x784   : > { %v8392_v6 = vadd.f32 %v8364_v17, %v3604_v18  ;;  %v5514_v46 = vpop.f32.mrb[86].mxu1  ;;  %v6313_v35 = vpop.eup %6312  ;;  %v3849_v2 = vadd.f32 1.0, %v6311_v20 }
 0x785   : > { %v3757_v24 = vmin.f32 %v8389_v36, 20.0  ;;  %v8396_v54 = vadd.f32 %v5514_v46, %v8364_v17  ;;  %v3607_v45 = vpop.f32.mrb[87].mxu1  ;;  %v6315_v52 = vpop.eup %6314  ;;  %v3847_v14 = vadd.f32 1.0, %v6313_v35 }
 0x786   : > { %v3755_v48 = vmin.f32 %v8392_v6, 20.0  ;;  %v8401_v27 = vadd.f32 %v8364_v17, %v3607_v45  ;;  %v6317_v10 = vpop.eup %6316  ;;  %v3850_v63 = vadd.f32 1.0, %v6315_v52  ;;  %v3881_v8 = vmul.f32 %v3849_v2, %v3849_v2 }
 0x787   : > { %v3795_v15 = vmul.f32 1.442695, %v3757_v24  ;;  %v3758_v5 = vmin.f32 %v8396_v54, 20.0  ;;  %v3879_v62 = vmul.f32 %v3847_v14, %v3847_v14  ;;  %v3848_v0 = vadd.f32 1.0, %v6317_v10 }
 0x788   : > { %v3791_v53 = vmul.f32 1.442695, %v3755_v48  ;;  %v3756_v59 = vmin.f32 %v8401_v27, 20.0  ;;  %v3882_v40 = vmul.f32 %v3850_v63, %v3850_v63  ;;  %v3977_v9 = vadd.f32 1.0, %v3881_v8 }
 0x789   : > { %6318 = vpow2.f32 %v3795_v15  ;;  %v3797_v41 = vmul.f32 1.442695, %v3758_v5  ;;  %v3975_v42 = vadd.f32 1.0, %v3879_v62  ;;  %v3880_v34 = vmul.f32 %v3848_v0, %v3848_v0 }
 0x78a   : > { %6320 = vpow2.f32 %v3791_v53  ;;  %v3793_v57 = vmul.f32 1.442695, %v3756_v59  ;;  %v3978_v12 = vadd.f32 1.0, %v3882_v40  ;;  %v5102_v44 = vadd.f32 -1.0, %v3881_v8 }
 0x78b   : > { %6322 = vpow2.f32 %v3797_v41  ;;  %v3976_v47 = vadd.f32 1.0, %v3880_v34  ;;  %v5100_v26 = vadd.f32 -1.0, %v3879_v62  ;;  %v5103_v15 = vadd.f32 -1.0, %v3882_v40 }
 0x78c   : > { %6324 = vpow2.f32 %v3793_v57  ;;  %v5101_v14 = vadd.f32 -1.0, %v3880_v34  ;;  %v3945_v41 = vmul.f32 %v5102_v44, %v8367_v32 }
 0x78d   : > { %6326 = vrcp.f32 %v3977_v9  ;;  %v3943_v8 = vmul.f32 %v5100_v26, %v8370_v11  ;;  %v3946_v40 = vmul.f32 %v5103_v15, %v8374_v38 }
 0x78e   : > { %6328 = vrcp.f32 %v3975_v42 }
 0x78f   : > { %6330 = vrcp.f32 %v3978_v12 }
 0x791   : > { %v5517_v37 = vpop.f32.mrb[88].mxu1 }
 0x792   : > { %v8405_v13 = vadd.f32 %v5517_v37, %v8364_v17  ;;  %v3620_v25 = vpop.f32.mrb[89].mxu1 }
 0x793   : > { %v8408_v22 = vadd.f32 %v8364_v17, %v3620_v25  ;;  %v5518_v16 = vpop.f32.mrb[90].mxu1  ;;  %v6319_v55 = vpop.eup %6318 }
 0x794   : > { %v3761_v50 = vmin.f32 %v8405_v13, 20.0  ;;  %v8412_v58 = vadd.f32 %v5518_v16, %v8364_v17  ;;  %v3623_v61 = vpop.f32.mrb[91].mxu1  ;;  %v6321_v56 = vpop.eup %6320  ;;  %v3853_v4 = vadd.f32 1.0, %v6319_v55  ;;  %v3944_v16 = vmul.f32 %v5101_v14, %v8378_v3 }
 0x795   : > { %v3759_v30 = vmin.f32 %v8408_v22, 20.0  ;;  %v8416_v60 = vadd.f32 %v8364_v17, %v3623_v61  ;;  %v6323_v33 = vpop.eup %6322  ;;  %v3851_v43 = vadd.f32 1.0, %v6321_v56 }
 0x796   : > { %v3803_v31 = vmul.f32 1.442695, %v3761_v50  ;;  %v3762_v39 = vmin.f32 %v8412_v58, 20.0  ;;  %v6325_v29 = vpop.eup %6324  ;;  %v3885_v24 = vmul.f32 %v3853_v4, %v3853_v4  ;;  %v3854_v45 = vadd.f32 1.0, %v6323_v33 }
 0x797   : > { %v3799_v7 = vmul.f32 1.442695, %v3759_v30  ;;  %v3760_v19 = vmin.f32 %v8416_v60, 20.0  ;;  %v3883_v52 = vmul.f32 %v3851_v43, %v3851_v43  ;;  %v3852_v5 = vadd.f32 1.0, %v6325_v29  ;;  %v6327_v63 = vpop.eup %6326 }
 0x798   : > { %6332 = vpow2.f32 %v3803_v31  ;;  %v3805_v21 = vmul.f32 1.442695, %v3762_v39  ;;  %v6329_v59 = vpop.eup %6328  ;;  %v3981_v62 = vadd.f32 1.0, %v3885_v24  ;;  %v3886_v0 = vmul.f32 %v3854_v45, %v3854_v45 }
 0x799   : > { %6334 = vpow2.f32 %v3799_v7  ;;  %v5521_v51 = vpop.f32.mrb[92].mxu1  ;;  %v3801_v28 = vmul.f32 1.442695, %v3760_v19  ;;  %v6331_v9 = vpop.eup %6330  ;;  %v3979_v37 = vadd.f32 1.0, %v3883_v52  ;;  %v3884_v42 = vmul.f32 %v3852_v5, %v3852_v5 }
 0x79a   : > { %6336 = vrcp.f32 %v3976_v47  ;;  %v8421_v49 = vadd.f32 %v5521_v51, %v8364_v17  ;;  %v3636_v1 = vpop.f32.mrb[93].mxu1  ;;  %v8442_v55 = vmul.f32 %v6327_v63, %v3945_v41  ;;  %v8448_v39 = vmul.f32 %v6329_v59, %v3943_v8 }
 0x79b   : > { %6338 = vpow2.f32 %v3805_v21  ;;  %v8424_v18 = vadd.f32 %v8364_v17, %v3636_v1  ;;  %v5522_v46 = vpop.f32.mrb[94].mxu1  ;;  %v3982_v3 = vadd.f32 1.0, %v3886_v0  ;;  %v3980_v4 = vadd.f32 1.0, %v3884_v42 }
 0x79c   : > { %v3765_v20 = vmin.f32 %v8421_v49, 20.0  ;;  %v8428_v48 = vadd.f32 %v5522_v46, %v8364_v17  ;;  %v3639_v35 = vpop.f32.mrb[95].mxu1  ;;  %6340 = vpow2.f32 %v3801_v28  ;;  %v8451_v21 = vmul.f32 %v6331_v9, %v3946_v40 }
 0x79d   : > { %v3763_v2 = vmin.f32 %v8424_v18, 20.0  ;;  %v8436_v34 = vadd.f32 %v8364_v17, %v3639_v35  ;;  %v5106_v51 = vadd.f32 -1.0, %v3885_v24  ;;  %v5104_v1 = vadd.f32 -1.0, %v3883_v52 }
 0x79e   : > { %v3811_v53 = vmul.f32 1.442695, %v3765_v20  ;;  %v3766_v10 = vmin.f32 %v8428_v48, 20.0  ;;  %v5107_v26 = vadd.f32 -1.0, %v3886_v0  ;;  %v4073_v24 = vmul.f32 %v8442_v55, %v8442_v55 }
 0x79f   : > { %v3807_v57 = vmul.f32 1.442695, %v3763_v2  ;;  %v3764_v38 = vmin.f32 %v8436_v34, 20.0  ;;  %v3949_v14 = vmul.f32 %v5106_v51, %v8389_v36  ;;  %v5105_v52 = vadd.f32 -1.0, %v3884_v42 }
 0x7a0   : > { %6342 = vpow2.f32 %v3811_v53  ;;  %v3813_v32 = vmul.f32 1.442695, %v3766_v10  ;;  %v4071_v53 = vmul.f32 %v8448_v39, %v8448_v39  ;;  %v3947_v63 = vmul.f32 %v5104_v1, %v8392_v6 }
 0x7a1   : > { %v5525_v25 = vpop.f32.mrb[96].mxu1  ;;  %6344 = vpow2.f32 %v3807_v57  ;;  %v3809_v29 = vmul.f32 1.442695, %v3764_v38  ;;  %v3950_v41 = vmul.f32 %v5107_v26, %v8396_v54 }
 0x7a2   : > { %v6333_v12 = vpop.eup %6332  ;;  %v8440_v50 = vadd.f32 %v5525_v25, %v8364_v17  ;;  %v3652_v11 = vpop.f32.mrb[97].mxu1  ;;  %6346 = vrcp.f32 %v3981_v62 }
 0x7a3   : > { %v6335_v61 = vpop.eup %6334  ;;  %v8446_v30 = vadd.f32 %v8364_v17, %v3652_v11  ;;  %v5526_v47 = vpop.f32.mrb[98].mxu1  ;;  %v3857_v7 = vadd.f32 1.0, %v6333_v12  ;;  %6348 = vrcp.f32 %v3979_v37  ;;  %v4103_v11 = vsel %vm2215_vm3, %v4071_v53, 0.0 }
 0x7a4   : > { %v6337_v31 = vpop.eup %6336  ;;  %v3655_v19 = vpop.f32.mrb[99].mxu1  ;;  %v3855_v33 = vadd.f32 1.0, %v6335_v61  ;;  %v3769_v43 = vmin.f32 %v8440_v50, 20.0  ;;  %6350 = vpow2.f32 %v3813_v32  ;;  %v8457_v20 = vadd.f32 %v5526_v47, %v8364_v17  ;;  %4104 = vadd.xlane.f32.xlu1 %v4103_v11 }
 0x7a5   : > { %v6339_v56 = vpop.eup %6338  ;;  %v8453_v44 = vmul.f32 %v6337_v31, %v3944_v16  ;;  %v3767_v28 = vmin.f32 %v8446_v30, 20.0  ;;  %6352 = vrcp.f32 %v3982_v3  ;;  %v3889_v46 = vmul.f32 %v3857_v7, %v3857_v7 }
 0x7a6   : > { %v3858_v45 = vadd.f32 1.0, %v6339_v56  ;;  %v6341_v35 = vpop.eup %6340  ;;  %6354 = vrcp.f32 %v3980_v4  ;;  %v3887_v15 = vmul.f32 %v3855_v33, %v3855_v33  ;;  %v3819_v5 = vmul.f32 1.442695, %v3769_v43 }
 0x7a7   : > { %6356 = vpow2.f32 %v3809_v29  ;;  %v3815_v59 = vmul.f32 1.442695, %v3767_v28  ;;  %v4072_v8 = vmul.f32 %v8453_v44, %v8453_v44  ;;  %v3985_v57 = vadd.f32 1.0, %v3889_v46 }
 0x7a8   : > { %v3890_v9 = vmul.f32 %v3858_v45, %v3858_v45  ;;  %v3856_v36 = vadd.f32 1.0, %v6341_v35  ;;  %v3770_v40 = vmin.f32 %v8457_v20, 20.0  ;;  %v3983_v25 = vadd.f32 1.0, %v3887_v15 }
 0x7a9   : > { %v5529_v2 = vpop.f32.mrb[100].mxu1  ;;  %6358 = vpow2.f32 %v3819_v5  ;;  %v8474_v6 = vadd.f32 %v8364_v17, %v3655_v19  ;;  %v3948_v16 = vmul.f32 %v5105_v52, %v8401_v27  ;;  %v5110_v32 = vadd.f32 -1.0, %v3889_v46 }
 0x7aa   : > { %v3668_v10 = vpop.f32.mrb[101].mxu1  ;;  %v6343_v0 = vpop.eup %6342  ;;  %v4109_v61 = vsel %vm2215_vm3, %v4073_v24, 0.0  ;;  %v5108_v47 = vadd.f32 -1.0, %v3887_v15  ;;  %6360 = vpow2.f32 %v3815_v59  ;;  %v3986_v56 = vadd.f32 1.0, %v3890_v9 }
 0x7ab   : > { %v8468_v62 = vpop.f32.mrb[102].mxu1  ;;  %v6345_v42 = vpop.eup %6344  ;;  %v3861_v12 = vadd.f32 1.0, %v6343_v0  ;;  %v3768_v3 = vmin.f32 %v8474_v6, 20.0  ;;  %6362 = vrcp.f32 %v3985_v57  ;;  %v3888_v19 = vmul.f32 %v3856_v36, %v3856_v36  ;;  %4110 = vadd.xlane.f32.xlu1 %v4109_v61 }
 0x7ac   : > { %v8471_v37 = vpop.f32.mrb[103].mxu1  ;;  %v6347_v54 = vpop.eup %6346  ;;  %v3859_v31 = vadd.f32 1.0, %v6345_v42  ;;  %v4106_v4 = vsel %vm2215_vm3, %v4072_v8, 0.0  ;;  %6364 = vrcp.f32 %v3983_v25  ;;  %v3821_v33 = vmul.f32 1.442695, %v3770_v40 }
 0x7ad   : > { %v6349_v38 = vpop.eup %6348  ;;  %v3893_v27 = vmul.f32 %v3861_v12, %v3861_v12  ;;  %v8482_v43 = vadd.f32 %v5529_v2, %v8364_v17  ;;  %4107 = vadd.xlane.f32.xlu0 %v4106_v4  ;;  %v8486_v1 = vmul.f32 %v6347_v54, %v3949_v14  ;;  %v3953_v26 = vmul.f32 %v5110_v32, %v8405_v13 }
 0x7ae   : > { %v6351_v7 = vpop.eup %6350  ;;  %v3817_v28 = vmul.f32 1.442695, %v3768_v3  ;;  %v8490_v46 = vadd.f32 %v8364_v17, %v3668_v10  ;;  %v8494_v15 = vmul.f32 %v6349_v38, %v3947_v63  ;;  %v3951_v5 = vmul.f32 %v5108_v47, %v8408_v22 }
 0x7af   : > { %v6353_v29 = vpop.eup %6352  ;;  %v3891_v2 = vmul.f32 %v3859_v31, %v3859_v31  ;;  %v3862_v24 = vadd.f32 1.0, %v6351_v7  ;;  %v5111_v53 = vadd.f32 -1.0, %v3890_v9  ;;  %6366 = vrcp.f32 %v3986_v56 }
 0x7b0   : > { %v6355_v35 = vpop.eup %6354  ;;  %v5109_v13 = vadd.f32 -1.0, %v3888_v19  ;;  %v3984_v59 = vadd.f32 1.0, %v3888_v19  ;;  %v5114_v10 = vadd.f32 -1.0, %v3893_v27  ;;  %v3989_v0 = vadd.f32 1.0, %v3893_v27 }
 0x7b1   : > { %v8484_v51 = vpop.f32.mrb[104].mxu1  ;;  %v6357_v14 = vpop.eup %6356  ;;  %6368 = vpow2.f32 %v3821_v33  ;;  %v3773_v63 = vmin.f32 %v8482_v43, 20.0  ;;  %v8502_v57 = vmul.f32 %v6353_v29, %v3950_v41  ;;  %v8504_v22 = vmul.f32 %v6355_v35, %v3948_v16 }
 0x7b2   : > { %v8492_v45 = vpop.f32.mrb[105].mxu1  ;;  %6370 = vpow2.f32 %v3817_v28  ;;  %v3771_v36 = vmin.f32 %v8490_v46, 20.0  ;;  %v3987_v42 = vadd.f32 1.0, %v3891_v2  ;;  %v3894_v9 = vmul.f32 %v3862_v24, %v3862_v24 }
 0x7b3   : > { %v8497_v52 = vpop.f32.mrb[106].mxu1  ;;  %v6359_v40 = vpop.eup %6358  ;;  %v3860_v25 = vadd.f32 1.0, %v6357_v14  ;;  %v8509_v12 = vadd.f32 %v8468_v62, %v8364_v17  ;;  %v8512_v54 = vmul.f32 %v5111_v53, %v8412_v58  ;;  %v8515_v32 = vmul.f32 %v5109_v13, %v8416_v60 }
 0x7b4   : > { %v8499_v8 = vpop.f32.mrb[107].mxu1  ;;  %6372 = vrcp.f32 %v3984_v59  ;;  %v3823_v41 = vmul.f32 1.442695, %v3771_v36  ;;  %v6361_v16 = vpop.eup %6360  ;;  %v8518_v11 = vmul.f32 %v5114_v10, %v8421_v49  ;;  %v5112_v61 = vadd.f32 -1.0, %v3891_v2 }
 0x7b5   : > { %6374 = vrcp.f32 %v3989_v0  ;;  %v3827_v38 = vmul.f32 1.442695, %v3773_v63  ;;  %v6363_v31 = vpop.eup %6362  ;;  %v3865_v62 = vadd.f32 1.0, %v6359_v40  ;;  %v3774_v58 = vmin.f32 %v8509_v12, 20.0 }
 0x7b6   : > { %6376 = vpow2.f32 %v3823_v41  ;;  %v8525_v60 = vadd.f32 %v8364_v17, %v8471_v37  ;;  %v6365_v7 = vpop.eup %6364  ;;  %v5115_v49 = vadd.f32 -1.0, %v3894_v9  ;;  %v3990_v56 = vadd.f32 1.0, %v3894_v9 }
 0x7b7   : > { %6378 = vrcp.f32 %v3987_v42  ;;  %v3892_v19 = vmul.f32 %v3860_v25, %v3860_v25  ;;  %v3863_v27 = vadd.f32 1.0, %v6361_v16  ;;  %v3829_v33 = vmul.f32 1.442695, %v3774_v58 }
 0x7b8   : > { %v3772_v29 = vmin.f32 %v8525_v60, 20.0  ;;  %v4074_v28 = vmul.f32 %v8451_v21, %v8451_v21  ;;  %v8536_v37 = vmul.f32 %v6363_v31, %v3953_v26  ;;  %6380 = vpow2.f32 %v3827_v38 }
 0x7b9   : > { %v8520_v47 = vpop.f32.mrb[108].mxu1  ;;  %v4075_v2 = vmul.f32 %v8494_v15, %v8494_v15  ;;  %v8542_v24 = vadd.f32 %v8484_v51, %v8364_v17  ;;  %v6367_v14 = vpop.eup %6366  ;;  %v8544_v53 = vmul.f32 %v6365_v7, %v3951_v5  ;;  %v8547_v13 = vmul.f32 %v5112_v61, %v8424_v18 }
 0x7ba   : > { %v8527_v3 = vpop.f32.mrb[109].mxu1  ;;  %v3897_v59 = vmul.f32 %v3865_v62, %v3865_v62  ;;  %6382 = vpow2.f32 %v3829_v33  ;;  %v3825_v26 = vmul.f32 1.442695, %v3772_v29  ;;  %v4112_v0 = vsel %vm2215_vm3, %v4074_v28, 0.0 }
 0x7bb   : > { %v8529_v4 = vpop.f32.mrb[110].mxu1  ;;  %v6369_v10 = vpop.eup %6368  ;;  %6384 = vrcp.f32 %v3990_v56  ;;  %v4115_v63 = vsel %vm2215_vm3, %v4075_v2, 0.0  ;;  %v5113_v40 = vadd.f32 -1.0, %v3892_v19  ;;  %v3988_v42 = vadd.f32 1.0, %v3892_v19  ;;  %4113 = vadd.xlane.f32.xlu0 %v4112_v0 }
 0x7bc   : > { %v8534_v35 = vpop.f32.mrb[111].mxu1  ;;  %v6371_v36 = vpop.eup %6370  ;;  %v3895_v51 = vmul.f32 %v3863_v27, %v3863_v27  ;;  %4116 = vadd.xlane.f32.xlu1 %v4115_v63  ;;  %v3777_v5 = vmin.f32 %v8542_v24, 20.0  ;;  %6386 = vpow2.f32 %v3825_v26  ;;  %v8554_v18 = vadd.f32 %v8364_v17, %v8492_v45 }
 0x7bd   : > { %v3864_v9 = vadd.f32 1.0, %v6371_v36  ;;  %v4076_v25 = vmul.f32 %v8504_v22, %v8504_v22  ;;  %v5118_v16 = vadd.f32 -1.0, %v3897_v59  ;;  %v8560_v38 = vadd.f32 %v8497_v52, %v8364_v17 }
 0x7be   : > { %v6373_v41 = vpop.eup %6372  ;;  %v3835_v61 = vmul.f32 1.442695, %v3777_v5  ;;  %v8564_v31 = vadd.f32 %v8364_v17, %v8499_v8  ;;  %v3993_v58 = vadd.f32 1.0, %v3897_v59  ;;  %v3866_v7 = vadd.f32 1.0, %v6369_v10 }
 0x7bf   : > { %v6375_v62 = vpop.eup %6374  ;;  %v3775_v45 = vmin.f32 %v8554_v18, 20.0  ;;  %v4118_v56 = vsel %vm2215_vm3, %v4076_v25, 0.0  ;;  %v5116_v27 = vadd.f32 -1.0, %v3895_v51  ;;  %v3991_v33 = vadd.f32 1.0, %v3895_v51 }
 0x7c0   : > { %v6377_v19 = vpop.eup %6376  ;;  %4119 = vadd.xlane.f32.xlu0 %v4118_v56  ;;  %v3778_v29 = vmin.f32 %v8560_v38, 20.0  ;;  %v3776_v52 = vmin.f32 %v8564_v31, 20.0  ;;  %v8570_v2 = vmul.f32 %v3864_v9, %v3864_v9  ;;  %6388 = vpow2.f32 %v3835_v61 }
 0x7c1   : > { %v6379_v28 = vpop.eup %6378  ;;  %v3867_v8 = vadd.f32 1.0, %v6377_v19  ;;  %v3831_v26 = vmul.f32 1.442695, %v3775_v45  ;;  %v8573_v59 = vmul.f32 %v6367_v14, %v8512_v54  ;;  %v3958_v10 = vmul.f32 %v5115_v49, %v8428_v48 }
 0x7c2   : > { %6390 = vrcp.f32 %v3988_v42  ;;  %v3837_v0 = vmul.f32 1.442695, %v3778_v29  ;;  %v6381_v63 = vpop.eup %6380  ;;  %v8577_v36 = vmul.f32 %v6373_v41, %v8515_v32  ;;  %v3956_v51 = vmul.f32 %v5113_v40, %v8436_v34 }
 0x7c3   : > { %6392 = vrcp.f32 %v3993_v58  ;;  %v3898_v5 = vmul.f32 %v3866_v7, %v3866_v7  ;;  %v8581_v25 = vmul.f32 %v5118_v16, %v8440_v50  ;;  %v3833_v61 = vmul.f32 1.442695, %v3776_v52 }
 0x7c4   : > { %v6383_v9 = vpop.eup %6382  ;;  %6394 = vrcp.f32 %v3991_v33  ;;  %v4077_v54 = vmul.f32 %v8486_v1, %v8486_v1  ;;  %v8586_v49 = vmul.f32 %v5116_v27, %v8446_v30  ;;  %v3992_v32 = vadd.f32 1.0, %v8570_v2 }
 0x7c5   : > { %v6385_v48 = vpop.eup %6384  ;;  %v8589_v14 = vmul.f32 %v3867_v8, %v3867_v8  ;;  %6396 = vpow2.f32 %v3831_v26  ;;  %v4078_v50 = vmul.f32 %v8502_v57, %v8502_v57  ;;  %v4079_v40 = vmul.f32 %v8544_v53, %v8544_v53 }
 0x7c6   : > { %6398 = vpow2.f32 %v3837_v0  ;;  %v4121_v34 = vsel %vm2215_vm3, %v4077_v54, 0.0  ;;  %v6387_v42 = vpop.eup %6386  ;;  %v8597_v41 = vmul.f32 %v6375_v62, %v8518_v11  ;;  %v3994_v30 = vadd.f32 1.0, %v3898_v5 }
 0x7c7   : > { %v3869_v16 = vadd.f32 1.0, %v6381_v63  ;;  %v3870_v58 = vadd.f32 1.0, %v6383_v9  ;;  %4122 = vadd.xlane.f32.xlu1 %v4121_v34  ;;  %v3868_v7 = vadd.f32 1.0, %v6387_v42  ;;  %6400 = vpow2.f32 %v3833_v61 }
 0x7c8   : > { %v4124_v45 = vsel %vm2215_vm3, %v4078_v50, 0.0  ;;  %v4127_v56 = vsel %vm2215_vm3, %v4079_v40, 0.0  ;;  %6402 = vrcp.f32 %v3992_v32  ;;  %v3995_v19 = vadd.f32 1.0, %v8589_v14 }
 0x7c9   : > { %4125 = vadd.xlane.f32.xlu0 %v4124_v45  ;;  %v8604_v27 = vadd.f32 %v8520_v47, %v8364_v17  ;;  %v8608_v11 = vadd.f32 %v8364_v17, %v8527_v3  ;;  %v8610_v62 = vmul.f32 %v3868_v7, %v3868_v7  ;;  %v4080_v33 = vmul.f32 %v8577_v36, %v8577_v36 }
 0x7ca   : > { %v8616_v29 = vadd.f32 %v8529_v4, %v8364_v17  ;;  %v8620_v52 = vadd.f32 %v8364_v17, %v8534_v35  ;;  %v6389_v8 = vpop.eup %6388  ;;  %v8623_v47 = vmul.f32 %v6379_v28, %v8547_v13  ;;  %v5119_v26 = vadd.f32 -1.0, %v3898_v5 }
 0x7cb   : > { %6404 = vrcp.f32 %v3994_v30  ;;  %4128 = vadd.xlane.f32.xlu1 %v4127_v56  ;;  %v3781_v3 = vmin.f32 %v8604_v27, 20.0  ;;  %v8626_v63 = vmul.f32 %v3869_v16, %v3869_v16  ;;  %v8628_v9 = vmul.f32 %v3870_v58, %v3870_v58 }
 0x7cc   : > { %v6391_v0 = vpop.eup %6390  ;;  %v3779_v4 = vmin.f32 %v8608_v11, 20.0  ;;  %v4130_v61 = vsel %vm2215_vm3, %v4080_v33, 0.0  ;;  %v3996_v35 = vadd.f32 1.0, %v8610_v62  ;;  %v3782_v13 = vmin.f32 %v8616_v29, 20.0 }
 0x7cd   : > { %v6393_v17 = vpop.eup %6392  ;;  %v3843_v54 = vmul.f32 1.442695, %v3781_v3  ;;  %4131 = vadd.xlane.f32.xlu0 %v4130_v61  ;;  %v3780_v28 = vmin.f32 %v8620_v52, 20.0  ;;  %v8635_v32 = vmul.f32 %v6385_v48, %v3958_v10  ;;  %6406 = vrcp.f32 %v3995_v19 }
 0x7ce   : > { %v6395_v5 = vpop.eup %6394  ;;  %v3873_v34 = vadd.f32 1.0, %v6389_v8  ;;  %v3839_v50 = vmul.f32 1.442695, %v3779_v4  ;;  %v8637_v42 = vmul.f32 %v6391_v0, %v3956_v51  ;;  %v3962_v30 = vmul.f32 %v5119_v26, %v8457_v20 }
 0x7cf   : > { %v6397_v40 = vpop.eup %6396  ;;  %v5117_v16 = vadd.f32 -1.0, %v8570_v2  ;;  %6408 = vpow2.f32 %v3843_v54  ;;  %v3845_v45 = vmul.f32 1.442695, %v3782_v13  ;;  %v3841_v56 = vmul.f32 1.442695, %v3780_v28 }
 0x7d0   : > { %v6399_v58 = vpop.eup %6398  ;;  %v3871_v7 = vadd.f32 1.0, %v6397_v40  ;;  %6410 = vpow2.f32 %v3839_v50  ;;  %v3997_v33 = vadd.f32 1.0, %v8626_v63  ;;  %v3998_v10 = vadd.f32 1.0, %v8628_v9 }
 0x7d1   : > { %6412 = vrcp.f32 %v3996_v35  ;;  %v4081_v48 = vmul.f32 %v8536_v37, %v8536_v37  ;;  %v6401_v51 = vpop.eup %6400  ;;  %v8645_v19 = vmul.f32 %v3873_v34, %v3873_v34  ;;  %v4082_v2 = vmul.f32 %v8573_v59, %v8573_v59 }
 0x7d2   : > { %v3903_v20 = vmul.f32 %v3871_v7, %v3871_v7  ;;  %6414 = vpow2.f32 %v3845_v45  ;;  %v6403_v8 = vpop.eup %6402  ;;  %v3874_v26 = vadd.f32 1.0, %v6399_v58  ;;  %v3872_v3 = vadd.f32 1.0, %v6401_v51 }
 0x7d3   : > { %6416 = vpow2.f32 %v3841_v56  ;;  %v4133_v0 = vsel %vm2215_vm3, %v4081_v48, 0.0  ;;  %v3960_v4 = vmul.f32 %v5117_v16, %v8474_v6  ;;  %v4136_v35 = vsel %vm2215_vm3, %v4082_v2, 0.0 }
 0x7d4   : > { %v3999_v61 = vadd.f32 1.0, %v3903_v20  ;;  %4134 = vadd.xlane.f32.xlu1 %v4133_v0  ;;  %v4083_v54 = vmul.f32 %v8623_v47, %v8623_v47  ;;  %v8655_v28 = vmul.f32 %v6395_v5, %v8586_v49  ;;  %6418 = vrcp.f32 %v3997_v33  ;;  %4137 = vadd.xlane.f32.xlu0 %v4136_v35 }
 0x7d5   : > { %v6405_v13 = vpop.eup %6404  ;;  %v3904_v34 = vmul.f32 %v3872_v3, %v3872_v3  ;;  %v4084_v50 = vmul.f32 %v8637_v42, %v8637_v42  ;;  %v8659_v40 = vmul.f32 %v6403_v8, %v3960_v4  ;;  %v5120_v6 = vadd.f32 -1.0, %v8589_v14 }
 0x7d6   : > { %6420 = vrcp.f32 %v3998_v10  ;;  %v4139_v16 = vsel %vm2215_vm3, %v4083_v54, 0.0  ;;  %v5121_v58 = vadd.f32 -1.0, %v8610_v62  ;;  %v4001_v7 = vadd.f32 1.0, %v8645_v19 }
 0x7d7   : > { %v8665_v45 = vmul.f32 %v3874_v26, %v3874_v26  ;;  %v4000_v49 = vadd.f32 1.0, %v3904_v34  ;;  %v6407_v5 = vpop.eup %6406  ;;  %6422 = vrcp.f32 %v3999_v61  ;;  %v4142_v56 = vsel %vm2215_vm3, %v4084_v50, 0.0 }
 0x7d8   : > { %4140 = vadd.xlane.f32.xlu1 %v4139_v16  ;;  %v4085_v33 = vmul.f32 %v8597_v41, %v8597_v41  ;;  %v4086_v14 = vmul.f32 %v8635_v32, %v8635_v32  ;;  %v8673_v48 = vmul.f32 %v6393_v17, %v8581_v25  ;;  %v5122_v62 = vadd.f32 -1.0, %v8626_v63  ;;  %4143 = vadd.xlane.f32.xlu0 %v4142_v56 }
 0x7d9   : > { %v6409_v10 = vpop.eup %6408  ;;  %6424 = vrcp.f32 %v4000_v49  ;;  %v4087_v51 = vmul.f32 %v8655_v28, %v8655_v28  ;;  %v8678_v8 = vmul.f32 %v6405_v13, %v3962_v30  ;;  %v3963_v26 = vmul.f32 %v5120_v6, %v8490_v46 }
 0x7da   : > { %v6411_v2 = vpop.eup %6410  ;;  %v3877_v3 = vadd.f32 1.0, %v6409_v10  ;;  %v4088_v0 = vmul.f32 %v8659_v40, %v8659_v40  ;;  %v5123_v25 = vadd.f32 -1.0, %v8628_v9  ;;  %v4002_v17 = vadd.f32 1.0, %v8665_v45 }
 0x7db   : > { %v6413_v4 = vpop.eup %6412  ;;  %v3875_v63 = vadd.f32 1.0, %v6411_v2  ;;  %v4145_v61 = vsel %vm2215_vm3, %v4085_v33, 0.0  ;;  %v8686_v54 = vmul.f32 %v6407_v5, %v3963_v26  ;;  %v3964_v30 = vmul.f32 %v5121_v58, %v8525_v60 }
 0x7dc   : > { %v6415_v35 = vpop.eup %6414  ;;  %6426 = vrcp.f32 %v4001_v7  ;;  %4146 = vadd.xlane.f32.xlu1 %v4145_v61  ;;  %v4148_v46 = vsel %vm2215_vm3, %v4086_v14, 0.0  ;;  %v5124_v50 = vadd.f32 -1.0, %v3903_v20  ;;  %v4151_v9 = vsel %vm2215_vm3, %v4087_v51, 0.0 }
 0x7dd   : > { %v6417_v13 = vpop.eup %6416  ;;  %v3907_v6 = vmul.f32 %v3875_v63, %v3875_v63  ;;  %v3878_v16 = vadd.f32 1.0, %v6415_v35  ;;  %4149 = vadd.xlane.f32.xlu0 %v4148_v46  ;;  %v8691_v49 = vmul.f32 %v6413_v4, %v3964_v30  ;;  %v3909_v56 = vmul.f32 %v3877_v3, %v3877_v3 }
 0x7de   : > { %v3876_v33 = vadd.f32 1.0, %v6417_v13  ;;  %v4154_v5 = vsel %vm2215_vm3, %v4088_v0, 0.0  ;;  %v6419_v10 = vpop.eup %6418  ;;  %6428 = vrcp.f32 %v4002_v17  ;;  %v4089_v7 = vmul.f32 %v8673_v48, %v8673_v48 }
 0x7df   : > { %v4003_v60 = vadd.f32 1.0, %v3907_v6  ;;  %v3910_v58 = vmul.f32 %v3878_v16, %v3878_v16  ;;  %v5125_v20 = vadd.f32 -1.0, %v3904_v34  ;;  %v4090_v51 = vmul.f32 %v8678_v8, %v8678_v8 }
 0x7e0   : > { %v6421_v14 = vpop.eup %6420  ;;  %v3908_v2 = vmul.f32 %v3876_v33, %v3876_v33  ;;  %4152 = vadd.xlane.f32.xlu1 %v4151_v9  ;;  %v3965_v26 = vmul.f32 %v5122_v62, %v8482_v43  ;;  %v4091_v3 = vmul.f32 %v8686_v54, %v8686_v54  ;;  %v3966_v4 = vmul.f32 %v5123_v25, %v8509_v12 }
 0x7e1   : > { %6430 = vrcp.f32 %v4003_v60  ;;  %4155 = vadd.xlane.f32.xlu0 %v4154_v5  ;;  %v6423_v0 = vpop.eup %6422  ;;  %v4005_v17 = vadd.f32 1.0, %v3909_v56  ;;  %v4092_v34 = vmul.f32 %v8691_v49, %v8691_v49  ;;  %v3967_v30 = vmul.f32 %v5124_v50, %v8554_v18 }
 0x7e2   : > { %v4004_v63 = vadd.f32 1.0, %v3908_v2  ;;  %v8704_v35 = vmul.f32 %v6419_v10, %v3965_v26  ;;  %v4006_v46 = vadd.f32 1.0, %v3910_v58  ;;  %v4157_v43 = vsel %vm2215_vm3, %v4089_v7, 0.0 }
 0x7e3   : > { %v6425_v61 = vpop.eup %6424  ;;  %v8708_v62 = vmul.f32 %v6421_v14, %v3966_v4  ;;  %v3968_v13 = vmul.f32 %v5125_v20, %v8564_v31  ;;  %v4160_v12 = vsel %vm2215_vm3, %v4090_v51, 0.0  ;;  %v5126_v25 = vadd.f32 -1.0, %v8645_v19 }
 0x7e4   : > { %4158 = vadd.xlane.f32.xlu1 %v4157_v43  ;;  %v8713_v16 = vmul.f32 %v6423_v0, %v3967_v30  ;;  %6432 = vrcp.f32 %v4004_v63  ;;  %v4163_v9 = vsel %vm2215_vm3, %v4091_v3, 0.0  ;;  %v5127_v18 = vadd.f32 -1.0, %v8665_v45 }
 0x7e5   : > { %4161 = vadd.xlane.f32.xlu0 %v4160_v12  ;;  %v8717_v50 = vmul.f32 %v6425_v61, %v3968_v13  ;;  %6434 = vrcp.f32 %v4005_v17  ;;  %v4166_v5 = vsel %vm2215_vm3, %v4092_v34, 0.0  ;;  %v5128_v31 = vadd.f32 -1.0, %v3907_v6 }
 0x7e6   : > { %v6427_v33 = vpop.eup %6426  ;;  %6436 = vrcp.f32 %v4006_v46  ;;  %v4093_v10 = vmul.f32 %v8704_v35, %v8704_v35  ;;  %v4094_v19 = vmul.f32 %v8708_v62, %v8708_v62  ;;  %v3969_v7 = vmul.f32 %v5126_v25, %v8542_v24 }
 0x7e7   : > { %v4095_v45 = vmul.f32 %v8713_v16, %v8713_v16  ;;  %v3970_v14 = vmul.f32 %v5127_v18, %v8560_v38  ;;  %v5129_v20 = vadd.f32 -1.0, %v3908_v2  ;;  %v4096_v6 = vmul.f32 %v8717_v50, %v8717_v50 }
 0x7e8   : > { %4164 = vadd.xlane.f32.xlu1 %v4163_v9  ;;  %v6429_v60 = vpop.eup %6428  ;;  %v8730_v26 = vmul.f32 %v6427_v33, %v3969_v7  ;;  %v3971_v3 = vmul.f32 %v5128_v31, %v8608_v11  ;;  %v4169_v0 = vsel %vm2215_vm3, %v4093_v10, 0.0  ;;  %v4172_v24 = vsel %vm2215_vm3, %v4094_v19, 0.0 }
 0x7e9   : > { %4167 = vadd.xlane.f32.xlu0 %v4166_v5  ;;  %v8734_v4 = vmul.f32 %v6429_v60, %v3970_v14  ;;  %v5130_v17 = vadd.f32 -1.0, %v3909_v56  ;;  %v4175_v38 = vsel %vm2215_vm3, %v4095_v45, 0.0  ;;  %v5131_v2 = vadd.f32 -1.0, %v3910_v58 }
 0x7ea   : > { %v3972_v34 = vmul.f32 %v5129_v20, %v8620_v52  ;;  %v4178_v61 = vsel %vm2215_vm3, %v4096_v6, 0.0  ;;  %v4097_v11 = vmul.f32 %v8730_v26, %v8730_v26 }
 0x7eb   : > { %v6431_v51 = vpop.eup %6430  ;;  %v4098_v56 = vmul.f32 %v8734_v4, %v8734_v4  ;;  %v3973_v12 = vmul.f32 %v5130_v17, %v8604_v27  ;;  %v3974_v58 = vmul.f32 %v5131_v2, %v8616_v29 }
 0x7ec   : > { %4170 = vadd.xlane.f32.xlu1 %v4169_v0  ;;  %v8737_v63 = vmul.f32 %v6431_v51, %v3971_v3  ;;  %v4181_v33 = vsel %vm2215_vm3, %v4097_v11, 0.0 }
 0x7ed   : > { %4173 = vadd.xlane.f32.xlu0 %v4172_v24  ;;  %v4184_v5 = vsel %vm2215_vm3, %v4098_v56, 0.0 }
 0x7ee   : > { %v6433_v30 = vpop.eup %6432  ;;  %v4099_v52 = vmul.f32 %v8737_v63, %v8737_v63 }
 0x7ef   : > { %v6435_v46 = vpop.eup %6434  ;;  %v8744_v43 = vmul.f32 %v6433_v30, %v3972_v34 }
 0x7f0   : > { %4176 = vadd.xlane.f32.xlu1 %v4175_v38  ;;  %v6437_v13 = vpop.eup %6436  ;;  %v8754_v9 = vmul.f32 %v6435_v46, %v3973_v12  ;;  %v4187_v27 = vsel %vm2215_vm3, %v4099_v52, 0.0 }
 0x7f1   : > { %4179 = vadd.xlane.f32.xlu0 %v4178_v61  ;;  %v4100_v25 = vmul.f32 %v8744_v43, %v8744_v43  ;;  %v8757_v18 = vmul.f32 %v6437_v13, %v3974_v58 }
 0x7f2   : > { %v4101_v29 = vmul.f32 %v8754_v9, %v8754_v9 }
 0x7f3   : > { %v4190_v31 = vsel %vm2215_vm3, %v4100_v25, 0.0  ;;  %v4102_v10 = vmul.f32 %v8757_v18, %v8757_v18 }
 0x7f4   : > { %4182 = vadd.xlane.f32.xlu1 %v4181_v33  ;;  %v4193_v19 = vsel %vm2215_vm3, %v4101_v29, 0.0 }
 0x7f5   : > { %4185 = vadd.xlane.f32.xlu0 %v4184_v5  ;;  %v4196_v60 = vsel %vm2215_vm3, %v4102_v10, 0.0 }
 0x7f8   : > { %4188 = vadd.xlane.f32.xlu1 %v4187_v27 }
 0x7f9   : > { %4191 = vadd.xlane.f32.xlu0 %v4190_v31 }
 0x7fc   : > { %4194 = vadd.xlane.f32.xlu1 %v4193_v19 }
 0x7fd   : > { %4197 = vadd.xlane.f32.xlu0 %v4196_v60 }
 0x831   : > { %v4105_v7 = vpop.xlane.xlu1 %4104 }
 0x832   : > { %v4199_v45 = vmax.f32 %v4105_v7, 1e-10 }
 0x834   : > { %6438 = vrsqrt.f32 %v4199_v45 }
 0x838   : > { %v4111_v6 = vpop.xlane.xlu1 %4110 }
 0x839   : > { %v4201_v3 = vmax.f32 %v4111_v6, 1e-10 }
 0x83a   : > { %v4108_v14 = vpop.xlane.xlu0 %4107 }
 0x83b   : > { %v4200_v20 = vmax.f32 %v4108_v14, 1e-10 }
 0x83d   : > { %6440 = vrsqrt.f32 %v4200_v20 }
 0x83e   : > { %v6439_v51 = vpop.eup %6438  ;;  %6442 = vrsqrt.f32 %v4201_v3 }
 0x83f   : > { %v4263_v24 = vmul.f32 %v6439_v51, %v8448_v39 }
 0x847   : > { %v6441_v0 = vpop.eup %6440 }
 0x848   : > { %v4264_v17 = vmul.f32 %v6441_v0, %v8453_v44  ;;  %v4114_v38 = vpop.xlane.xlu0 %4113  ;;  %v6443_v56 = vpop.eup %6442 }
 0x849   : > { %v4117_v2 = vpop.xlane.xlu1 %4116  ;;  %v4202_v34 = vmax.f32 %v4114_v38, 1e-10  ;;  %v4265_v44 = vmul.f32 %v6443_v56, %v8442_v55 }
 0x84a   : > { %v4203_v61 = vmax.f32 %v4117_v2, 1e-10  ;;  %v4295_v30 = vpack.c.bf16 %v4264_v17, %v4263_v24 }
 0x84b   : > { %6444 = vrsqrt.f32 %v4202_v34 }
 0x84c   : > { %5543 = vmatprep.mubr.msk.bf16.mxu0 %vm2215_vm3, %v4295_v30  ;;  %6446 = vrsqrt.f32 %v4203_v61 }
 0x84d   : > { %v4120_v11 = vpop.xlane.xlu0 %4119 }
 0x84e   : > { %v4204_v46 = vmax.f32 %v4120_v11, 1e-10 }
 0x850   : > { %6448 = vrsqrt.f32 %v4204_v46 }
 0x854   : > { %v4123_v13 = vpop.xlane.xlu1 %4122 }
 0x855   : > { %v4205_v12 = vmax.f32 %v4123_v13, 1e-10  ;;  %v6445_v52 = vpop.eup %6444 }
 0x856   : > { %v4126_v39 = vpop.xlane.xlu0 %4125  ;;  %v4266_v58 = vmul.f32 %v6445_v52, %v8451_v21  ;;  %v6447_v33 = vpop.eup %6446 }
 0x857   : > { %6450 = vrsqrt.f32 %v4205_v12  ;;  %v4206_v25 = vmax.f32 %v4126_v39, 1e-10  ;;  %v4267_v60 = vmul.f32 %v6447_v33, %v8494_v15 }
 0x858   : > { %v4129_v5 = vpop.xlane.xlu1 %4128  ;;  %v4296_v27 = vpack.c.bf16 %v4266_v58, %v4265_v44 }
 0x859   : > { %6452 = vrsqrt.f32 %v4206_v25  ;;  %v4207_v31 = vmax.f32 %v4129_v5, 1e-10 }
 0x85a   : > { %v6449_v29 = vpop.eup %6448  ;;  %v4132_v10 = vpop.xlane.xlu0 %4131  ;;  %5544 = vmatmul.mubr.msk.bf16.vlgmr.msra.gmra.mrb[64].mxu0 %vm2215_vm3, %v4296_v27 }
 0x85b   : > { %6454 = vrsqrt.f32 %v4207_v31  ;;  %v4208_v19 = vmax.f32 %v4132_v10, 1e-10  ;;  %v4268_v7 = vmul.f32 %v6449_v29, %v8504_v22 }
 0x85d   : > { %6456 = vrsqrt.f32 %v4208_v19  ;;  %v4297_v55 = vpack.c.bf16 %v4268_v7, %v4267_v60 }
 0x85f   : > { %5547 = vmatprep.mubr.msk.bf16.mxu0 %vm2215_vm3, %v4297_v55 }
 0x861   : > { %v6451_v21 = vpop.eup %6450  ;;  %v4135_v45 = vpop.xlane.xlu1 %4134 }
 0x862   : > { %v4209_v14 = vmax.f32 %v4135_v45, 1e-10  ;;  %v4138_v20 = vpop.xlane.xlu0 %4137  ;;  %v4269_v3 = vmul.f32 %v6451_v21, %v8486_v1 }
 0x863   : > { %v6453_v6 = vpop.eup %6452  ;;  %v4210_v51 = vmax.f32 %v4138_v20, 1e-10 }
 0x864   : > { %6458 = vrsqrt.f32 %v4209_v14  ;;  %v4270_v0 = vmul.f32 %v6453_v6, %v8502_v57 }
 0x865   : > { %v6455_v24 = vpop.eup %6454  ;;  %6460 = vrsqrt.f32 %v4210_v51  ;;  %v4141_v15 = vpop.xlane.xlu1 %4140 }
 0x866   : > { %v4211_v17 = vmax.f32 %v4141_v15, 1e-10  ;;  %v4144_v22 = vpop.xlane.xlu0 %4143  ;;  %v4298_v38 = vpack.c.bf16 %v4270_v0, %v4269_v3  ;;  %v4271_v61 = vmul.f32 %v6455_v24, %v8544_v53 }
 0x867   : > { %v6457_v2 = vpop.eup %6456  ;;  %v4212_v34 = vmax.f32 %v4144_v22, 1e-10 }
 0x868   : > { %6462 = vrsqrt.f32 %v4211_v17  ;;  %5548 = vmatmul.mubr.msk.bf16.gmra.mrb[68].mxu0 %vm2215_vm3, %v4298_v38  ;;  %v4272_v30 = vmul.f32 %v6457_v2, %v8577_v36 }
 0x869   : > { %6464 = vrsqrt.f32 %v4212_v34  ;;  %v4147_v11 = vpop.xlane.xlu1 %4146 }
 0x86a   : > { %v4213_v1 = vmax.f32 %v4147_v11, 1e-10  ;;  %v4150_v46 = vpop.xlane.xlu0 %4149  ;;  %v4299_v57 = vpack.c.bf16 %v4272_v30, %v4271_v61 }
 0x86b   : > { %v4214_v56 = vmax.f32 %v4150_v46, 1e-10 }
 0x86c   : > { %6466 = vrsqrt.f32 %v4213_v1  ;;  %5551 = vmatprep.mubr.msk.bf16.mxu0 %vm2215_vm3, %v4299_v57 }
 0x86d   : > { %6468 = vrsqrt.f32 %v4214_v56  ;;  %v4153_v13 = vpop.xlane.xlu1 %4152 }
 0x86e   : > { %v6459_v12 = vpop.eup %6458  ;;  %v4215_v52 = vmax.f32 %v4153_v13, 1e-10  ;;  %v4156_v39 = vpop.xlane.xlu0 %4155 }
 0x86f   : > { %v6461_v44 = vpop.eup %6460  ;;  %v4216_v58 = vmax.f32 %v4156_v39, 1e-10  ;;  %v4273_v53 = vmul.f32 %v6459_v12, %v8536_v37 }
 0x870   : > { %6470 = vrsqrt.f32 %v4215_v52  ;;  %v4274_v36 = vmul.f32 %v6461_v44, %v8573_v59 }
 0x871   : > { %6472 = vrsqrt.f32 %v4216_v58  ;;  %v4159_v25 = vpop.xlane.xlu1 %4158 }
 0x872   : > { %v6463_v33 = vpop.eup %6462  ;;  %v4217_v5 = vmax.f32 %v4159_v25, 1e-10  ;;  %v4162_v27 = vpop.xlane.xlu0 %4161  ;;  %v4300_v31 = vpack.c.bf16 %v4274_v36, %v4273_v53 }
 0x873   : > { %v6465_v29 = vpop.eup %6464  ;;  %v4218_v10 = vmax.f32 %v4162_v27, 1e-10  ;;  %v4275_v19 = vmul.f32 %v6463_v33, %v8623_v47 }
 0x874   : > { %6474 = vrsqrt.f32 %v4217_v5  ;;  %5552 = vmatmul.mubr.msk.bf16.gmra.mrb[72].mxu0 %vm2215_vm3, %v4300_v31  ;;  %v4276_v60 = vmul.f32 %v6465_v29, %v8637_v42 }
 0x875   : > { %6476 = vrsqrt.f32 %v4218_v10  ;;  %v4165_v7 = vpop.xlane.xlu1 %4164 }
 0x876   : > { %v6467_v37 = vpop.eup %6466  ;;  %v4219_v55 = vmax.f32 %v4165_v7, 1e-10  ;;  %v4168_v59 = vpop.xlane.xlu0 %4167  ;;  %v4301_v21 = vpack.c.bf16 %v4276_v60, %v4275_v19 }
 0x877   : > { %v6469_v45 = vpop.eup %6468  ;;  %v4220_v14 = vmax.f32 %v4168_v59, 1e-10  ;;  %v4277_v20 = vmul.f32 %v6467_v37, %v8597_v41 }
 0x878   : > { %6478 = vrsqrt.f32 %v4219_v55  ;;  %5555 = vmatprep.mubr.msk.bf16.mxu0 %vm2215_vm3, %v4301_v21  ;;  %v4278_v6 = vmul.f32 %v6469_v45, %v8635_v32 }
 0x879   : > { %6480 = vrsqrt.f32 %v4220_v14  ;;  %v4171_v51 = vpop.xlane.xlu1 %4170 }
 0x87a   : > { %v6471_v47 = vpop.eup %6470  ;;  %v4221_v3 = vmax.f32 %v4171_v51, 1e-10  ;;  %v4174_v42 = vpop.xlane.xlu0 %4173  ;;  %v4302_v0 = vpack.c.bf16 %v4278_v6, %v4277_v20 }
 0x87b   : > { %v6473_v24 = vpop.eup %6472  ;;  %v4222_v15 = vmax.f32 %v4174_v42, 1e-10  ;;  %v4279_v17 = vmul.f32 %v6471_v47, %v8655_v28 }
 0x87c   : > { %6482 = vrsqrt.f32 %v4221_v3  ;;  %5556 = vmatmul.mubr.msk.bf16.gmra.mrb[76].mxu0 %vm2215_vm3, %v4302_v0  ;;  %v4280_v22 = vmul.f32 %v6473_v24, %v8659_v40 }
 0x87d   : > { %6484 = vrsqrt.f32 %v4222_v15  ;;  %v4177_v38 = vpop.xlane.xlu1 %4176 }
 0x87e   : > { %v6475_v41 = vpop.eup %6474  ;;  %v4223_v2 = vmax.f32 %v4177_v38, 1e-10  ;;  %v4180_v32 = vpop.xlane.xlu0 %4179  ;;  %v4303_v34 = vpack.c.bf16 %v4280_v22, %v4279_v17 }
 0x87f   : > { %v6477_v61 = vpop.eup %6476  ;;  %v4224_v30 = vmax.f32 %v4180_v32, 1e-10  ;;  %v4281_v11 = vmul.f32 %v6475_v41, %v8673_v48 }
 0x880   : > { %6486 = vrsqrt.f32 %v4223_v2  ;;  %5559 = vmatprep.mubr.msk.bf16.mxu0 %vm2215_vm3, %v4303_v34  ;;  %v4282_v1 = vmul.f32 %v6477_v61, %v8678_v8 }
 0x881   : > { %6488 = vrsqrt.f32 %v4224_v30  ;;  %v4183_v46 = vpop.xlane.xlu1 %4182 }
 0x882   : > { %v6479_v28 = vpop.eup %6478  ;;  %v4225_v57 = vmax.f32 %v4183_v46, 1e-10  ;;  %v4186_v40 = vpop.xlane.xlu0 %4185  ;;  %v4304_v56 = vpack.c.bf16 %v4282_v1, %v4281_v11 }
 0x883   : > { %v6481_v13 = vpop.eup %6480  ;;  %v4226_v12 = vmax.f32 %v4186_v40, 1e-10  ;;  %v4283_v52 = vmul.f32 %v6479_v28, %v8686_v54 }
 0x884   : > { %6490 = vrsqrt.f32 %v4225_v57  ;;  %5560 = vmatmul.mubr.msk.bf16.gmra.mrb[80].mxu0 %vm2215_vm3, %v4304_v56  ;;  %v4284_v39 = vmul.f32 %v6481_v13, %v8691_v49 }
 0x885   : > { %6492 = vrsqrt.f32 %v4226_v12  ;;  %v4189_v44 = vpop.xlane.xlu1 %4188 }
 0x886   : > { %v6483_v48 = vpop.eup %6482  ;;  %v4227_v58 = vmax.f32 %v4189_v44, 1e-10  ;;  %v4192_v8 = vpop.xlane.xlu0 %4191  ;;  %v4305_v53 = vpack.c.bf16 %v4284_v39, %v4283_v52 }
 0x887   : > { %v6485_v36 = vpop.eup %6484  ;;  %v4228_v25 = vmax.f32 %v4192_v8, 1e-10  ;;  %v4285_v33 = vmul.f32 %v6483_v48, %v8704_v35 }
 0x888   : > { %6494 = vrsqrt.f32 %v4227_v58  ;;  %5563 = vmatprep.mubr.msk.bf16.mxu0 %vm2215_vm3, %v4305_v53  ;;  %v4286_v5 = vmul.f32 %v6485_v36, %v8708_v62 }
 0x889   : > { %6496 = vrsqrt.f32 %v4228_v25  ;;  %v4195_v27 = vpop.xlane.xlu1 %4194 }
 0x88a   : > { %v6487_v54 = vpop.eup %6486  ;;  %v4229_v31 = vmax.f32 %v4195_v27, 1e-10  ;;  %v4198_v49 = vpop.xlane.xlu0 %4197  ;;  %v4306_v29 = vpack.c.bf16 %v4286_v5, %v4285_v33 }
 0x88b   : > { %v6489_v10 = vpop.eup %6488  ;;  %v4230_v19 = vmax.f32 %v4198_v49, 1e-10  ;;  %v4287_v60 = vmul.f32 %v6487_v54, %v8713_v16 }
 0x88c   : > { %6498 = vrsqrt.f32 %v4229_v31  ;;  %5564 = vmatmul.mubr.msk.bf16.gmra.mrb[84].mxu0 %vm2215_vm3, %v4306_v29  ;;  %v4288_v7 = vmul.f32 %v6489_v10, %v8717_v50 }
 0x88d   : > { %6500 = vrsqrt.f32 %v4230_v19 }
 0x88e   : > { %v6491_v37 = vpop.eup %6490  ;;  %v4307_v35 = vpack.c.bf16 %v4288_v7, %v4287_v60 }
 0x88f   : > { %v6493_v55 = vpop.eup %6492  ;;  %v4289_v62 = vmul.f32 %v6491_v37, %v8730_v26 }
 0x890   : > { %5567 = vmatprep.mubr.msk.bf16.mxu0 %vm2215_vm3, %v4307_v35  ;;  %v4290_v59 = vmul.f32 %v6493_v55, %v8734_v4  ;;  %v4317_v4 = vsub.s32 5, %v9099_v23 }
 0x892   : > { %v6495_v21 = vpop.eup %6494  ;;  %v4308_v45 = vpack.c.bf16 %v4290_v59, %v4289_v62 }
 0x893   : > { %v6497_v14 = vpop.eup %6496  ;;  %v4291_v20 = vmul.f32 %v6495_v21, %v8737_v63  ;;  %v6632_v63 = vld [vmem:[%s8946_s3] sm:$0xff] }
 0x894   : > { %5568 = vmatmul.mubr.msk.bf16.gmra.mrb[88].mxu0 %vm2215_vm3, %v4308_v45  ;;  %v4292_v16 = vmul.f32 %v6497_v14, %v8744_v43  ;;  %v8820_v42 = vrot.slane %v6632_v63, %v4317_v4 }
 0x896   : > { %v6499_v50 = vpop.eup %6498  ;;  %v4309_v6 = vpack.c.bf16 %v4292_v16, %v4291_v20 }
 0x897   : > { %v6501_v51 = vpop.eup %6500  ;;  %v4293_v47 = vmul.f32 %v6499_v50, %v8754_v9 }
 0x898   : > { %5571 = vmatprep.mubr.msk.bf16.mxu0 %vm2215_vm3, %v4309_v6  ;;  %v4294_v26 = vmul.f32 %v6501_v51, %v8757_v18 }
 0x89a   : > { %v4310_v3 = vpack.c.bf16 %v4294_v26, %v4293_v47 }
 0x89c   : > { %5572 = vmatmul.mubr.msk.bf16.gmra.mrb[92].mxu0 %vm2215_vm3, %v4310_v3 }
 0x92d   : > { %v5545_v43 = vpop.f32.mrb[64].mxu0 }
 0x92e   : > { %v4422_v0 = vadd.f32 %v5545_v43, %v8820_v42  ;;  %v4413_v24 = vpop.f32.mrb[65].mxu0 }
 0x92f   : > { %v4414_v15 = vadd.f32 %v4413_v24, %v8820_v42  ;;  %v5546_v9 = vpop.f32.mrb[66].mxu0 }
 0x930   : > { %v5152_v17 = vmul.f32 -1.442695, %v4422_v0  ;;  %v4425_v18 = vadd.f32 %v5546_v9, %v8820_v42  ;;  %v4416_v22 = vpop.f32.mrb[67].mxu0 }
 0x931   : > { %v5150_v38 = vmul.f32 -1.442695, %v4414_v15  ;;  %v4417_v23 = vadd.f32 %v4416_v22, %v8820_v42 }
 0x932   : > { %6502 = vpow2.f32 %v5152_v17  ;;  %v5153_v41 = vmul.f32 -1.442695, %v4425_v18 }
 0x933   : > { %6504 = vpow2.f32 %v5150_v38  ;;  %v5151_v2 = vmul.f32 -1.442695, %v4417_v23 }
 0x934   : > { %6506 = vpow2.f32 %v5153_v41 }
 0x935   : > { %6508 = vpow2.f32 %v5151_v2 }
 0x93b   : > { %v5549_v32 = vpop.f32.mrb[68].mxu0 }
 0x93c   : > { %v4438_v34 = vadd.f32 %v5549_v32, %v8820_v42  ;;  %v4429_v61 = vpop.f32.mrb[69].mxu0  ;;  %v6503_v30 = vpop.eup %6502 }
 0x93d   : > { %v4430_v11 = vadd.f32 %v4429_v61, %v8820_v42  ;;  %v5550_v1 = vpop.f32.mrb[70].mxu0  ;;  %v6505_v46 = vpop.eup %6504  ;;  %v4638_v28 = vadd.f32 1.0, %v6503_v30 }
 0x93e   : > { %v4441_v57 = vadd.f32 %v5550_v1, %v8820_v42  ;;  %v4432_v40 = vpop.f32.mrb[71].mxu0  ;;  %v6507_v56 = vpop.eup %6506  ;;  %v4636_v13 = vadd.f32 1.0, %v6505_v46  ;;  %v5156_v44 = vmul.f32 -1.442695, %v4438_v34 }
 0x93f   : > { %v4433_v12 = vadd.f32 %v4432_v40, %v8820_v42  ;;  %v6509_v52 = vpop.eup %6508  ;;  %6510 = vrcp.f32 %v4638_v28  ;;  %v4639_v39 = vadd.f32 1.0, %v6507_v56  ;;  %v5154_v58 = vmul.f32 -1.442695, %v4430_v11 }
 0x940   : > { %6512 = vrcp.f32 %v4636_v13  ;;  %v4637_v48 = vadd.f32 1.0, %v6509_v52  ;;  %v5157_v8 = vmul.f32 -1.442695, %v4441_v57 }
 0x941   : > { %6514 = vrcp.f32 %v4639_v39  ;;  %v5155_v53 = vmul.f32 -1.442695, %v4433_v12 }
 0x942   : > { %6516 = vrcp.f32 %v4637_v48 }
 0x943   : > { %6518 = vpow2.f32 %v5156_v44 }
 0x944   : > { %6520 = vpow2.f32 %v5154_v58 }
 0x945   : > { %6522 = vpow2.f32 %v5157_v8 }
 0x946   : > { %6524 = vpow2.f32 %v5155_v53 }
 0x947   : > { %v5553_v36 = vpop.f32.mrb[72].mxu0 }
 0x948   : > { %v4454_v25 = vadd.f32 %v5553_v36, %v8820_v42  ;;  %v4445_v33 = vpop.f32.mrb[73].mxu0 }
 0x949   : > { %v4446_v5 = vadd.f32 %v4445_v33, %v8820_v42  ;;  %v5554_v27 = vpop.f32.mrb[74].mxu0  ;;  %v6511_v54 = vpop.eup %6510 }
 0x94a   : > { %v5160_v31 = vmul.f32 -1.442695, %v4454_v25  ;;  %v4457_v49 = vadd.f32 %v5554_v27, %v8820_v42  ;;  %v4448_v29 = vpop.f32.mrb[75].mxu0  ;;  %v6513_v10 = vpop.eup %6512  ;;  %4734 = vst [vmem:[%s8836_s5 + $0x10] sm:$0xff] %v6511_v54 }
 0x94b   : > { %v5158_v19 = vmul.f32 -1.442695, %v4446_v5  ;;  %v4449_v60 = vadd.f32 %v4448_v29, %v8820_v42  ;;  %v6515_v7 = vpop.eup %6514  ;;  %4732 = vst [vmem:[%s8836_s5] sm:$0xff] %v6513_v10 }
 0x94c   : > { %6526 = vpow2.f32 %v5160_v31  ;;  %v5161_v37 = vmul.f32 -1.442695, %v4457_v49  ;;  %v6517_v35 = vpop.eup %6516  ;;  %4735 = vst [vmem:[%s8836_s5 + $0x18] sm:$0xff] %v6515_v7 }
 0x94d   : > { %6528 = vpow2.f32 %v5158_v19  ;;  %v5159_v55 = vmul.f32 -1.442695, %v4449_v60  ;;  %v6519_v62 = vpop.eup %6518  ;;  %4733 = vst [vmem:[%s8836_s5 + $0x8] sm:$0xff] %v6517_v35 }
 0x94e   : > { %6530 = vpow2.f32 %v5161_v37  ;;  %v6521_v59 = vpop.eup %6520  ;;  %v4642_v21 = vadd.f32 1.0, %v6519_v62 }
 0x94f   : > { %6532 = vpow2.f32 %v5159_v55  ;;  %v5557_v45 = vpop.f32.mrb[76].mxu0  ;;  %v6523_v14 = vpop.eup %6522  ;;  %v4640_v20 = vadd.f32 1.0, %v6521_v59 }
 0x950   : > { %v4470_v16 = vadd.f32 %v5557_v45, %v8820_v42  ;;  %v4461_v50 = vpop.f32.mrb[77].mxu0  ;;  %v6525_v6 = vpop.eup %6524  ;;  %6534 = vrcp.f32 %v4642_v21  ;;  %v4643_v51 = vadd.f32 1.0, %v6523_v14 }
 0x951   : > { %v4462_v47 = vadd.f32 %v4461_v50, %v8820_v42  ;;  %v5558_v26 = vpop.f32.mrb[78].mxu0  ;;  %6536 = vrcp.f32 %v4640_v20  ;;  %v4641_v3 = vadd.f32 1.0, %v6525_v6 }
 0x952   : > { %v5164_v4 = vmul.f32 -1.442695, %v4470_v16  ;;  %v4473_v63 = vadd.f32 %v5558_v26, %v8820_v42  ;;  %v4464_v43 = vpop.f32.mrb[79].mxu0  ;;  %6538 = vrcp.f32 %v4643_v51 }
 0x953   : > { %v5162_v0 = vmul.f32 -1.442695, %v4462_v47  ;;  %v4465_v24 = vadd.f32 %v4464_v43, %v8820_v42  ;;  %6540 = vrcp.f32 %v4641_v3 }
 0x954   : > { %v5165_v15 = vmul.f32 -1.442695, %v4473_v63  ;;  %6542 = vpow2.f32 %v5164_v4 }
 0x955   : > { %v5163_v9 = vmul.f32 -1.442695, %v4465_v24  ;;  %6544 = vpow2.f32 %v5162_v0 }
 0x956   : > { %v6527_v17 = vpop.eup %6526  ;;  %6546 = vpow2.f32 %v5165_v15 }
 0x957   : > { %v6529_v18 = vpop.eup %6528  ;;  %v4646_v22 = vadd.f32 1.0, %v6527_v17  ;;  %v5561_v38 = vpop.f32.mrb[80].mxu0  ;;  %6548 = vpow2.f32 %v5163_v9 }
 0x958   : > { %v6531_v23 = vpop.eup %6530  ;;  %v4644_v41 = vadd.f32 1.0, %v6529_v18  ;;  %v4486_v2 = vadd.f32 %v5561_v38, %v8820_v42  ;;  %v4477_v32 = vpop.f32.mrb[81].mxu0 }
 0x959   : > { %v6533_v34 = vpop.eup %6532  ;;  %6550 = vrcp.f32 %v4646_v22  ;;  %v4647_v61 = vadd.f32 1.0, %v6531_v23  ;;  %v4478_v30 = vadd.f32 %v4477_v32, %v8820_v42  ;;  %v5562_v11 = vpop.f32.mrb[82].mxu0 }
 0x95a   : > { %6552 = vrcp.f32 %v4644_v41  ;;  %v4645_v1 = vadd.f32 1.0, %v6533_v34  ;;  %v5168_v46 = vmul.f32 -1.442695, %v4486_v2  ;;  %v4489_v28 = vadd.f32 %v5562_v11, %v8820_v42  ;;  %v4480_v57 = vpop.f32.mrb[83].mxu0  ;;  %v6535_v40 = vpop.eup %6534 }
 0x95b   : > { %6554 = vrcp.f32 %v4647_v61  ;;  %v5166_v56 = vmul.f32 -1.442695, %v4478_v30  ;;  %v4481_v13 = vadd.f32 %v4480_v57, %v8820_v42  ;;  %v6537_v12 = vpop.eup %6536  ;;  %4738 = vst [vmem:[%s8836_s5 + $0x30] sm:$0xff] %v6535_v40 }
 0x95c   : > { %6556 = vrcp.f32 %v4645_v1  ;;  %v5169_v52 = vmul.f32 -1.442695, %v4489_v28  ;;  %v6539_v39 = vpop.eup %6538  ;;  %4736 = vst [vmem:[%s8836_s5 + $0x20] sm:$0xff] %v6537_v12 }
 0x95d   : > { %6558 = vpow2.f32 %v5168_v46  ;;  %v5167_v44 = vmul.f32 -1.442695, %v4481_v13  ;;  %v6541_v48 = vpop.eup %6540  ;;  %4739 = vst [vmem:[%s8836_s5 + $0x38] sm:$0xff] %v6539_v39 }
 0x95e   : > { %6560 = vpow2.f32 %v5166_v56  ;;  %v6543_v58 = vpop.eup %6542  ;;  %4737 = vst [vmem:[%s8836_s5 + $0x28] sm:$0xff] %v6541_v48 }
 0x95f   : > { %6562 = vpow2.f32 %v5169_v52  ;;  %v5565_v8 = vpop.f32.mrb[84].mxu0  ;;  %v6545_v53 = vpop.eup %6544  ;;  %v4650_v36 = vadd.f32 1.0, %v6543_v58 }
 0x960   : > { %6564 = vpow2.f32 %v5167_v44  ;;  %v4502_v25 = vadd.f32 %v5565_v8, %v8820_v42  ;;  %v4493_v33 = vpop.f32.mrb[85].mxu0  ;;  %v6547_v5 = vpop.eup %6546  ;;  %v4648_v27 = vadd.f32 1.0, %v6545_v53 }
 0x961   : > { %v4494_v54 = vadd.f32 %v4493_v33, %v8820_v42  ;;  %v5566_v31 = vpop.f32.mrb[86].mxu0  ;;  %v6549_v49 = vpop.eup %6548  ;;  %6566 = vrcp.f32 %v4650_v36  ;;  %v4651_v29 = vadd.f32 1.0, %v6547_v5 }
 0x962   : > { %v5172_v10 = vmul.f32 -1.442695, %v4502_v25  ;;  %v4505_v19 = vadd.f32 %v5566_v31, %v8820_v42  ;;  %v4496_v60 = vpop.f32.mrb[87].mxu0  ;;  %6568 = vrcp.f32 %v4648_v27  ;;  %v4649_v37 = vadd.f32 1.0, %v6549_v49 }
 0x963   : > { %v6551_v7 = vpop.eup %6550  ;;  %v5170_v35 = vmul.f32 -1.442695, %v4494_v54  ;;  %v4497_v55 = vadd.f32 %v4496_v60, %v8820_v42  ;;  %6570 = vrcp.f32 %v4651_v29 }
 0x964   : > { %v6553_v62 = vpop.eup %6552  ;;  %4742 = vst [vmem:[%s8836_s5 + $0x50] sm:$0xff] %v6551_v7  ;;  %v5173_v59 = vmul.f32 -1.442695, %v4505_v19  ;;  %6572 = vrcp.f32 %v4649_v37 }
 0x965   : > { %v6555_v21 = vpop.eup %6554  ;;  %4740 = vst [vmem:[%s8836_s5 + $0x40] sm:$0xff] %v6553_v62  ;;  %v5171_v45 = vmul.f32 -1.442695, %v4497_v55  ;;  %6574 = vpow2.f32 %v5172_v10 }
 0x966   : > { %v6557_v14 = vpop.eup %6556  ;;  %4743 = vst [vmem:[%s8836_s5 + $0x58] sm:$0xff] %v6555_v21  ;;  %6576 = vpow2.f32 %v5170_v35 }
 0x967   : > { %v6559_v20 = vpop.eup %6558  ;;  %4741 = vst [vmem:[%s8836_s5 + $0x48] sm:$0xff] %v6557_v14  ;;  %v5569_v16 = vpop.f32.mrb[88].mxu0  ;;  %6578 = vpow2.f32 %v5173_v59 }
 0x968   : > { %v6561_v50 = vpop.eup %6560  ;;  %v4654_v6 = vadd.f32 1.0, %v6559_v20  ;;  %v4518_v51 = vadd.f32 %v5569_v16, %v8820_v42  ;;  %v4509_v47 = vpop.f32.mrb[89].mxu0  ;;  %6580 = vpow2.f32 %v5171_v45 }
 0x969   : > { %v6563_v26 = vpop.eup %6562  ;;  %v4652_v3 = vadd.f32 1.0, %v6561_v50  ;;  %v4510_v4 = vadd.f32 %v4509_v47, %v8820_v42  ;;  %v5570_v63 = vpop.f32.mrb[90].mxu0 }
 0x96a   : > { %v6565_v43 = vpop.eup %6564  ;;  %6582 = vrcp.f32 %v4654_v6  ;;  %v4655_v0 = vadd.f32 1.0, %v6563_v26  ;;  %v5176_v24 = vmul.f32 -1.442695, %v4518_v51  ;;  %v4521_v15 = vadd.f32 %v5570_v63, %v8820_v42  ;;  %v4512_v9 = vpop.f32.mrb[91].mxu0 }
 0x96b   : > { %6584 = vrcp.f32 %v4652_v3  ;;  %v4653_v17 = vadd.f32 1.0, %v6565_v43  ;;  %v5174_v18 = vmul.f32 -1.442695, %v4510_v4  ;;  %v4513_v22 = vadd.f32 %v4512_v9, %v8820_v42  ;;  %v6567_v38 = vpop.eup %6566 }
 0x96c   : > { %6586 = vrcp.f32 %v4655_v0  ;;  %v5177_v23 = vmul.f32 -1.442695, %v4521_v15  ;;  %v6569_v41 = vpop.eup %6568  ;;  %4746 = vst [vmem:[%s8836_s5 + $0x70] sm:$0xff] %v6567_v38 }
 0x96d   : > { %6588 = vrcp.f32 %v4653_v17  ;;  %v5175_v2 = vmul.f32 -1.442695, %v4513_v22  ;;  %v6571_v32 = vpop.eup %6570  ;;  %4744 = vst [vmem:[%s8836_s5 + $0x60] sm:$0xff] %v6569_v41 }
 0x96e   : > { %6590 = vpow2.f32 %v5176_v24  ;;  %v6573_v34 = vpop.eup %6572  ;;  %4747 = vst [vmem:[%s8836_s5 + $0x78] sm:$0xff] %v6571_v32 }
 0x96f   : > { %6592 = vpow2.f32 %v5174_v18  ;;  %v5573_v61 = vpop.f32.mrb[92].mxu0  ;;  %v6575_v30 = vpop.eup %6574  ;;  %4745 = vst [vmem:[%s8836_s5 + $0x68] sm:$0xff] %v6573_v34 }
 0x970   : > { %6594 = vpow2.f32 %v5177_v23  ;;  %v4534_v11 = vadd.f32 %v5573_v61, %v8820_v42  ;;  %v4525_v1 = vpop.f32.mrb[93].mxu0  ;;  %v6577_v46 = vpop.eup %6576  ;;  %v4658_v28 = vadd.f32 1.0, %v6575_v30 }
 0x971   : > { %6596 = vpow2.f32 %v5175_v2  ;;  %v4526_v57 = vadd.f32 %v4525_v1, %v8820_v42  ;;  %v5574_v40 = vpop.f32.mrb[94].mxu0  ;;  %v6579_v56 = vpop.eup %6578  ;;  %v4656_v13 = vadd.f32 1.0, %v6577_v46 }
 0x972   : > { %v4537_v12 = vadd.f32 %v5574_v40, %v8820_v42  ;;  %v4528_v52 = vpop.f32.mrb[95].mxu0  ;;  %v6581_v39 = vpop.eup %6580  ;;  %6598 = vrcp.f32 %v4658_v28  ;;  %v4659_v44 = vadd.f32 1.0, %v6579_v56  ;;  %v5180_v48 = vmul.f32 -1.442695, %v4534_v11 }
 0x973   : > { %v4529_v58 = vadd.f32 %v4528_v52, %v8820_v42  ;;  %6600 = vrcp.f32 %v4656_v13  ;;  %v4657_v53 = vadd.f32 1.0, %v6581_v39  ;;  %v5178_v36 = vmul.f32 -1.442695, %v4526_v57 }
 0x974   : > { %v6583_v8 = vpop.eup %6582  ;;  %6602 = vrcp.f32 %v4659_v44  ;;  %v5181_v33 = vmul.f32 -1.442695, %v4537_v12 }
 0x975   : > { %v6585_v25 = vpop.eup %6584  ;;  %4750 = vst [vmem:[%s8836_s5 + $0x90] sm:$0xff] %v6583_v8  ;;  %6604 = vrcp.f32 %v4657_v53  ;;  %v5179_v27 = vmul.f32 -1.442695, %v4529_v58 }
 0x976   : > { %v6587_v5 = vpop.eup %6586  ;;  %4748 = vst [vmem:[%s8836_s5 + $0x80] sm:$0xff] %v6585_v25  ;;  %6606 = vpow2.f32 %v5180_v48 }
 0x977   : > { %v6589_v54 = vpop.eup %6588  ;;  %4751 = vst [vmem:[%s8836_s5 + $0x98] sm:$0xff] %v6587_v5  ;;  %6608 = vpow2.f32 %v5178_v36 }
 0x978   : > { %v6591_v31 = vpop.eup %6590  ;;  %4749 = vst [vmem:[%s8836_s5 + $0x88] sm:$0xff] %v6589_v54  ;;  %6610 = vpow2.f32 %v5181_v33 }
 0x979   : > { %v6593_v42 = vpop.eup %6592  ;;  %v4662_v49 = vadd.f32 1.0, %v6591_v31  ;;  %6612 = vpow2.f32 %v5179_v27 }
 0x97a   : > { %v6595_v29 = vpop.eup %6594  ;;  %v4660_v10 = vadd.f32 1.0, %v6593_v42 }
 0x97b   : > { %v6597_v19 = vpop.eup %6596  ;;  %6614 = vrcp.f32 %v4662_v49  ;;  %v4663_v60 = vadd.f32 1.0, %v6595_v29 }
 0x97c   : > { %6616 = vrcp.f32 %v4660_v10  ;;  %v4661_v7 = vadd.f32 1.0, %v6597_v19  ;;  %v6599_v37 = vpop.eup %6598 }
 0x97d   : > { %6618 = vrcp.f32 %v4663_v60  ;;  %v6601_v35 = vpop.eup %6600  ;;  %4754 = vst [vmem:[%s8836_s5 + $0xb0] sm:$0xff] %v6599_v37 }
 0x97e   : > { %6620 = vrcp.f32 %v4661_v7  ;;  %v6603_v55 = vpop.eup %6602  ;;  %4752 = vst [vmem:[%s8836_s5 + $0xa0] sm:$0xff] %v6601_v35 }
 0x97f   : > { %v6605_v62 = vpop.eup %6604  ;;  %4755 = vst [vmem:[%s8836_s5 + $0xb8] sm:$0xff] %v6603_v55 }
 0x980   : > { %v6607_v59 = vpop.eup %6606  ;;  %4753 = vst [vmem:[%s8836_s5 + $0xa8] sm:$0xff] %v6605_v62 }
 0x981   : > { %v6609_v21 = vpop.eup %6608  ;;  %v4666_v45 = vadd.f32 1.0, %v6607_v59 }
 0x982   : > { %v6611_v14 = vpop.eup %6610  ;;  %v4664_v20 = vadd.f32 1.0, %v6609_v21 }
 0x983   : > { %v6613_v16 = vpop.eup %6612  ;;  %6622 = vrcp.f32 %v4666_v45  ;;  %v4667_v50 = vadd.f32 1.0, %v6611_v14 }
 0x984   : > { %6624 = vrcp.f32 %v4664_v20  ;;  %v4665_v51 = vadd.f32 1.0, %v6613_v16 }
 0x985   : > { %v6615_v6 = vpop.eup %6614  ;;  %6626 = vrcp.f32 %v4667_v50 }
 0x986   : > { %v6617_v47 = vpop.eup %6616  ;;  %4758 = vst [vmem:[%s8836_s5 + $0xd0] sm:$0xff] %v6615_v6  ;;  %6628 = vrcp.f32 %v4665_v51 }
 0x987   : > { %v6619_v26 = vpop.eup %6618  ;;  %4756 = vst [vmem:[%s8836_s5 + $0xc0] sm:$0xff] %v6617_v47 }
 0x988   : > { %v6621_v3 = vpop.eup %6620  ;;  %4759 = vst [vmem:[%s8836_s5 + $0xd8] sm:$0xff] %v6619_v26 }
 0x989   : > { %4757 = vst [vmem:[%s8836_s5 + $0xc8] sm:$0xff] %v6621_v3 }
 0x98d   : > { %v6623_v4 = vpop.eup %6622 }
 0x98e   : > { %v6625_v63 = vpop.eup %6624  ;;  %4762 = vst [vmem:[%s8836_s5 + $0xf0] sm:$0xff] %v6623_v4 }
 0x98f   : > { %v6627_v43 = vpop.eup %6626  ;;  %4760 = vst [vmem:[%s8836_s5 + $0xe0] sm:$0xff] %v6625_v63 }
 0x990   : > { %v6629_v0 = vpop.eup %6628  ;;  %4763 = vst [vmem:[%s8836_s5 + $0xf8] sm:$0xff] %v6627_v43 }
 0x991   : > { %4761 = vst [vmem:[%s8836_s5 + $0xe8] sm:$0xff] %v6629_v0 }
 0x992   : > { %6646 = shalt.err (!%p6643_p3)
}
 0x993   : > { %s6647_s20 = scalar_lea.hbm %s8893_s10, 4096  ;;  %s6651_s27 = scalar_lea.hbm %s8947_s4, 8192 }
 0x994   : > { %p6648_p4 = scmp.ne.s32.totalorder %s8893_s10, %s6647_s20  ;;  %p6652_p9 = scmp.lt.u32.totalorder %s8893_s10, %s8947_s4 }
 0x995   : > { %p6653_p10 = scmp.lt.u32.totalorder %s6651_s27, %s6647_s20  ;;  %p6655_p12 = scmp.lt.u32.totalorder %s6647_s20, %s8893_s10 }
 0x996   : > { %p6649_p7 = pnand %p6648_p4, %p6766_p5 }
 0x997   : > { %p6654_p11 = por %p6653_p10, %p6652_p9 }
 0x998   : > { %p6650_p8 = pneg %p6649_p7 }
 0x999   : > { %p6656_p13 = por %p6655_p12, %p6654_p11 }
 0x99b   : > { %p6657_p0 = pnand %p6656_p13, %p6650_p8 }
 0x99d   : > { %6660 = shalt.err (!%p6657_p0)
}
 0x99e   : > { %s6701_s30 = smov 128   ;;  %s6702_s5 = smov 8  }
 0x99f   : > { %5609 = dma.vmem_to_hbm [thread:$0]  (%p6766_p5), %s8895_s7, 4096, %s8893_s10, %s8902_s19, %s6701_s30, %s6701_s30, %s6702_s5  }
 0x9a0 PF: > { %p5615_p1 = scmp.ge.s32.totalorder %s6695_s18, 2  ;;  %s4793_s6 = sand.u32 1, %s6683_s15  }
 0x9a1   : > { %s4794_s8 = scalar_lea.sflag [#allocation3], %s4793_s6 }
 0x9a2   : > { %p5612_p2 = pnand %p5615_p1, %p6770_p6 }
 0x9a4   : > { %6678 = dma.done.wait (!%p5612_p2), %s4794_s8, 4096  }
 0x9a5   : > { %6680 = vsyncadd (!%p5612_p2), %s4794_s8, 4294963200  ;;  %p14_p3 = scmp.ge.s32.totalorder %s6753_s21, 4   ;;  %s9100_s15 = smov %s6687_s16 }
 0x9a6   : > { %s9101_s16 = smov %s6691_s17  ;;  %s9102_s17 = smov %s6764_s24 }
 0x9a7   : > { %s9103_s18 = smov %s6753_s21  ;;  %16 = sbr.rel (!%p14_p3) target bundleno = 3 (0x3), region = 74 }
 0x9ae   :  { %4799 = vsyncpa [#allocation3], 1 }
 0x9af   :  { %4801 = vsyncpa [#allocation3 + $0x1], 1 }

</bundles_post_ra>
